<compile_context>
chip_gen: v7x
topology: tpu7x:2x2x1
jax: 0.10.0
libtpu: 0.0.40
codegen_flags: <defaults>
</compile_context>

<pallas_src>
import functools

import jax
import jax.numpy as jnp
from jax.experimental import pallas as pl
from jax.experimental.pallas import tpu as pltpu


def _round_up(n, m):
    return ((n + m - 1) // m) * m


def _celu(z):
    # torch.celu with alpha=1:  x>0 ? x : exp(x)-1  (clamp before exp for hygiene)
    return jnp.where(z > 0, z, jnp.exp(jnp.minimum(z, 0.0)) - 1.0)


def dense_icnn_u_forward(x, Qs, Ws, bs, As, Wf, *, tb=None):
    """Forward pass of DenseICNN_U.

    x  : [B, D_in] float32
    Qs : list of [D_in, rank, H_k]   (ConvexQuadratic.quadratic_decomposed)
    Ws : list of [H_k, D_in]         (ConvexQuadratic.weight)
    bs : list of [H_k]               (ConvexQuadratic.bias)
    As : list of [H_{k+1}, H_k]      (convex_layers Linear weights, no bias)
    Wf : [1, H_last]                 (final_layer weight, no bias)
    returns [B, 1] float32
    """
    x = x.astype(jnp.float32)
    B, D_in = x.shape
    L = len(Qs)
    hs = [int(q.shape[2]) for q in Qs]
    rank = int(Qs[0].shape[1])
    n_a = L - 1

    # ---- Pack all quad projections + all linear skips into one resident matrix ----
    # Column layout: [layer0 r0..r_{rank-1} | layer1 ... | layerL-1 ...] then
    #                [layer0 linear | layer1 linear | ... ].
    quad_cols = [Qs[k][:, r, :].astype(jnp.float32) for k in range(L) for r in range(rank)]
    lin_cols = [Ws[k].T.astype(jnp.float32) for k in range(L)]
    Wcat = jnp.concatenate(quad_cols + lin_cols, axis=1)              # [D_in, (rank+1)*sum(H)]
    n_quad = rank * sum(hs)
    bcat = jnp.concatenate(
        [jnp.zeros((n_quad,), jnp.float32)] + [b.astype(jnp.float32) for b in bs]
    )[None, :]                                                        # [1, total_cols]
    A_t = [a.T.astype(jnp.float32) for a in As]                       # z @ A_t layout
    Wf_row = Wf.reshape(1, -1).astype(jnp.float32)                    # [1, H_last]

    # ---- Batch tiling: TB multiple of 256 (MXU M), capped so x buffers stay small ----
    if tb is None:
        tb = min(1024, _round_up(max(B, 1), 256))
    B_pad = _round_up(B, tb)
    if B_pad != B:
        x = jnp.pad(x, ((0, B_pad - B), (0, 0)))

    def kernel(*refs):
        x_ref, wcat_ref, bcat_ref = refs[0], refs[1], refs[2]
        a_refs = refs[3:3 + n_a]
        wf_ref = refs[3 + n_a]
        o_ref = refs[4 + n_a]

        xt = x_ref[...]
        # One fused MXU matmul feeds every quadratic projection and linear skip.
        y = jnp.dot(xt, wcat_ref[...], preferred_element_type=jnp.float32) + bcat_ref[...]

        # Per-layer skip terms S_k = sum_r proj_{k,r}**2 + (x @ W_k.T + b_k)
        skips = []
        pos = 0
        for h in hs:
            q = None
            for _ in range(rank):
                term = y[:, pos:pos + h] ** 2
                q = term if q is None else q + term
                pos += h
            skips.append(q)
        for k, h in enumerate(hs):
            skips[k] = skips[k] + y[:, pos:pos + h]
            pos += h

        # ICNN chain with CELU activations.
        z = skips[0]
        for k in range(1, L):
            z = jnp.dot(z, a_refs[k - 1][...], preferred_element_type=jnp.float32) + skips[k]
            z = _celu(z)

        # Final [TB,H] x [H,1] head as a VPU lane-reduce (avoid degenerate MXU call).
        o_ref[...] = jnp.sum(z * wf_ref[...], axis=1, keepdims=True).astype(o_ref.dtype)

    grid = (pl.cdiv(B_pad, tb),)
    in_specs = (
        [pl.BlockSpec((tb, D_in), lambda i: (i, 0))]                 # x: streamed, pipelined
        + [pl.BlockSpec(Wcat.shape, lambda i: (0, 0)),               # weights: resident
           pl.BlockSpec(bcat.shape, lambda i: (0, 0))]
        + [pl.BlockSpec(a.shape, lambda i: (0, 0)) for a in A_t]
        + [pl.BlockSpec(Wf_row.shape, lambda i: (0, 0))]
    )
    out = pl.pallas_call(
        kernel,
        out_shape=jax.ShapeDtypeStruct((B_pad, 1), jnp.float32),
        grid=grid,
        in_specs=in_specs,
        out_specs=pl.BlockSpec((tb, 1), lambda i: (i, 0)),
        compiler_params=pltpu.CompilerParams(
            dimension_semantics=("parallel",),
            vmem_limit_bytes=32 * 1024 * 1024,
        ),
    )(x, Wcat, bcat, *A_t, Wf_row)
    return out[:B]


def _reference(x, Qs, Ws, bs, As, Wf):
    def convex_quadratic(xx, Q, W, b):
        proj = jnp.einsum("bi,iro->bro", xx, Q)          # [B, rank, out]
        quad = jnp.sum(proj ** 2, axis=1)                # [B, out]
        return quad + xx @ W.T + b

    z = convex_quadratic(x, Qs[0], Ws[0], bs[0])
    for k in range(1, len(Qs)):
        z = z @ As[k - 1].T + convex_quadratic(x, Qs[k], Ws[k], bs[k])
        z = _celu(z)
    return z @ Wf.T


if __name__ == "__main__":
    key = jax.random.PRNGKey(0)
    ki = iter(jax.random.split(key, 16))

    B, D_in = 2, 1024            # e.g. a flattened 4x16x16 input
    hidden = [32, 32, 32]        # module defaults
    rank = 1

    x = jax.random.normal(next(ki), (B, D_in), dtype=jnp.float32)
    Qs = [jax.random.normal(next(ki), (D_in, rank, h), dtype=jnp.float32) / jnp.sqrt(D_in)
          for h in hidden]
    Ws = [jax.random.normal(next(ki), (h, D_in), dtype=jnp.float32) / jnp.sqrt(D_in)
          for h in hidden]
    bs = [0.1 * jax.random.normal(next(ki), (h,), dtype=jnp.float32) for h in hidden]
    As = [jax.random.normal(next(ki), (h_out, h_in), dtype=jnp.float32) / jnp.sqrt(h_in)
          for h_in, h_out in zip(hidden[:-1], hidden[1:])]
    Wf = jax.random.normal(next(ki), (1, hidden[-1]), dtype=jnp.float32) / jnp.sqrt(hidden[-1])

    out = dense_icnn_u_forward(x, Qs, Ws, bs, As, Wf)
    out = jax.block_until_ready(out)

    ref = _reference(x, Qs, Ws, bs, As, Wf)
    assert out.shape == (B, 1), out.shape
    assert jnp.allclose(out, ref, atol=2e-3, rtol=2e-3), (out, ref)

    print("KERNEL_OK")
</pallas_src>

<mosaic_0001>
module attributes {stable_mosaic.version = 11 : i64} {
  func.func @kernel(%arg0: i32, %arg1: memref<256x1024xf32, #tpu.memory_space<vmem>>, %arg2: memref<1024x192xf32, #tpu.memory_space<vmem>>, %arg3: memref<1x192xf32, #tpu.memory_space<vmem>>, %arg4: memref<32x32xf32, #tpu.memory_space<vmem>>, %arg5: memref<32x32xf32, #tpu.memory_space<vmem>>, %arg6: memref<1x32xf32, #tpu.memory_space<vmem>>, %arg7: memref<256x1xf32, #tpu.memory_space<vmem>>) attributes {dimension_semantics = [#tpu.dimension_semantics<parallel>], iteration_bounds = array<i64: 1>, scalar_prefetch = 0 : i64, scratch_operands = 0 : i64, tpu.core_type = #tpu.core_type<tc>, window_params = [{transform_indices = @transform_0, window_bounds = array<i64: 256, 1024>}, {pipeline_mode = #tpu.pipeline_mode<synchronous>, transform_indices = @transform_1, window_bounds = array<i64: 1024, 192>}, {pipeline_mode = #tpu.pipeline_mode<synchronous>, transform_indices = @transform_2, window_bounds = array<i64: 1, 192>}, {pipeline_mode = #tpu.pipeline_mode<synchronous>, transform_indices = @transform_3, window_bounds = array<i64: 32, 32>}, {pipeline_mode = #tpu.pipeline_mode<synchronous>, transform_indices = @transform_4, window_bounds = array<i64: 32, 32>}, {pipeline_mode = #tpu.pipeline_mode<synchronous>, transform_indices = @transform_5, window_bounds = array<i64: 1, 32>}, {transform_indices = @transform_6, window_bounds = array<i64: 256, 1>}]} {
    %c0 = arith.constant 0 : index
    %c0_0 = arith.constant 0 : index
    %0 = vector.load %arg1[%c0, %c0_0] : memref<256x1024xf32, #tpu.memory_space<vmem>>, vector<256x1024xf32>
    %c0_1 = arith.constant 0 : index
    %c0_2 = arith.constant 0 : index
    %1 = vector.load %arg2[%c0_1, %c0_2] : memref<1024x192xf32, #tpu.memory_space<vmem>>, vector<1024x192xf32>
    %cst = arith.constant dense<0.000000e+00> : vector<256x192xf32>
    %2 = tpu.matmul %0, %1, %cst {dimension_numbers = #tpu.dot_dimension_numbers<[1], [0], [0], [1], [0, 0, 1, 1], [], []>} : vector<256x1024xf32>, vector<1024x192xf32>, vector<256x192xf32> -> vector<256x192xf32>
    %c0_3 = arith.constant 0 : index
    %c0_4 = arith.constant 0 : index
    %3 = vector.load %arg3[%c0_3, %c0_4] : memref<1x192xf32, #tpu.memory_space<vmem>>, vector<1x192xf32>
    %4 = vector.broadcast %3 : vector<1x192xf32> to vector<256x192xf32>
    %5 = arith.addf %2, %4 : vector<256x192xf32>
    %6 = vector.extract_strided_slice %5 {offsets = [0, 0], sizes = [256, 32], strides = [1, 1]} : vector<256x192xf32> to vector<256x32xf32>
    %7 = arith.mulf %6, %6 : vector<256x32xf32>
    %8 = vector.extract_strided_slice %5 {offsets = [0, 32], sizes = [256, 32], strides = [1, 1]} : vector<256x192xf32> to vector<256x32xf32>
    %9 = arith.mulf %8, %8 : vector<256x32xf32>
    %10 = vector.extract_strided_slice %5 {offsets = [0, 64], sizes = [256, 32], strides = [1, 1]} : vector<256x192xf32> to vector<256x32xf32>
    %11 = arith.mulf %10, %10 : vector<256x32xf32>
    %12 = vector.extract_strided_slice %5 {offsets = [0, 96], sizes = [256, 32], strides = [1, 1]} : vector<256x192xf32> to vector<256x32xf32>
    %13 = arith.addf %7, %12 : vector<256x32xf32>
    %14 = vector.extract_strided_slice %5 {offsets = [0, 128], sizes = [256, 32], strides = [1, 1]} : vector<256x192xf32> to vector<256x32xf32>
    %15 = arith.addf %9, %14 : vector<256x32xf32>
    %16 = vector.extract_strided_slice %5 {offsets = [0, 160], sizes = [256, 32], strides = [1, 1]} : vector<256x192xf32> to vector<256x32xf32>
    %17 = arith.addf %11, %16 : vector<256x32xf32>
    %c0_5 = arith.constant 0 : index
    %c0_6 = arith.constant 0 : index
    %18 = vector.load %arg4[%c0_5, %c0_6] : memref<32x32xf32, #tpu.memory_space<vmem>>, vector<32x32xf32>
    %cst_7 = arith.constant dense<0.000000e+00> : vector<256x32xf32>
    %19 = tpu.matmul %13, %18, %cst_7 {dimension_numbers = #tpu.dot_dimension_numbers<[1], [0], [0], [1], [0, 0, 1, 1], [], []>} : vector<256x32xf32>, vector<32x32xf32>, vector<256x32xf32> -> vector<256x32xf32>
    %20 = arith.addf %19, %15 : vector<256x32xf32>
    %cst_8 = arith.constant 0.000000e+00 : f32
    %21 = vector.broadcast %cst_8 : f32 to vector<256x32xf32>
    %22 = arith.cmpf ogt, %20, %21 : vector<256x32xf32>
    %cst_9 = arith.constant 0.000000e+00 : f32
    %23 = vector.broadcast %cst_9 : f32 to vector<256x32xf32>
    %24 = arith.minimumf %20, %23 : vector<256x32xf32>
    %25 = math.exp %24 : vector<256x32xf32>
    %cst_10 = arith.constant 1.000000e+00 : f32
    %26 = vector.broadcast %cst_10 : f32 to vector<256x32xf32>
    %27 = arith.subf %25, %26 : vector<256x32xf32>
    %28 = arith.select %22, %20, %27 : vector<256x32xi1>, vector<256x32xf32>
    %c0_11 = arith.constant 0 : index
    %c0_12 = arith.constant 0 : index
    %29 = vector.load %arg5[%c0_11, %c0_12] : memref<32x32xf32, #tpu.memory_space<vmem>>, vector<32x32xf32>
    %cst_13 = arith.constant dense<0.000000e+00> : vector<256x32xf32>
    %30 = tpu.matmul %28, %29, %cst_13 {dimension_numbers = #tpu.dot_dimension_numbers<[1], [0], [0], [1], [0, 0, 1, 1], [], []>} : vector<256x32xf32>, vector<32x32xf32>, vector<256x32xf32> -> vector<256x32xf32>
    %31 = arith.addf %30, %17 : vector<256x32xf32>
    %cst_14 = arith.constant 0.000000e+00 : f32
    %32 = vector.broadcast %cst_14 : f32 to vector<256x32xf32>
    %33 = arith.cmpf ogt, %31, %32 : vector<256x32xf32>
    %cst_15 = arith.constant 0.000000e+00 : f32
    %34 = vector.broadcast %cst_15 : f32 to vector<256x32xf32>
    %35 = arith.minimumf %31, %34 : vector<256x32xf32>
    %36 = math.exp %35 : vector<256x32xf32>
    %cst_16 = arith.constant 1.000000e+00 : f32
    %37 = vector.broadcast %cst_16 : f32 to vector<256x32xf32>
    %38 = arith.subf %36, %37 : vector<256x32xf32>
    %39 = arith.select %33, %31, %38 : vector<256x32xi1>, vector<256x32xf32>
    %c0_17 = arith.constant 0 : index
    %c0_18 = arith.constant 0 : index
    %40 = vector.load %arg6[%c0_17, %c0_18] : memref<1x32xf32, #tpu.memory_space<vmem>>, vector<1x32xf32>
    %41 = vector.broadcast %40 : vector<1x32xf32> to vector<256x32xf32>
    %42 = arith.mulf %39, %41 : vector<256x32xf32>
    %cst_19 = arith.constant dense<0.000000e+00> : vector<256xf32>
    %43 = vector.multi_reduction <add>, %42, %cst_19 [1] : vector<256x32xf32> to vector<256xf32>
    %44 = vector.shape_cast %43 : vector<256xf32> to vector<256x1xf32>
    %c0_20 = arith.constant 0 : index
    %c0_21 = arith.constant 0 : index
    %45 = vector.load %arg7[%c0_20, %c0_21] : memref<256x1xf32, #tpu.memory_space<vmem>>, vector<256x1xf32>
    tpu.vector_store %arg7[%c0_20, %c0_21], %44 {strides = array<i32>} : memref<256x1xf32, #tpu.memory_space<vmem>>, vector<256x1xf32>,
    return
  }
  func.func @transform_0(%arg0: i32) -> (i32, i32) {
    %c0_i32 = arith.constant 0 : i32
    %c0_i32_0 = arith.constant 0 : i32
    return %arg0, %c0_i32 : i32, i32
  }
  func.func @transform_1(%arg0: i32) -> (i32, i32) {
    %c0_i32 = arith.constant 0 : i32
    %c0_i32_0 = arith.constant 0 : i32
    %c0_i32_1 = arith.constant 0 : i32
    return %c0_i32, %c0_i32_0 : i32, i32
  }
  func.func @transform_2(%arg0: i32) -> (i32, i32) {
    %c0_i32 = arith.constant 0 : i32
    %c0_i32_0 = arith.constant 0 : i32
    %c0_i32_1 = arith.constant 0 : i32
    return %c0_i32, %c0_i32_0 : i32, i32
  }
  func.func @transform_3(%arg0: i32) -> (i32, i32) {
    %c0_i32 = arith.constant 0 : i32
    %c0_i32_0 = arith.constant 0 : i32
    %c0_i32_1 = arith.constant 0 : i32
    return %c0_i32, %c0_i32_0 : i32, i32
  }
  func.func @transform_4(%arg0: i32) -> (i32, i32) {
    %c0_i32 = arith.constant 0 : i32
    %c0_i32_0 = arith.constant 0 : i32
    %c0_i32_1 = arith.constant 0 : i32
    return %c0_i32, %c0_i32_0 : i32, i32
  }
  func.func @transform_5(%arg0: i32) -> (i32, i32) {
    %c0_i32 = arith.constant 0 : i32
    %c0_i32_0 = arith.constant 0 : i32
    %c0_i32_1 = arith.constant 0 : i32
    return %c0_i32, %c0_i32_0 : i32, i32
  }
  func.func @transform_6(%arg0: i32) -> (i32, i32) {
    %c0_i32 = arith.constant 0 : i32
    %c0_i32_0 = arith.constant 0 : i32
    return %arg0, %c0_i32 : i32, i32
  }
}

</mosaic_0001>

<bundles_post_ra>
// kernel: tpu_custom_call.1
= control target key start
LH: loop header
LB: loop body
LE: loop exit
PB: predicated region body
PF: predicated region fallthrough
CT: control target
= control target key end

     0   :  { %vm2059_vm0 = vcmask 261120   ;;  %s4363_s8 = smov 96   ;;  %s7416_s1 = inlined_call_operand.vmem [shape: f32[1024,192], index: 1, kind: input, shape index: {}]   ;;  %s7417_s0 = inlined_call_operand.vmem [shape: f32[256,1024], index: 0, kind: input, shape index: {}]   ;;  %s7418_s2 = inlined_call_operand.vmem [shape: f32[1,192], index: 2, kind: input, shape index: {}]   ;;  %s7419_s3 = inlined_call_operand.vmem [shape: f32[32,32], index: 3, kind: input, shape index: {}]   ;;  %s7420_s4 = inlined_call_operand.vmem [shape: f32[32,32], index: 4, kind: input, shape index: {}]   ;;  %s7421_s5 = inlined_call_operand.vmem [shape: f32[1,32], index: 5, kind: input, shape index: {}]   ;;  %s7422_s6 = inlined_call_operand.vmem [shape: f32[256,1], index: 6, kind: output, shape index: {}]  }
   0x1   :  { %v344_v0 = vld [vmem:[%s7416_s1 + $0x208] sm:$0xff]  ;;  %v346_v1 = vld [vmem:[%s7416_s1 + $0x218] sm:$0xff]  ;;  %v343_v2 = vld [vmem:[%s7416_s1 + $0x200] sm:$0xff] }
   0x2   :  { %v4409_v3 = vpack.c.bf16 %v346_v1, %v344_v0  ;;  %v345_v4 = vld [vmem:[%s7416_s1 + $0x210] sm:$0xff]  ;;  %v348_v5 = vld [vmem:[%s7416_s1 + $0x228] sm:$0xff]  ;;  %v350_v6 = vld [vmem:[%s7416_s1 + $0x238] sm:$0xff] }
   0x3   :  { %v4420_v7 = vpack.c.bf16 %v345_v4, %v343_v2  ;;  %v4422_v8 = vpack.c.bf16 %v350_v6, %v348_v5  ;;  %v347_v9 = vld [vmem:[%s7416_s1 + $0x220] sm:$0xff]  ;;  %v349_v10 = vld [vmem:[%s7416_s1 + $0x230] sm:$0xff]  ;;  %v352_v11 = vld [vmem:[%s7416_s1 + $0x248] sm:$0xff] }
   0x4   :  { %3736 = vmatprep.subr.bf16.mxu0 %v4409_v3  ;;  %v354_v12 = vld [vmem:[%s7416_s1 + $0x258] sm:$0xff]  ;;  %v4438_v13 = vpack.c.bf16 %v349_v10, %v347_v9  ;;  %v351_v15 = vld [vmem:[%s7416_s1 + $0x240] sm:$0xff]  ;;  %v353_v16 = vld [vmem:[%s7416_s1 + $0x250] sm:$0xff] }
   0x5   :  { %3738 = vmatpush1.bf16.msra.mxu0 %v4420_v7  ;;  %v4441_v14 = vpack.c.bf16 %v354_v12, %v352_v11  ;;  %v356_v17 = vld [vmem:[%s7416_s1 + $0x268] sm:$0xff]  ;;  %v358_v18 = vld [vmem:[%s7416_s1 + $0x278] sm:$0xff]  ;;  %v4456_v19 = vpack.c.bf16 %v353_v16, %v351_v15  ;;  %v355_v21 = vld [vmem:[%s7416_s1 + $0x260] sm:$0xff] }
   0x6   :  { %3740 = vmatprep.subr.bf16.mxu0 %v4422_v8  ;;  %v4459_v20 = vpack.c.bf16 %v358_v18, %v356_v17  ;;  %v357_v22 = vld [vmem:[%s7416_s1 + $0x270] sm:$0xff]  ;;  %v360_v23 = vld [vmem:[%s7416_s1 + $0x288] sm:$0xff]  ;;  %v362_v24 = vld [vmem:[%s7416_s1 + $0x298] sm:$0xff] }
   0x7   :  { %v4474_v25 = vpack.c.bf16 %v357_v22, %v355_v21  ;;  %v4477_v26 = vpack.c.bf16 %v362_v24, %v360_v23  ;;  %v359_v27 = vld [vmem:[%s7416_s1 + $0x280] sm:$0xff]  ;;  %v361_v28 = vld [vmem:[%s7416_s1 + $0x290] sm:$0xff]  ;;  %v364_v29 = vld [vmem:[%s7416_s1 + $0x2a8] sm:$0xff] }
   0x8   :  { %v366_v30 = vld [vmem:[%s7416_s1 + $0x2b8] sm:$0xff]  ;;  %v4492_v31 = vpack.c.bf16 %v361_v28, %v359_v27  ;;  %v363_v33 = vld [vmem:[%s7416_s1 + $0x2a0] sm:$0xff]  ;;  %v365_v34 = vld [vmem:[%s7416_s1 + $0x2b0] sm:$0xff] }
   0x9   :  { %3742 = vmatpush1.bf16.msra.mxu0 %v4438_v13  ;;  %v4495_v32 = vpack.c.bf16 %v366_v30, %v364_v29  ;;  %v368_v35 = vld [vmem:[%s7416_s1 + $0x2c8] sm:$0xff]  ;;  %v370_v36 = vld [vmem:[%s7416_s1 + $0x2d8] sm:$0xff]  ;;  %v4510_v37 = vpack.c.bf16 %v365_v34, %v363_v33  ;;  %v367_v38 = vld [vmem:[%s7416_s1 + $0x2c0] sm:$0xff] }
   0xa   :  { %3744 = vmatprep.subr.bf16.mxu0 %v4441_v14  ;;  %v369_v39 = vld [vmem:[%s7416_s1 + $0x2d0] sm:$0xff]  ;;  %v372_v40 = vld [vmem:[%s7416_s1 + $0x2e8] sm:$0xff]  ;;  %v4522_v41 = vpack.c.bf16 %v370_v36, %v368_v35  ;;  %v374_v42 = vld [vmem:[%s7416_s1 + $0x2f8] sm:$0xff] }
   0xb   :  { %v280_v43 = vld [vmem:[%s7416_s1 + $0x8] sm:$0xff]  ;;  %v282_v44 = vld [vmem:[%s7416_s1 + $0x18] sm:$0xff]  ;;  %v279_v46 = vld [vmem:[%s7416_s1] sm:$0xff]  ;;  %v4543_v50 = vpack.c.bf16 %v369_v39, %v367_v38  ;;  %v4555_v54 = vpack.c.bf16 %v374_v42, %v372_v40 }
   0xc   :  { %v3671_v45 = vpack.c.bf16 %v282_v44, %v280_v43  ;;  %v281_v47 = vld [vmem:[%s7416_s1 + $0x10] sm:$0xff]  ;;  %v26_v48 = vld [vmem:[%s7417_s0 + $0x18] sm:$0xff]  ;;  %v371_v51 = vld [vmem:[%s7416_s1 + $0x2e0] sm:$0xff] }
   0xd   :  { %3746 = vmatpush1.bf16.msra.mxu0 %v4456_v19  ;;  %v3673_v49 = vpack.c.bf16 %v281_v47, %v279_v46  ;;  %868 = vmatprep.mubr.f32.mxu0 %v26_v48  ;;  %v373_v52 = vld [vmem:[%s7416_s1 + $0x2f0] sm:$0xff]  ;;  %v284_v53 = vld [vmem:[%s7416_s1 + $0x28] sm:$0xff]  ;;  %v286_v55 = vld [vmem:[%s7416_s1 + $0x38] sm:$0xff] }
   0xe   :  { %3748 = vmatprep.subr.bf16.mxu0 %v4459_v20  ;;  %3672 = vmatprep.subr.bf16.mxu1 %v3671_v45  ;;  %v283_v56 = vld [vmem:[%s7416_s1 + $0x20] sm:$0xff]  ;;  %v285_v57 = vld [vmem:[%s7416_s1 + $0x30] sm:$0xff]  ;;  %v376_v58 = vld [vmem:[%s7416_s1 + $0x308] sm:$0xff]  ;;  %v3675_v60 = vpack.c.bf16 %v286_v55, %v284_v53  ;;  %v4573_v62 = vpack.c.bf16 %v373_v52, %v371_v51 }
   0xf   :  { %3674 = vmatpush1.bf16.msra.mxu1 %v3673_v49  ;;  %v378_v59 = vld [vmem:[%s7416_s1 + $0x318] sm:$0xff]  ;;  %v3677_v61 = vpack.c.bf16 %v285_v57, %v283_v56  ;;  %v288_v63 = vld [vmem:[%s7416_s1 + $0x48] sm:$0xff]  ;;  %v287_v1 = vld [vmem:[%s7416_s1 + $0x40] sm:$0xff] }
  0x10   :  { %3676 = vmatprep.subr.bf16.mxu1 %v3675_v60  ;;  %v290_v0 = vld [vmem:[%s7416_s1 + $0x58] sm:$0xff]  ;;  %v4585_v2 = vpack.c.bf16 %v378_v59, %v376_v58  ;;  %v375_v4 = vld [vmem:[%s7416_s1 + $0x300] sm:$0xff]  ;;  %v377_v5 = vld [vmem:[%s7416_s1 + $0x310] sm:$0xff] }
  0x11   :  { %3750 = vmatpush1.bf16.msra.mxu0 %v4474_v25  ;;  %v3679_v6 = vpack.c.bf16 %v290_v0, %v288_v63  ;;  %v289_v9 = vld [vmem:[%s7416_s1 + $0x50] sm:$0xff]  ;;  %v380_v10 = vld [vmem:[%s7416_s1 + $0x328] sm:$0xff]  ;;  %v382_v11 = vld [vmem:[%s7416_s1 + $0x338] sm:$0xff]  ;;  %v4609_v17 = vpack.c.bf16 %v377_v5, %v375_v4 }
  0x12   :  { %3752 = vmatprep.subr.bf16.mxu0 %v4477_v26  ;;  %v3681_v12 = vpack.c.bf16 %v289_v9, %v287_v1  ;;  %v292_v15 = vld [vmem:[%s7416_s1 + $0x68] sm:$0xff]  ;;  %v294_v16 = vld [vmem:[%s7416_s1 + $0x78] sm:$0xff]  ;;  %v291_v21 = vld [vmem:[%s7416_s1 + $0x60] sm:$0xff]  ;;  %v4618_v23 = vpack.c.bf16 %v382_v11, %v380_v10 }
  0x13   :  { %3678 = vmatpush1.bf16.msra.mxu1 %v3677_v61  ;;  %v3683_v18 = vpack.c.bf16 %v294_v16, %v292_v15  ;;  %v293_v22 = vld [vmem:[%s7416_s1 + $0x70] sm:$0xff]  ;;  %v379_v24 = vld [vmem:[%s7416_s1 + $0x320] sm:$0xff]  ;;  %v384_v29 = vld [vmem:[%s7416_s1 + $0x348] sm:$0xff] }
  0x14   :  { %3680 = vmatprep.subr.bf16.mxu1 %v3679_v6  ;;  %v381_v27 = vld [vmem:[%s7416_s1 + $0x330] sm:$0xff]  ;;  %v3685_v28 = vpack.c.bf16 %v293_v22, %v291_v21  ;;  %v386_v30 = vld [vmem:[%s7416_s1 + $0x358] sm:$0xff]  ;;  %v296_v33 = vld [vmem:[%s7416_s1 + $0x88] sm:$0xff] }
  0x15   :  { %3754 = vmatpush1.bf16.msra.mxu0 %v4492_v31  ;;  %v298_v34 = vld [vmem:[%s7416_s1 + $0x98] sm:$0xff]  ;;  %v295_v35 = vld [vmem:[%s7416_s1 + $0x80] sm:$0xff]  ;;  %v297_v36 = vld [vmem:[%s7416_s1 + $0x90] sm:$0xff]  ;;  %v4645_v38 = vpack.c.bf16 %v381_v27, %v379_v24  ;;  %v4651_v42 = vpack.c.bf16 %v386_v30, %v384_v29 }
  0x16   :  { %3756 = vmatprep.subr.bf16.mxu0 %v4495_v32  ;;  %v383_v39 = vld [vmem:[%s7416_s1 + $0x340] sm:$0xff]  ;;  %v3687_v40 = vpack.c.bf16 %v298_v34, %v296_v33  ;;  %v385_v43 = vld [vmem:[%s7416_s1 + $0x350] sm:$0xff]  ;;  %v388_v44 = vld [vmem:[%s7416_s1 + $0x368] sm:$0xff]  ;;  %v3689_v46 = vpack.c.bf16 %v297_v36, %v295_v35 }
  0x17   :  { %3682 = vmatpush1.bf16.msra.mxu1 %v3681_v12  ;;  %v390_v45 = vld [vmem:[%s7416_s1 + $0x378] sm:$0xff]  ;;  %v300_v47 = vld [vmem:[%s7416_s1 + $0xa8] sm:$0xff]  ;;  %v299_v49 = vld [vmem:[%s7416_s1 + $0xa0] sm:$0xff]  ;;  %v4675_v53 = vpack.c.bf16 %v385_v43, %v383_v39 }
  0x18   :  { %3684 = vmatprep.subr.bf16.mxu1 %v3683_v18  ;;  %v302_v48 = vld [vmem:[%s7416_s1 + $0xb8] sm:$0xff]  ;;  %v301_v52 = vld [vmem:[%s7416_s1 + $0xb0] sm:$0xff]  ;;  %v387_v55 = vld [vmem:[%s7416_s1 + $0x360] sm:$0xff]  ;;  %v4684_v57 = vpack.c.bf16 %v390_v45, %v388_v44 }
  0x19   :  { %3758 = vmatpush1.bf16.msra.mxu0 %v4510_v37  ;;  %v3691_v51 = vpack.c.bf16 %v302_v48, %v300_v47  ;;  %v389_v56 = vld [vmem:[%s7416_s1 + $0x370] sm:$0xff]  ;;  %v392_v58 = vld [vmem:[%s7416_s1 + $0x388] sm:$0xff]  ;;  %v3693_v59 = vpack.c.bf16 %v301_v52, %v299_v49  ;;  %v306_v61 = vld [vmem:[%s7416_s1 + $0xd8] sm:$0xff] }
  0x1a   :  { %3760 = vmatprep.subr.bf16.mxu0 %v4522_v41  ;;  %v304_v60 = vld [vmem:[%s7416_s1 + $0xc8] sm:$0xff]  ;;  %v394_v63 = vld [vmem:[%s7416_s1 + $0x398] sm:$0xff]  ;;  %v303_v1 = vld [vmem:[%s7416_s1 + $0xc0] sm:$0xff]  ;;  %v4705_v5 = vpack.c.bf16 %v389_v56, %v387_v55 }
  0x1b   :  { %3686 = vmatpush1.bf16.msra.mxu1 %v3685_v28  ;;  %v3695_v0 = vpack.c.bf16 %v306_v61, %v304_v60  ;;  %v305_v4 = vld [vmem:[%s7416_s1 + $0xd0] sm:$0xff]  ;;  %v391_v6 = vld [vmem:[%s7416_s1 + $0x380] sm:$0xff]  ;;  %v308_v9 = vld [vmem:[%s7416_s1 + $0xe8] sm:$0xff]  ;;  %v4714_v10 = vpack.c.bf16 %v394_v63, %v392_v58 }
  0x1c   :  { %3688 = vmatprep.subr.bf16.mxu1 %v3687_v40  ;;  %v393_v11 = vld [vmem:[%s7416_s1 + $0x390] sm:$0xff]  ;;  %v396_v12 = vld [vmem:[%s7416_s1 + $0x3a8] sm:$0xff]  ;;  %v3697_v15 = vpack.c.bf16 %v305_v4, %v303_v1  ;;  %v310_v16 = vld [vmem:[%s7416_s1 + $0xf8] sm:$0xff] }
  0x1d   :  { %3762 = vmatpush1.bf16.msra.mxu0 %v4543_v50  ;;  %v398_v18 = vld [vmem:[%s7416_s1 + $0x3b8] sm:$0xff]  ;;  %v3699_v21 = vpack.c.bf16 %v310_v16, %v308_v9  ;;  %v307_v22 = vld [vmem:[%s7416_s1 + $0xe0] sm:$0xff]  ;;  %v309_v24 = vld [vmem:[%s7416_s1 + $0xf0] sm:$0xff]  ;;  %v4735_v27 = vpack.c.bf16 %v393_v11, %v391_v6 }
  0x1e   :  { %3764 = vmatprep.subr.bf16.mxu0 %v4555_v54  ;;  %v312_v28 = vld [vmem:[%s7416_s1 + $0x108] sm:$0xff]  ;;  %v314_v29 = vld [vmem:[%s7416_s1 + $0x118] sm:$0xff]  ;;  %v4744_v30 = vpack.c.bf16 %v398_v18, %v396_v12  ;;  %v395_v33 = vld [vmem:[%s7416_s1 + $0x3a0] sm:$0xff]  ;;  %v3701_v36 = vpack.c.bf16 %v309_v24, %v307_v22 }
  0x1f   :  { %3690 = vmatpush1.bf16.msra.mxu1 %v3689_v46  ;;  %v397_v34 = vld [vmem:[%s7416_s1 + $0x3b0] sm:$0xff]  ;;  %v400_v35 = vld [vmem:[%s7416_s1 + $0x3c8] sm:$0xff]  ;;  %v402_v39 = vld [vmem:[%s7416_s1 + $0x3d8] sm:$0xff]  ;;  %v3703_v40 = vpack.c.bf16 %v314_v29, %v312_v28 }
  0x20   :  { %3692 = vmatprep.subr.bf16.mxu1 %v3691_v51  ;;  %v311_v43 = vld [vmem:[%s7416_s1 + $0x100] sm:$0xff]  ;;  %v313_v44 = vld [vmem:[%s7416_s1 + $0x110] sm:$0xff]  ;;  %v316_v45 = vld [vmem:[%s7416_s1 + $0x128] sm:$0xff]  ;;  %v4771_v47 = vpack.c.bf16 %v397_v34, %v395_v33  ;;  %v4774_v48 = vpack.c.bf16 %v402_v39, %v400_v35 }
  0x21   :  { %3766 = vmatpush1.bf16.msra.mxu0 %v4573_v62  ;;  %v318_v46 = vld [vmem:[%s7416_s1 + $0x138] sm:$0xff]  ;;  %v399_v49 = vld [vmem:[%s7416_s1 + $0x3c0] sm:$0xff]  ;;  %v401_v51 = vld [vmem:[%s7416_s1 + $0x3d0] sm:$0xff]  ;;  %v3705_v55 = vpack.c.bf16 %v313_v44, %v311_v43 }
  0x22   :  { %3768 = vmatprep.subr.bf16.mxu0 %v4585_v2  ;;  %v404_v52 = vld [vmem:[%s7416_s1 + $0x3e8] sm:$0xff]  ;;  %v406_v56 = vld [vmem:[%s7416_s1 + $0x3f8] sm:$0xff]  ;;  %v3707_v58 = vpack.c.bf16 %v318_v46, %v316_v45  ;;  %v317_v60 = vld [vmem:[%s7416_s1 + $0x130] sm:$0xff] }
  0x23   :  { %3694 = vmatpush1.bf16.msra.mxu1 %v3693_v59  ;;  %v315_v59 = vld [vmem:[%s7416_s1 + $0x120] sm:$0xff]  ;;  %v320_v61 = vld [vmem:[%s7416_s1 + $0x148] sm:$0xff]  ;;  %v322_v63 = vld [vmem:[%s7416_s1 + $0x158] sm:$0xff]  ;;  %v4804_v1 = vpack.c.bf16 %v406_v56, %v404_v52 }
  0x24   :  { %3696 = vmatprep.subr.bf16.mxu1 %v3695_v0  ;;  %v4801_v0 = vpack.c.bf16 %v401_v51, %v399_v49  ;;  %v403_v4 = vld [vmem:[%s7416_s1 + $0x3e0] sm:$0xff]  ;;  %v405_v6 = vld [vmem:[%s7416_s1 + $0x3f0] sm:$0xff]  ;;  %v408_v9 = vld [vmem:[%s7416_s1 + $0x408] sm:$0xff]  ;;  %v3709_v11 = vpack.c.bf16 %v317_v60, %v315_v59 }
  0x25   :  { %3770 = vmatpush1.bf16.msra.mxu0 %v4609_v17  ;;  %v410_v12 = vld [vmem:[%s7416_s1 + $0x418] sm:$0xff]  ;;  %v319_v16 = vld [vmem:[%s7416_s1 + $0x140] sm:$0xff]  ;;  %v321_v18 = vld [vmem:[%s7416_s1 + $0x150] sm:$0xff]  ;;  %v4831_v24 = vpack.c.bf16 %v405_v6, %v403_v4 }
  0x26   :  { %3772 = vmatprep.subr.bf16.mxu0 %v4618_v23  ;;  %v326_v22 = vld [vmem:[%s7416_s1 + $0x178] sm:$0xff]  ;;  %v3799_v28 = vpack.c.bf16 %v410_v12, %v408_v9  ;;  %v407_v29 = vld [vmem:[%s7416_s1 + $0x400] sm:$0xff]  ;;  %v409_v33 = vld [vmem:[%s7416_s1 + $0x410] sm:$0xff]  ;;  %v3713_v35 = vpack.c.bf16 %v321_v18, %v319_v16 }
  0x27   :  { %3698 = vmatpush1.bf16.msra.mxu1 %v3697_v15  ;;  %v3711_v15 = vpack.c.bf16 %v322_v63, %v320_v61  ;;  %v412_v34 = vld [vmem:[%s7416_s1 + $0x428] sm:$0xff]  ;;  %v325_v43 = vld [vmem:[%s7416_s1 + $0x170] sm:$0xff]  ;;  %v330_v45 = vld [vmem:[%s7416_s1 + $0x198] sm:$0xff]  ;;  %v3801_v49 = vpack.c.bf16 %v409_v33, %v407_v29 }
  0x28   :  { %3700 = vmatprep.subr.bf16.mxu1 %v3699_v21  ;;  %v324_v21 = vld [vmem:[%s7416_s1 + $0x168] sm:$0xff]  ;;  %v25_v46 = vld [vmem:[%s7417_s0 + $0x10] sm:$0xff]  ;;  %v34_v51 = vld [vmem:[%s7417_s0 + $0x58] sm:$0xff] }
  0x29   :  { %3774 = vmatpush1.bf16.msra.mxu0 %v4645_v38  ;;  %v3715_v39 = vpack.c.bf16 %v326_v22, %v324_v21  ;;  %v328_v44 = vld [vmem:[%s7416_s1 + $0x188] sm:$0xff]  ;;  %v413_v56 = vld [vmem:[%s7416_s1 + $0x430] sm:$0xff]  ;;  %v418_v60 = vld [vmem:[%s7416_s1 + $0x458] sm:$0xff] }
  0x2a   :  { %3776 = vmatprep.subr.bf16.mxu0 %v4651_v42  ;;  %v3719_v61 = vpack.c.bf16 %v330_v45, %v328_v44  ;;  %v327_v63 = vld [vmem:[%s7416_s1 + $0x180] sm:$0xff]  ;;  %v329_v4 = vld [vmem:[%s7416_s1 + $0x190] sm:$0xff]  ;;  %v332_v6 = vld [vmem:[%s7416_s1 + $0x1a8] sm:$0xff] }
  0x2b   :  { %3702 = vmatpush1.bf16.msra.mxu1 %v3701_v36  ;;  %v414_v36 = vld [vmem:[%s7416_s1 + $0x438] sm:$0xff]  ;;  %v415_v18 = vld [vmem:[%s7416_s1 + $0x440] sm:$0xff]  ;;  %v417_v21 = vld [vmem:[%s7416_s1 + $0x450] sm:$0xff] }
  0x2c   :  { %3704 = vmatprep.subr.bf16.mxu1 %v3703_v40  ;;  %v323_v40 = vld [vmem:[%s7416_s1 + $0x160] sm:$0xff]  ;;  %v3803_v52 = vpack.c.bf16 %v414_v36, %v412_v34  ;;  %v334_v9 = vld [vmem:[%s7416_s1 + $0x1b8] sm:$0xff]  ;;  %v420_v22 = vld [vmem:[%s7416_s1 + $0x468] sm:$0xff] }
  0x2d   :  { %3778 = vmatpush1.bf16.msra.mxu0 %v4675_v53  ;;  %v3717_v59 = vpack.c.bf16 %v325_v43, %v323_v40  ;;  %v422_v29 = vld [vmem:[%s7416_s1 + $0x478] sm:$0xff]  ;;  %v3723_v33 = vpack.c.bf16 %v334_v9, %v332_v6  ;;  %v331_v34 = vld [vmem:[%s7416_s1 + $0x1a0] sm:$0xff]  ;;  %v336_v36 = vld [vmem:[%s7416_s1 + $0x1c8] sm:$0xff]  ;;  %v3809_v43 = vpack.c.bf16 %v417_v21, %v415_v18 }
  0x2e   :  { %3780 = vmatprep.subr.bf16.mxu0 %v4684_v57  ;;  %v41_v40 = vld [vmem:[%s7417_s0 + $0x90] sm:$0xff]  ;;  %v50_v44 = vld [vmem:[%s7417_s0 + $0xd8] sm:$0xff]  ;;  %v419_v45 = vld [vmem:[%s7416_s1 + $0x460] sm:$0xff] }
  0x2f   :  { %3706 = vmatpush1.bf16.msra.mxu1 %v3705_v55  ;;  %v411_v55 = vld [vmem:[%s7416_s1 + $0x420] sm:$0xff]  ;;  %v58_v9 = vld [vmem:[%s7417_s0 + $0x118] sm:$0xff] }
  0x30   :  { %3708 = vmatprep.subr.bf16.mxu1 %v3707_v58  ;;  %v416_v58 = vld [vmem:[%s7416_s1 + $0x448] sm:$0xff]  ;;  %v3805_v12 = vpack.c.bf16 %v413_v56, %v411_v55  ;;  %v430_v21 = vld [vmem:[%s7416_s1 + $0x4b8] sm:$0xff] }
  0x31   :  { %3782 = vmatpush1.bf16.msra.mxu0 %v4705_v5  ;;  %v3807_v16 = vpack.c.bf16 %v418_v60, %v416_v58  ;;  %v335_v58 = vld [vmem:[%s7416_s1 + $0x1c0] sm:$0xff]  ;;  %v24_v60 = vld [vmem:[%s7417_s0 + $0x8] sm:$0xff] }
  0x32   :  { %3784 = vmatprep.subr.bf16.mxu0 %v4714_v10  ;;  %611 = vmatprep.mubr.f32.mxu1 %v24_v60  ;;  %v23_v60 = vld [vmem:[%s7417_s0] sm:$0xff] }
  0x33   :  { %3710 = vmatpush1.bf16.msra.mxu1 %v3709_v11  ;;  %v33_v11 = vld [vmem:[%s7417_s0 + $0x50] sm:$0xff] }
  0x34   :  { %3712 = vmatprep.subr.bf16.mxu1 %v3711_v15  ;;  %v42_v15 = vld [vmem:[%s7417_s0 + $0x98] sm:$0xff] }
  0x35   :  { %3786 = vmatpush1.bf16.msra.mxu0 %v4735_v27 }
  0x36   :  { %3788 = vmatprep.subr.bf16.mxu0 %v4744_v30 }
  0x37   :  { %3714 = vmatpush1.bf16.msra.mxu1 %v3713_v35  ;;  %v333_v35 = vld [vmem:[%s7416_s1 + $0x1b0] sm:$0xff] }
  0x38   :  { %3716 = vmatprep.subr.bf16.mxu1 %v3715_v39  ;;  %v338_v39 = vld [vmem:[%s7416_s1 + $0x1d8] sm:$0xff]  ;;  %v3725_v55 = vpack.c.bf16 %v333_v35, %v331_v34 }
  0x39   :  { %3790 = vmatpush1.bf16.msra.mxu0 %v4771_v47  ;;  %v3727_v56 = vpack.c.bf16 %v338_v39, %v336_v36  ;;  %v66_v35 = vld [vmem:[%s7417_s0 + $0x158] sm:$0xff]  ;;  %v427_v39 = vld [vmem:[%s7416_s1 + $0x4a0] sm:$0xff] }
  0x3a   :  { %3792 = vmatprep.subr.bf16.mxu0 %v4774_v48 }
  0x3b   :  { %3718 = vmatpush1.bf16.msra.mxu1 %v3717_v59  ;;  %v337_v59 = vld [vmem:[%s7416_s1 + $0x1d0] sm:$0xff] }
  0x3c   :  { %3720 = vmatprep.subr.bf16.mxu1 %v3719_v61  ;;  %v340_v61 = vld [vmem:[%s7416_s1 + $0x1e8] sm:$0xff]  ;;  %v3729_v18 = vpack.c.bf16 %v337_v59, %v335_v58  ;;  %v438_v59 = vld [vmem:[%s7416_s1 + $0x4f8] sm:$0xff] }
  0x3d   :  { %3794 = vmatpush1.bf16.msra.mxu0 %v4801_v0  ;;  %v436_v58 = vld [vmem:[%s7416_s1 + $0x4e8] sm:$0xff] }
  0x3e   :  { %3796 = vmatprep.subr.bf16.mxu0 %v4804_v1 }
  0x41   :  { %3798 = vmatpush1.bf16.msra.mxu0 %v4831_v24 }
  0x42   :  { %3800 = vmatprep.subr.bf16.mxu0 %v3799_v28  ;;  %v3721_v28 = vpack.c.bf16 %v329_v4, %v327_v63  ;;  %v342_v63 = vld [vmem:[%s7416_s1 + $0x1f8] sm:$0xff]  ;;  %v49_v4 = vld [vmem:[%s7417_s0 + $0xd0] sm:$0xff] }
  0x44   :  { %869 = vmatmul.mubr.f32.vlgmr.msra.gmra.mrb[0].mxu0 %v25_v46  ;;  %v3811_v46 = vpack.c.bf16 %v422_v29, %v420_v22  ;;  %3722 = vmatpush1.bf16.msra.mxu1 %v3721_v28  ;;  %v3731_v22 = vpack.c.bf16 %v342_v63, %v340_v61  ;;  %v339_v28 = vld [vmem:[%s7416_s1 + $0x1e0] sm:$0xff]  ;;  %v341_v29 = vld [vmem:[%s7416_s1 + $0x1f0] sm:$0xff]  ;;  %v32_v61 = vld [vmem:[%s7417_s0 + $0x48] sm:$0xff] }
  0x45   :  { %3802 = vmatpush1.bf16.msra.mxu0 %v3801_v49  ;;  %874 = vmatprep.mubr.f32.mxu0 %v34_v51  ;;  %v421_v49 = vld [vmem:[%s7416_s1 + $0x470] sm:$0xff]  ;;  %v424_v51 = vld [vmem:[%s7416_s1 + $0x488] sm:$0xff] }
  0x46   :  { %3804 = vmatprep.subr.bf16.mxu0 %v3803_v52  ;;  %v426_v52 = vld [vmem:[%s7416_s1 + $0x498] sm:$0xff]  ;;  %3724 = vmatprep.subr.bf16.mxu1 %v3723_v33  ;;  %v3813_v6 = vpack.c.bf16 %v421_v49, %v419_v45  ;;  %v57_v33 = vld [vmem:[%s7417_s0 + $0x110] sm:$0xff] }
  0x47   :  { %v434_v45 = vld [vmem:[%s7416_s1 + $0x4d8] sm:$0xff]  ;;  %v73_v63 = vld [vmem:[%s7417_s0 + $0x190] sm:$0xff] }
  0x48   :  { %875 = vmatmul.mubr.f32.gmra.mrb[2].mxu0 %v33_v11  ;;  %v3815_v11 = vpack.c.bf16 %v426_v52, %v424_v51  ;;  %3726 = vmatpush1.bf16.msra.mxu1 %v3725_v55  ;;  %v74_v51 = vld [vmem:[%s7417_s0 + $0x198] sm:$0xff]  ;;  %v431_v55 = vld [vmem:[%s7416_s1 + $0x4c0] sm:$0xff] }
  0x49   :  { %3806 = vmatpush1.bf16.msra.mxu0 %v3805_v12  ;;  %880 = vmatprep.mubr.f32.mxu0 %v42_v15  ;;  %v423_v12 = vld [vmem:[%s7416_s1 + $0x480] sm:$0xff]  ;;  %v425_v15 = vld [vmem:[%s7416_s1 + $0x490] sm:$0xff] }
  0x4a   :  { %3808 = vmatprep.subr.bf16.mxu0 %v3807_v16  ;;  %v428_v16 = vld [vmem:[%s7416_s1 + $0x4a8] sm:$0xff]  ;;  %3728 = vmatprep.subr.bf16.mxu1 %v3727_v56  ;;  %v3817_v34 = vpack.c.bf16 %v425_v15, %v423_v12  ;;  %v433_v56 = vld [vmem:[%s7416_s1 + $0x4d0] sm:$0xff]  ;;  %v442_v15 = vld [vmem:[%s7416_s1 + $0x518] sm:$0xff] }
  0x4b   :  { %v3819_v36 = vpack.c.bf16 %v430_v21, %v428_v16  ;;  %v440_v12 = vld [vmem:[%s7416_s1 + $0x508] sm:$0xff]  ;;  %v31_v16 = vld [vmem:[%s7417_s0 + $0x40] sm:$0xff]  ;;  %v81_v21 = vld [vmem:[%s7417_s0 + $0x1d0] sm:$0xff] }
  0x4c   :  { %881 = vmatmul.mubr.f32.gmra.mrb[4].mxu0 %v41_v40  ;;  %v429_v40 = vld [vmem:[%s7416_s1 + $0x4b0] sm:$0xff]  ;;  %3730 = vmatpush1.bf16.msra.mxu1 %v3729_v18  ;;  %v40_v18 = vld [vmem:[%s7417_s0 + $0x88] sm:$0xff] }
  0x4d   :  { %3810 = vmatpush1.bf16.msra.mxu0 %v3809_v43  ;;  %886 = vmatprep.mubr.f32.mxu0 %v50_v44  ;;  %v3733_v43 = vpack.c.bf16 %v341_v29, %v339_v28  ;;  %v432_v44 = vld [vmem:[%s7416_s1 + $0x4c8] sm:$0xff]  ;;  %v3821_v49 = vpack.c.bf16 %v429_v40, %v427_v39  ;;  %v90_v28 = vld [vmem:[%s7417_s0 + $0x218] sm:$0xff]  ;;  %v439_v29 = vld [vmem:[%s7416_s1 + $0x500] sm:$0xff] }
  0x4e   :  { %3812 = vmatprep.subr.bf16.mxu0 %v3811_v46  ;;  %3732 = vmatprep.subr.bf16.mxu1 %v3731_v22  ;;  %v65_v46 = vld [vmem:[%s7417_s0 + $0x150] sm:$0xff]  ;;  %v3823_v52 = vpack.c.bf16 %v434_v45, %v432_v44  ;;  %v443_v44 = vld [vmem:[%s7416_s1 + $0x520] sm:$0xff]  ;;  %v448_v45 = vld [vmem:[%s7416_s1 + $0x548] sm:$0xff] }
  0x4f   :  { %v89_v39 = vld [vmem:[%s7417_s0 + $0x210] sm:$0xff] }
  0x50   :  { %887 = vmatmul.mubr.f32.gmra.mrb[6].mxu0 %v49_v4  ;;  %3734 = vmatpush1.bf16.msra.mxu1 %v3733_v43  ;;  %v3825_v4 = vpack.c.bf16 %v433_v56, %v431_v55  ;;  %v98_v43 = vld [vmem:[%s7417_s0 + $0x258] sm:$0xff] }
  0x51   :  { %3814 = vmatpush1.bf16.msra.mxu0 %v3813_v6  ;;  %892 = vmatprep.mubr.f32.mxu0 %v58_v9  ;;  %v82_v6 = vld [vmem:[%s7417_s0 + $0x1d8] sm:$0xff]  ;;  %v3827_v9 = vpack.c.bf16 %v438_v59, %v436_v58  ;;  %v447_v58 = vld [vmem:[%s7416_s1 + $0x540] sm:$0xff]  ;;  %v452_v59 = vld [vmem:[%s7416_s1 + $0x568] sm:$0xff] }
  0x52   :  { %3816 = vmatprep.subr.bf16.mxu0 %v3815_v11  ;;  %3943 = vmatprep.subr.bf16.mxu1 %v4409_v3  ;;  %v435_v3 = vld [vmem:[%s7416_s1 + $0x4e0] sm:$0xff]  ;;  %v437_v11 = vld [vmem:[%s7416_s1 + $0x4f0] sm:$0xff]  ;;  %v106_v56 = vld [vmem:[%s7417_s0 + $0x298] sm:$0xff] }
  0x53   :  { %612 = vmatmul.mubr.f32.vlgmr.msra.gmra.mrb[0].mxu1 %v23_v60  ;;  %v3829_v22 = vpack.c.bf16 %v437_v11, %v435_v3  ;;  %v454_v60 = vld [vmem:[%s7416_s1 + $0x578] sm:$0xff]  ;;  %v451_v3 = vld [vmem:[%s7416_s1 + $0x560] sm:$0xff]  ;;  %v456_v11 = vld [vmem:[%s7416_s1 + $0x588] sm:$0xff] }
  0x54   :  { %893 = vmatmul.mubr.f32.gmra.mrb[8].mxu0 %v57_v33  ;;  %617 = vmatprep.mubr.f32.mxu1 %v32_v61  ;;  %v444_v33 = vld [vmem:[%s7416_s1 + $0x528] sm:$0xff]  ;;  %v55_v61 = vld [vmem:[%s7417_s0 + $0x100] sm:$0xff] }
  0x55   :  { %3818 = vmatpush1.bf16.msra.mxu0 %v3817_v34  ;;  %898 = vmatprep.mubr.f32.mxu0 %v66_v35  ;;  %v446_v34 = vld [vmem:[%s7416_s1 + $0x538] sm:$0xff]  ;;  %v39_v35 = vld [vmem:[%s7417_s0 + $0x80] sm:$0xff] }
  0x56   :  { %3820 = vmatprep.subr.bf16.mxu0 %v3819_v36  ;;  %3959 = vmatpush1.bf16.msra.mxu1 %v4420_v7  ;;  %v3831_v7 = vpack.c.bf16 %v442_v15, %v440_v12  ;;  %v48_v36 = vld [vmem:[%s7417_s0 + $0xc8] sm:$0xff]  ;;  %v458_v12 = vld [vmem:[%s7416_s1 + $0x598] sm:$0xff]  ;;  %v63_v15 = vld [vmem:[%s7417_s0 + $0x140] sm:$0xff] }
  0x57   :  { %3944 = vmatprep.subr.bf16.mxu1 %v4422_v8  ;;  %v441_v8 = vld [vmem:[%s7416_s1 + $0x510] sm:$0xff]  ;;  %618 = vmatmul.mubr.f32.gmra.mrb[2].mxu1 %v31_v16  ;;  %v72_v16 = vld [vmem:[%s7417_s0 + $0x188] sm:$0xff] }
  0x58   :  { %899 = vmatmul.mubr.f32.gmra.mrb[10].mxu0 %v65_v46  ;;  %623 = vmatprep.mubr.f32.mxu1 %v40_v18  ;;  %v3833_v40 = vpack.c.bf16 %v441_v8, %v439_v29  ;;  %v450_v46 = vld [vmem:[%s7416_s1 + $0x558] sm:$0xff]  ;;  %v113_v18 = vld [vmem:[%s7417_s0 + $0x2d0] sm:$0xff]  ;;  %v71_v8 = vld [vmem:[%s7417_s0 + $0x180] sm:$0xff] }
  0x59   :  { %3822 = vmatpush1.bf16.msra.mxu0 %v3821_v49  ;;  %904 = vmatprep.mubr.f32.mxu0 %v74_v51  ;;  %v47_v49 = vld [vmem:[%s7417_s0 + $0xc0] sm:$0xff]  ;;  %v56_v51 = vld [vmem:[%s7417_s0 + $0x108] sm:$0xff]  ;;  %v462_v29 = vld [vmem:[%s7416_s1 + $0x5b8] sm:$0xff] }
  0x5a   :  { %3824 = vmatprep.subr.bf16.mxu0 %v3823_v52  ;;  %3960 = vmatpush1.bf16.msra.mxu1 %v4438_v13  ;;  %v3835_v13 = vpack.c.bf16 %v446_v34, %v444_v33  ;;  %v97_v52 = vld [vmem:[%s7417_s0 + $0x250] sm:$0xff]  ;;  %v80_v33 = vld [vmem:[%s7417_s0 + $0x1c8] sm:$0xff] }
  0x5b   :  { %3945 = vmatprep.subr.bf16.mxu1 %v4441_v14  ;;  %v445_v14 = vld [vmem:[%s7416_s1 + $0x530] sm:$0xff]  ;;  %624 = vmatmul.mubr.f32.gmra.mrb[4].mxu1 %v39_v35 }
  0x5c   :  { %905 = vmatmul.mubr.f32.gmra.mrb[12].mxu0 %v73_v63  ;;  %629 = vmatprep.mubr.f32.mxu1 %v48_v36  ;;  %v3837_v55 = vpack.c.bf16 %v445_v14, %v443_v44  ;;  %v64_v63 = vld [vmem:[%s7417_s0 + $0x148] sm:$0xff]  ;;  %v121_v34 = vld [vmem:[%s7417_s0 + $0x310] sm:$0xff]  ;;  %v130_v36 = vld [vmem:[%s7417_s0 + $0x358] sm:$0xff] }
  0x5d   :  { %3826 = vmatpush1.bf16.msra.mxu0 %v3825_v4  ;;  %910 = vmatprep.mubr.f32.mxu0 %v82_v6  ;;  %v105_v4 = vld [vmem:[%s7417_s0 + $0x290] sm:$0xff]  ;;  %v88_v44 = vld [vmem:[%s7417_s0 + $0x208] sm:$0xff] }
  0x5e   :  { %3828 = vmatprep.subr.bf16.mxu0 %v3827_v9  ;;  %3961 = vmatpush1.bf16.msra.mxu1 %v4456_v19  ;;  %v3839_v19 = vpack.c.bf16 %v450_v46, %v448_v45  ;;  %v114_v9 = vld [vmem:[%s7417_s0 + $0x2d8] sm:$0xff]  ;;  %v129_v14 = vld [vmem:[%s7417_s0 + $0x350] sm:$0xff] }
  0x5f   :  { %3946 = vmatprep.subr.bf16.mxu1 %v4459_v20  ;;  %v449_v20 = vld [vmem:[%s7416_s1 + $0x550] sm:$0xff]  ;;  %630 = vmatmul.mubr.f32.gmra.mrb[6].mxu1 %v47_v49  ;;  %v138_v46 = vld [vmem:[%s7417_s0 + $0x398] sm:$0xff]  ;;  %v463_v49 = vld [vmem:[%s7416_s1 + $0x5c0] sm:$0xff] }
  0x60   :  { %911 = vmatmul.mubr.f32.gmra.mrb[14].mxu0 %v81_v21  ;;  %635 = vmatprep.mubr.f32.mxu1 %v56_v51  ;;  %v3841_v6 = vpack.c.bf16 %v449_v20, %v447_v58  ;;  %v468_v51 = vld [vmem:[%s7416_s1 + $0x5e8] sm:$0xff]  ;;  %v146_v20 = vld [vmem:[%s7417_s0 + $0x3d8] sm:$0xff] }
  0x61   :  { %3830 = vmatpush1.bf16.msra.mxu0 %v3829_v22  ;;  %916 = vmatprep.mubr.f32.mxu0 %v90_v28  ;;  %v122_v22 = vld [vmem:[%s7417_s0 + $0x318] sm:$0xff]  ;;  %v455_v28 = vld [vmem:[%s7416_s1 + $0x580] sm:$0xff] }
  0x62   :  { %3832 = vmatprep.subr.bf16.mxu0 %v3831_v7  ;;  %3962 = vmatpush1.bf16.msra.mxu1 %v4474_v25  ;;  %v3843_v25 = vpack.c.bf16 %v454_v60, %v452_v59  ;;  %v460_v7 = vld [vmem:[%s7416_s1 + $0x5a8] sm:$0xff]  ;;  %v467_v59 = vld [vmem:[%s7416_s1 + $0x5e0] sm:$0xff] }
  0x63   :  { %3947 = vmatprep.subr.bf16.mxu1 %v4477_v26  ;;  %v453_v26 = vld [vmem:[%s7416_s1 + $0x570] sm:$0xff]  ;;  %636 = vmatmul.mubr.f32.gmra.mrb[8].mxu1 %v55_v61  ;;  %v472_v60 = vld [vmem:[%s7416_s1 + $0x608] sm:$0xff]  ;;  %v474_v61 = vld [vmem:[%s7416_s1 + $0x618] sm:$0xff] }
  0x64   :  { %917 = vmatmul.mubr.f32.gmra.mrb[16].mxu0 %v89_v39  ;;  %641 = vmatprep.mubr.f32.mxu1 %v64_v63  ;;  %v3845_v21 = vpack.c.bf16 %v453_v26, %v451_v3  ;;  %v459_v39 = vld [vmem:[%s7416_s1 + $0x5a0] sm:$0xff]  ;;  %v476_v26 = vld [vmem:[%s7416_s1 + $0x628] sm:$0xff] }
  0x65   :  { %3834 = vmatpush1.bf16.msra.mxu0 %v3833_v40  ;;  %922 = vmatprep.mubr.f32.mxu0 %v98_v43  ;;  %v464_v40 = vld [vmem:[%s7416_s1 + $0x5c8] sm:$0xff]  ;;  %v466_v43 = vld [vmem:[%s7416_s1 + $0x5d8] sm:$0xff]  ;;  %v95_v63 = vld [vmem:[%s7417_s0 + $0x240] sm:$0xff] }
  0x66   :  { %3836 = vmatprep.subr.bf16.mxu0 %v3835_v13  ;;  %3963 = vmatpush1.bf16.msra.mxu1 %v4492_v31  ;;  %v3847_v31 = vpack.c.bf16 %v458_v12, %v456_v11  ;;  %v79_v13 = vld [vmem:[%s7417_s0 + $0x1c0] sm:$0xff]  ;;  %v478_v11 = vld [vmem:[%s7416_s1 + $0x638] sm:$0xff] }
  0x67   :  { %3948 = vmatprep.subr.bf16.mxu1 %v4495_v32  ;;  %v457_v32 = vld [vmem:[%s7416_s1 + $0x590] sm:$0xff]  ;;  %642 = vmatmul.mubr.f32.gmra.mrb[10].mxu1 %v63_v15  ;;  %v471_v3 = vld [vmem:[%s7416_s1 + $0x600] sm:$0xff]  ;;  %v112_v15 = vld [vmem:[%s7417_s0 + $0x2c8] sm:$0xff] }
  0x68   :  { %923 = vmatmul.mubr.f32.gmra.mrb[18].mxu0 %v97_v52  ;;  %647 = vmatprep.mubr.f32.mxu1 %v72_v16  ;;  %v3849_v35 = vpack.c.bf16 %v457_v32, %v455_v28  ;;  %v470_v52 = vld [vmem:[%s7416_s1 + $0x5f8] sm:$0xff]  ;;  %v103_v12 = vld [vmem:[%s7417_s0 + $0x280] sm:$0xff] }
  0x69   :  { %3838 = vmatpush1.bf16.msra.mxu0 %v3837_v55  ;;  %928 = vmatprep.mubr.f32.mxu0 %v106_v56  ;;  %v87_v55 = vld [vmem:[%s7417_s0 + $0x200] sm:$0xff]  ;;  %v96_v56 = vld [vmem:[%s7417_s0 + $0x248] sm:$0xff]  ;;  %v482_v28 = vld [vmem:[%s7416_s1 + $0x658] sm:$0xff] }
  0x6a   :  { %3840 = vmatprep.subr.bf16.mxu0 %v3839_v19  ;;  %3964 = vmatpush1.bf16.msra.mxu1 %v4510_v37  ;;  %v3851_v37 = vpack.c.bf16 %v462_v29, %v460_v7  ;;  %v137_v19 = vld [vmem:[%s7417_s0 + $0x390] sm:$0xff]  ;;  %v27_v16 = vld [vmem:[%s7417_s0 + $0x20] sm:$0xff]  ;;  %v120_v7 = vld [vmem:[%s7417_s0 + $0x308] sm:$0xff] }
  0x6b   :  { %3949 = vmatprep.subr.bf16.mxu1 %v4522_v41  ;;  %v461_v41 = vld [vmem:[%s7416_s1 + $0x5b0] sm:$0xff]  ;;  %648 = vmatmul.mubr.f32.gmra.mrb[12].mxu1 %v71_v8  ;;  %v111_v32 = vld [vmem:[%s7417_s0 + $0x2c0] sm:$0xff] }
  0x6c   :  { %929 = vmatmul.mubr.f32.gmra.mrb[20].mxu0 %v105_v4  ;;  %653 = vmatprep.mubr.f32.mxu1 %v80_v33  ;;  %v3853_v45 = vpack.c.bf16 %v461_v41, %v459_v39  ;;  %v104_v4 = vld [vmem:[%s7417_s0 + $0x288] sm:$0xff]  ;;  %v35_v29 = vld [vmem:[%s7417_s0 + $0x60] sm:$0xff] }
  0x6d   :  { %3842 = vmatpush1.bf16.msra.mxu0 %v3841_v6  ;;  %934 = vmatprep.mubr.f32.mxu0 %v114_v9  ;;  %v145_v6 = vld [vmem:[%s7417_s0 + $0x3d0] sm:$0xff]  ;;  %v44_v33 = vld [vmem:[%s7417_s0 + $0xa8] sm:$0xff]  ;;  %v43_v41 = vld [vmem:[%s7417_s0 + $0xa0] sm:$0xff] }
  0x6e   :  { %3844 = vmatprep.subr.bf16.mxu0 %v3843_v25  ;;  %3965 = vmatpush1.bf16.msra.mxu1 %v4543_v50  ;;  %v3855_v50 = vpack.c.bf16 %v466_v43, %v464_v40  ;;  %v28_v25 = vld [vmem:[%s7417_s0 + $0x28] sm:$0xff] }
  0x6f   :  { %3950 = vmatprep.subr.bf16.mxu1 %v4555_v54  ;;  %v465_v54 = vld [vmem:[%s7416_s1 + $0x5d0] sm:$0xff]  ;;  %654 = vmatmul.mubr.f32.gmra.mrb[14].mxu1 %v79_v13  ;;  %v128_v39 = vld [vmem:[%s7417_s0 + $0x348] sm:$0xff]  ;;  %v483_v13 = vld [vmem:[%s7416_s1 + $0x660] sm:$0xff] }
  0x70   :  { %935 = vmatmul.mubr.f32.gmra.mrb[22].mxu0 %v113_v18  ;;  %659 = vmatprep.mubr.f32.mxu1 %v88_v44  ;;  %v3857_v58 = vpack.c.bf16 %v465_v54, %v463_v49  ;;  %v52_v43 = vld [vmem:[%s7417_s0 + $0xe8] sm:$0xff] }
  0x71   :  { %3846 = vmatpush1.bf16.msra.mxu0 %v3845_v21  ;;  %940 = vmatprep.mubr.f32.mxu0 %v122_v22  ;;  %v36_v21 = vld [vmem:[%s7417_s0 + $0x68] sm:$0xff]  ;;  %v475_v22 = vld [vmem:[%s7416_s1 + $0x620] sm:$0xff] }
  0x72   :  { %3848 = vmatprep.subr.bf16.mxu0 %v3847_v31  ;;  %3966 = vmatpush1.bf16.msra.mxu1 %v4573_v62  ;;  %v3859_v62 = vpack.c.bf16 %v470_v52, %v468_v51  ;;  %v480_v31 = vld [vmem:[%s7416_s1 + $0x648] sm:$0xff]  ;;  %v487_v51 = vld [vmem:[%s7416_s1 + $0x680] sm:$0xff] }
  0x73   :  { %3951 = vmatprep.subr.bf16.mxu1 %v4585_v2  ;;  %v469_v2 = vld [vmem:[%s7416_s1 + $0x5f0] sm:$0xff]  ;;  %660 = vmatmul.mubr.f32.gmra.mrb[16].mxu1 %v87_v55  ;;  %v488_v44 = vld [vmem:[%s7416_s1 + $0x688] sm:$0xff]  ;;  %v494_v55 = vld [vmem:[%s7416_s1 + $0x6b8] sm:$0xff] }
  0x74   :  { %941 = vmatmul.mubr.f32.gmra.mrb[24].mxu0 %v121_v34  ;;  %665 = vmatprep.mubr.f32.mxu1 %v96_v56  ;;  %v3861_v9 = vpack.c.bf16 %v469_v2, %v467_v59  ;;  %v479_v34 = vld [vmem:[%s7416_s1 + $0x640] sm:$0xff]  ;;  %v60_v54 = vld [vmem:[%s7417_s0 + $0x128] sm:$0xff] }
  0x75   :  { %3850 = vmatpush1.bf16.msra.mxu0 %v3849_v35  ;;  %946 = vmatprep.mubr.f32.mxu0 %v130_v36  ;;  %v484_v35 = vld [vmem:[%s7416_s1 + $0x668] sm:$0xff]  ;;  %v486_v36 = vld [vmem:[%s7416_s1 + $0x678] sm:$0xff]  ;;  %v135_v56 = vld [vmem:[%s7417_s0 + $0x380] sm:$0xff] }
  0x76   :  { %3852 = vmatprep.subr.bf16.mxu0 %v3851_v37  ;;  %3967 = vmatpush1.bf16.msra.mxu1 %v4609_v17  ;;  %v3863_v17 = vpack.c.bf16 %v474_v61, %v472_v60  ;;  %v119_v37 = vld [vmem:[%s7417_s0 + $0x300] sm:$0xff]  ;;  %v492_v52 = vld [vmem:[%s7416_s1 + $0x6a8] sm:$0xff]  ;;  %v498_v60 = vld [vmem:[%s7416_s1 + $0x6d8] sm:$0xff] }
  0x77   :  { %3952 = vmatprep.subr.bf16.mxu1 %v4618_v23  ;;  %v473_v23 = vld [vmem:[%s7416_s1 + $0x610] sm:$0xff]  ;;  %666 = vmatmul.mubr.f32.gmra.mrb[18].mxu1 %v95_v63  ;;  %v491_v59 = vld [vmem:[%s7416_s1 + $0x6a0] sm:$0xff]  ;;  %v496_v2 = vld [vmem:[%s7416_s1 + $0x6c8] sm:$0xff] }
  0x78   :  { %947 = vmatmul.mubr.f32.gmra.mrb[26].mxu0 %v129_v14  ;;  %671 = vmatprep.mubr.f32.mxu1 %v104_v4  ;;  %v3865_v18 = vpack.c.bf16 %v473_v23, %v471_v3  ;;  %v490_v14 = vld [vmem:[%s7416_s1 + $0x698] sm:$0xff]  ;;  %v143_v61 = vld [vmem:[%s7417_s0 + $0x3c0] sm:$0xff]  ;;  %v152_v63 = vld [vmem:[%s7417_s0 + $0x408] sm:$0xff] }
  0x79   :  { %3854 = vmatpush1.bf16.msra.mxu0 %v3853_v45  ;;  %952 = vmatprep.mubr.f32.mxu0 %v138_v46  ;;  %v127_v45 = vld [vmem:[%s7417_s0 + $0x340] sm:$0xff]  ;;  %v136_v46 = vld [vmem:[%s7417_s0 + $0x388] sm:$0xff]  ;;  %v502_v3 = vld [vmem:[%s7416_s1 + $0x6f8] sm:$0xff] }
  0x7a   :  { %3856 = vmatprep.subr.bf16.mxu0 %v3855_v50  ;;  %3968 = vmatpush1.bf16.msra.mxu1 %v4645_v38  ;;  %v3867_v38 = vpack.c.bf16 %v478_v11, %v476_v26  ;;  %v51_v50 = vld [vmem:[%s7417_s0 + $0xe0] sm:$0xff]  ;;  %v160_v26 = vld [vmem:[%s7417_s0 + $0x448] sm:$0xff] }
  0x7b   :  { %3953 = vmatprep.subr.bf16.mxu1 %v4651_v42  ;;  %v477_v42 = vld [vmem:[%s7416_s1 + $0x630] sm:$0xff]  ;;  %672 = vmatmul.mubr.f32.gmra.mrb[20].mxu1 %v103_v12  ;;  %v67_v4 = vld [vmem:[%s7417_s0 + $0x160] sm:$0xff] }
  0x7c   :  { %953 = vmatmul.mubr.f32.gmra.mrb[28].mxu0 %v137_v19  ;;  %677 = vmatprep.mubr.f32.mxu1 %v112_v15  ;;  %v3869_v8 = vpack.c.bf16 %v477_v42, %v475_v22  ;;  %v144_v19 = vld [vmem:[%s7417_s0 + $0x3c8] sm:$0xff]  ;;  %v151_v23 = vld [vmem:[%s7417_s0 + $0x400] sm:$0xff] }
  0x7d   :  { %3858 = vmatpush1.bf16.msra.mxu0 %v3857_v58  ;;  %958 = vmatprep.mubr.f32.mxu0 %v146_v20  ;;  %v59_v58 = vld [vmem:[%s7417_s0 + $0x120] sm:$0xff]  ;;  %v84_v15 = vld [vmem:[%s7417_s0 + $0x1e8] sm:$0xff] }
  0x7e   :  { %3860 = vmatprep.subr.bf16.mxu0 %v3859_v62  ;;  %3969 = vmatpush1.bf16.msra.mxu1 %v4675_v53  ;;  %v3871_v53 = vpack.c.bf16 %v482_v28, %v480_v31  ;;  %v68_v62 = vld [vmem:[%s7417_s0 + $0x168] sm:$0xff]  ;;  %v75_v11 = vld [vmem:[%s7417_s0 + $0x1a0] sm:$0xff] }
  0x7f   :  { %3954 = vmatprep.subr.bf16.mxu1 %v4684_v57  ;;  %v481_v57 = vld [vmem:[%s7416_s1 + $0x650] sm:$0xff]  ;;  %678 = vmatmul.mubr.f32.gmra.mrb[22].mxu1 %v111_v32  ;;  %v159_v22 = vld [vmem:[%s7417_s0 + $0x440] sm:$0xff]  ;;  %v168_v42 = vld [vmem:[%s7417_s0 + $0x488] sm:$0xff] }
  0x80   :  { %959 = vmatmul.mubr.f32.gmra.mrb[30].mxu0 %v145_v6  ;;  %683 = vmatprep.mubr.f32.mxu1 %v120_v7  ;;  %v3873_v40 = vpack.c.bf16 %v481_v57, %v479_v34  ;;  %v83_v31 = vld [vmem:[%s7417_s0 + $0x1e0] sm:$0xff]  ;;  %v92_v32 = vld [vmem:[%s7417_s0 + $0x228] sm:$0xff]  ;;  %v510_v34 = vld [vmem:[%s7416_s1 + $0x738] sm:$0xff] }
  0x81   :  { %3862 = vmatpush1.bf16.msra.mxu0 %v3861_v9  ;;  %1125 = vmatprep.mubr.f32.mxu0 %v28_v25  ;;  %v76_v9 = vld [vmem:[%s7417_s0 + $0x1a8] sm:$0xff]  ;;  %v495_v25 = vld [vmem:[%s7416_s1 + $0x6c0] sm:$0xff] }
  0x82   :  { %3864 = vmatprep.subr.bf16.mxu0 %v3863_v17  ;;  %3970 = vmatpush1.bf16.msra.mxu1 %v4705_v5  ;;  %v3875_v5 = vpack.c.bf16 %v486_v36, %v484_v35  ;;  %v500_v17 = vld [vmem:[%s7416_s1 + $0x6e8] sm:$0xff]  ;;  %v91_v35 = vld [vmem:[%s7417_s0 + $0x220] sm:$0xff] }
  0x83   :  { %3955 = vmatprep.subr.bf16.mxu1 %v4714_v10  ;;  %v485_v10 = vld [vmem:[%s7416_s1 + $0x670] sm:$0xff]  ;;  %684 = vmatmul.mubr.f32.gmra.mrb[24].mxu1 %v119_v37  ;;  %v176_v57 = vld [vmem:[%s7417_s0 + $0x4c8] sm:$0xff] }
  0x84   :  { %1126 = vmatmul.mubr.f32.vlgmr.msra.gmra.mrb[0].mxu0 %v27_v16  ;;  %689 = vmatprep.mubr.f32.mxu1 %v128_v39  ;;  %v3877_v49 = vpack.c.bf16 %v485_v10, %v483_v13  ;;  %v3891_v16 = vpack.c.bf16 %v502_v3, %v500_v17  ;;  %v100_v37 = vld [vmem:[%s7417_s0 + $0x268] sm:$0xff]  ;;  %v514_v13 = vld [vmem:[%s7416_s1 + $0x758] sm:$0xff]  ;;  %v123_v17 = vld [vmem:[%s7417_s0 + $0x320] sm:$0xff] }
  0x85   :  { %3866 = vmatpush1.bf16.msra.mxu0 %v3865_v18  ;;  %1131 = vmatprep.mubr.f32.mxu0 %v36_v21  ;;  %v501_v18 = vld [vmem:[%s7416_s1 + $0x6f0] sm:$0xff]  ;;  %v504_v21 = vld [vmem:[%s7416_s1 + $0x708] sm:$0xff] }
  0x86   :  { %3868 = vmatprep.subr.bf16.mxu0 %v3867_v38  ;;  %3971 = vmatpush1.bf16.msra.mxu1 %v4735_v27  ;;  %v3879_v27 = vpack.c.bf16 %v490_v14, %v488_v44  ;;  %v506_v38 = vld [vmem:[%s7416_s1 + $0x718] sm:$0xff]  ;;  %v184_v10 = vld [vmem:[%s7417_s0 + $0x508] sm:$0xff]  ;;  %v99_v44 = vld [vmem:[%s7417_s0 + $0x260] sm:$0xff] }
  0x87   :  { %3956 = vmatprep.subr.bf16.mxu1 %v4744_v30  ;;  %v489_v30 = vld [vmem:[%s7416_s1 + $0x690] sm:$0xff]  ;;  %690 = vmatmul.mubr.f32.gmra.mrb[26].mxu1 %v127_v45  ;;  %v3895_v7 = vpack.c.bf16 %v506_v38, %v504_v21  ;;  %v108_v45 = vld [vmem:[%s7417_s0 + $0x2a8] sm:$0xff]  ;;  %v131_v21 = vld [vmem:[%s7417_s0 + $0x360] sm:$0xff] }
  0x88   :  { %1132 = vmatmul.mubr.f32.gmra.mrb[2].mxu0 %v35_v29  ;;  %695 = vmatprep.mubr.f32.mxu1 %v136_v46  ;;  %v3881_v20 = vpack.c.bf16 %v489_v30, %v487_v51  ;;  %v503_v29 = vld [vmem:[%s7416_s1 + $0x700] sm:$0xff]  ;;  %v518_v51 = vld [vmem:[%s7416_s1 + $0x778] sm:$0xff]  ;;  %v192_v30 = vld [vmem:[%s7417_s0 + $0x548] sm:$0xff] }
  0x89   :  { %1137 = vmatprep.mubr.f32.mxu0 %v44_v33  ;;  %3870 = vmatpush1.bf16.msra.mxu0 %v3869_v8  ;;  %v505_v8 = vld [vmem:[%s7416_s1 + $0x710] sm:$0xff]  ;;  %v167_v33 = vld [vmem:[%s7417_s0 + $0x480] sm:$0xff] }
  0x8a   :  { %3872 = vmatprep.subr.bf16.mxu0 %v3871_v53  ;;  %3972 = vmatpush1.bf16.msra.mxu1 %v4771_v47  ;;  %v3883_v47 = vpack.c.bf16 %v494_v55, %v492_v52  ;;  %v508_v53 = vld [vmem:[%s7416_s1 + $0x728] sm:$0xff]  ;;  %v3897_v36 = vpack.c.bf16 %v505_v8, %v503_v29  ;;  %v107_v52 = vld [vmem:[%s7417_s0 + $0x2a0] sm:$0xff]  ;;  %v534_v29 = vld [vmem:[%s7416_s1 + $0x7f8] sm:$0xff] }
  0x8b   :  { %3957 = vmatprep.subr.bf16.mxu1 %v4774_v48  ;;  %v493_v48 = vld [vmem:[%s7416_s1 + $0x6b0] sm:$0xff]  ;;  %696 = vmatmul.mubr.f32.gmra.mrb[28].mxu1 %v135_v56  ;;  %v3899_v39 = vpack.c.bf16 %v510_v34, %v508_v53  ;;  %v116_v56 = vld [vmem:[%s7417_s0 + $0x2e8] sm:$0xff] }
  0x8c   :  { %1138 = vmatmul.mubr.f32.gmra.mrb[4].mxu0 %v43_v41  ;;  %701 = vmatprep.mubr.f32.mxu1 %v144_v19  ;;  %v3885_v6 = vpack.c.bf16 %v493_v48, %v491_v59  ;;  %v507_v41 = vld [vmem:[%s7416_s1 + $0x720] sm:$0xff]  ;;  %v522_v59 = vld [vmem:[%s7416_s1 + $0x798] sm:$0xff]  ;;  %v200_v48 = vld [vmem:[%s7417_s0 + $0x588] sm:$0xff] }
  0x8d   :  { %1143 = vmatprep.mubr.f32.mxu0 %v52_v43  ;;  %3874 = vmatpush1.bf16.msra.mxu0 %v3873_v40  ;;  %v509_v40 = vld [vmem:[%s7416_s1 + $0x730] sm:$0xff]  ;;  %v175_v43 = vld [vmem:[%s7417_s0 + $0x4c0] sm:$0xff]  ;;  %v224_v8 = vld [vmem:[%s7417_s0 + $0x648] sm:$0xff] }
  0x8e   :  { %3876 = vmatprep.subr.bf16.mxu0 %v3875_v5  ;;  %3973 = vmatpush1.bf16.msra.mxu1 %v4801_v0  ;;  %v3887_v0 = vpack.c.bf16 %v498_v60, %v496_v2  ;;  %v512_v5 = vld [vmem:[%s7416_s1 + $0x748] sm:$0xff]  ;;  %v3901_v14 = vpack.c.bf16 %v509_v40, %v507_v41  ;;  %v115_v2 = vld [vmem:[%s7417_s0 + $0x2e0] sm:$0xff] }
  0x8f   :  { %3958 = vmatprep.subr.bf16.mxu1 %v4804_v1  ;;  %v497_v1 = vld [vmem:[%s7416_s1 + $0x6d0] sm:$0xff]  ;;  %702 = vmatmul.mubr.f32.gmra.mrb[30].mxu1 %v143_v61  ;;  %v3903_v46 = vpack.c.bf16 %v514_v13, %v512_v5  ;;  %v124_v61 = vld [vmem:[%s7417_s0 + $0x328] sm:$0xff]  ;;  %v147_v41 = vld [vmem:[%s7417_s0 + $0x3e0] sm:$0xff] }
  0x90   :  { %1144 = vmatmul.mubr.f32.gmra.mrb[6].mxu0 %v51_v50  ;;  %707 = vmatprep.mubr.f32.mxu1 %v152_v63  ;;  %v3889_v12 = vpack.c.bf16 %v497_v1, %v495_v25  ;;  %v511_v50 = vld [vmem:[%s7416_s1 + $0x740] sm:$0xff]  ;;  %v526_v25 = vld [vmem:[%s7416_s1 + $0x7b8] sm:$0xff]  ;;  %v208_v1 = vld [vmem:[%s7417_s0 + $0x5c8] sm:$0xff] }
  0x91   :  { %1149 = vmatprep.mubr.f32.mxu0 %v60_v54  ;;  %3878 = vmatpush1.bf16.msra.mxu0 %v3877_v49  ;;  %v513_v49 = vld [vmem:[%s7416_s1 + $0x750] sm:$0xff]  ;;  %v183_v54 = vld [vmem:[%s7417_s0 + $0x500] sm:$0xff]  ;;  %v148_v34 = vld [vmem:[%s7417_s0 + $0x3e8] sm:$0xff] }
  0x92   :  { %3880 = vmatprep.subr.bf16.mxu0 %v3879_v27  ;;  %3974 = vmatpush1.bf16.msra.mxu1 %v4831_v24  ;;  %v499_v24 = vld [vmem:[%s7416_s1 + $0x6e0] sm:$0xff]  ;;  %v516_v27 = vld [vmem:[%s7416_s1 + $0x768] sm:$0xff]  ;;  %v3905_v55 = vpack.c.bf16 %v513_v49, %v511_v50 }
  0x93   :  { %708 = vmatmul.mubr.f32.gmra.mrb[32].mxu1 %v151_v23  ;;  %v3893_v28 = vpack.c.bf16 %v501_v18, %v499_v24  ;;  %v3907_v19 = vpack.c.bf16 %v518_v51, %v516_v27  ;;  %v132_v23 = vld [vmem:[%s7417_s0 + $0x368] sm:$0xff]  ;;  %v530_v24 = vld [vmem:[%s7416_s1 + $0x7d8] sm:$0xff]  ;;  %v231_v5 = vld [vmem:[%s7417_s0 + $0x680] sm:$0xff] }
  0x94   :  { %1150 = vmatmul.mubr.f32.gmra.mrb[8].mxu0 %v59_v58  ;;  %713 = vmatprep.mubr.f32.mxu1 %v160_v26  ;;  %v515_v58 = vld [vmem:[%s7416_s1 + $0x760] sm:$0xff]  ;;  %v216_v18 = vld [vmem:[%s7417_s0 + $0x608] sm:$0xff] }
  0x95   :  { %1155 = vmatprep.mubr.f32.mxu0 %v68_v62  ;;  %3882 = vmatpush1.bf16.msra.mxu0 %v3881_v20  ;;  %v517_v20 = vld [vmem:[%s7416_s1 + $0x770] sm:$0xff]  ;;  %v191_v62 = vld [vmem:[%s7417_s0 + $0x540] sm:$0xff]  ;;  %v240_v13 = vld [vmem:[%s7417_s0 + $0x6c8] sm:$0xff] }
  0x96   :  { %3884 = vmatprep.subr.bf16.mxu0 %v3883_v47  ;;  %v520_v47 = vld [vmem:[%s7416_s1 + $0x788] sm:$0xff]  ;;  %v3909_v60 = vpack.c.bf16 %v517_v20, %v515_v58  ;;  %v247_v49 = vld [vmem:[%s7417_s0 + $0x700] sm:$0xff] }
  0x97   :  { %714 = vmatmul.mubr.f32.gmra.mrb[34].mxu1 %v159_v22  ;;  %v3911_v63 = vpack.c.bf16 %v522_v59, %v520_v47  ;;  %v140_v22 = vld [vmem:[%s7417_s0 + $0x3a8] sm:$0xff]  ;;  %v171_v27 = vld [vmem:[%s7417_s0 + $0x4a0] sm:$0xff]  ;;  %v154_v59 = vld [vmem:[%s7417_s0 + $0x418] sm:$0xff] }
  0x98   :  { %1156 = vmatmul.mubr.f32.gmra.mrb[10].mxu0 %v67_v4  ;;  %719 = vmatprep.mubr.f32.mxu1 %v168_v42  ;;  %v519_v4 = vld [vmem:[%s7416_s1 + $0x780] sm:$0xff]  ;;  %v172_v50 = vld [vmem:[%s7417_s0 + $0x4a8] sm:$0xff] }
  0x99   :  { %1161 = vmatprep.mubr.f32.mxu0 %v76_v9  ;;  %3886 = vmatpush1.bf16.msra.mxu0 %v3885_v6  ;;  %v521_v6 = vld [vmem:[%s7416_s1 + $0x790] sm:$0xff]  ;;  %v199_v9 = vld [vmem:[%s7417_s0 + $0x580] sm:$0xff]  ;;  %v180_v51 = vld [vmem:[%s7417_s0 + $0x4e8] sm:$0xff] }
  0x9a   :  { %3888 = vmatprep.subr.bf16.mxu0 %v3887_v0  ;;  %v524_v0 = vld [vmem:[%s7416_s1 + $0x7a8] sm:$0xff]  ;;  %v3913_v3 = vpack.c.bf16 %v521_v6, %v519_v4  ;;  %v187_v20 = vld [vmem:[%s7417_s0 + $0x520] sm:$0xff]  ;;  %v161_v6 = vld [vmem:[%s7417_s0 + $0x450] sm:$0xff] }
  0x9b   :  { %720 = vmatmul.mubr.f32.gmra.mrb[36].mxu1 %v167_v33  ;;  %v3915_v26 = vpack.c.bf16 %v526_v25, %v524_v0  ;;  %v139_v33 = vld [vmem:[%s7417_s0 + $0x3a0] sm:$0xff]  ;;  %v272_v58 = vld [vmem:[%s7417_s0 + $0x7c8] sm:$0xff] }
  0x9c   :  { %1162 = vmatmul.mubr.f32.gmra.mrb[12].mxu0 %v75_v11  ;;  %725 = vmatprep.mubr.f32.mxu1 %v176_v57  ;;  %v523_v11 = vld [vmem:[%s7416_s1 + $0x7a0] sm:$0xff]  ;;  %v212_v4 = vld [vmem:[%s7417_s0 + $0x5e8] sm:$0xff] }
  0x9d   :  { %1167 = vmatprep.mubr.f32.mxu0 %v84_v15  ;;  %3890 = vmatpush1.bf16.msra.mxu0 %v3889_v12  ;;  %v525_v12 = vld [vmem:[%s7416_s1 + $0x7b0] sm:$0xff]  ;;  %v207_v15 = vld [vmem:[%s7417_s0 + $0x5c0] sm:$0xff]  ;;  %v220_v25 = vld [vmem:[%s7417_s0 + $0x628] sm:$0xff] }
  0x9e   :  { %3892 = vmatprep.subr.bf16.mxu0 %v3891_v16  ;;  %v528_v16 = vld [vmem:[%s7416_s1 + $0x7c8] sm:$0xff]  ;;  %v3917_v38 = vpack.c.bf16 %v525_v12, %v523_v11  ;;  %v271_v47 = vld [vmem:[%s7417_s0 + $0x7c0] sm:$0xff]  ;;  %v186_v11 = vld [vmem:[%s7417_s0 + $0x518] sm:$0xff] }
  0x9f   :  { %726 = vmatmul.mubr.f32.gmra.mrb[38].mxu1 %v175_v43  ;;  %v3919_v42 = vpack.c.bf16 %v530_v24, %v528_v16  ;;  %v156_v43 = vld [vmem:[%s7417_s0 + $0x428] sm:$0xff]  ;;  %v211_v0 = vld [vmem:[%s7417_s0 + $0x5e0] sm:$0xff]  ;;  %v185_v16 = vld [vmem:[%s7417_s0 + $0x510] sm:$0xff] }
  0xa0   :  { %1168 = vmatmul.mubr.f32.gmra.mrb[14].mxu0 %v83_v31  ;;  %731 = vmatprep.mubr.f32.mxu1 %v184_v10  ;;  %v527_v31 = vld [vmem:[%s7416_s1 + $0x7c0] sm:$0xff]  ;;  %v194_v24 = vld [vmem:[%s7417_s0 + $0x558] sm:$0xff] }
  0xa1   :  { %1173 = vmatprep.mubr.f32.mxu0 %v92_v32  ;;  %3894 = vmatpush1.bf16.msra.mxu0 %v3893_v28  ;;  %v529_v28 = vld [vmem:[%s7416_s1 + $0x7d0] sm:$0xff]  ;;  %v215_v32 = vld [vmem:[%s7417_s0 + $0x600] sm:$0xff] }
  0xa2   :  { %3896 = vmatprep.subr.bf16.mxu0 %v3895_v7  ;;  %v532_v7 = vld [vmem:[%s7416_s1 + $0x7e8] sm:$0xff]  ;;  %v3921_v53 = vpack.c.bf16 %v529_v28, %v527_v31  ;;  %v155_v10 = vld [vmem:[%s7417_s0 + $0x420] sm:$0xff]  ;;  %v201_v28 = vld [vmem:[%s7417_s0 + $0x590] sm:$0xff] }
  0xa3   :  { %732 = vmatmul.mubr.f32.gmra.mrb[40].mxu1 %v183_v54  ;;  %v3923_v57 = vpack.c.bf16 %v534_v29, %v532_v7  ;;  %v256_v54 = vld [vmem:[%s7417_s0 + $0x748] sm:$0xff]  ;;  %v227_v12 = vld [vmem:[%s7417_s0 + $0x660] sm:$0xff] }
  0xa4   :  { %1174 = vmatmul.mubr.f32.gmra.mrb[16].mxu0 %v91_v35  ;;  %737 = vmatprep.mubr.f32.mxu1 %v192_v30  ;;  %v531_v35 = vld [vmem:[%s7416_s1 + $0x7e0] sm:$0xff]  ;;  %v252_v31 = vld [vmem:[%s7417_s0 + $0x728] sm:$0xff] }
  0xa5   :  { %1179 = vmatprep.mubr.f32.mxu0 %v100_v37  ;;  %3898 = vmatpush1.bf16.msra.mxu0 %v3897_v36  ;;  %v533_v36 = vld [vmem:[%s7416_s1 + $0x7f0] sm:$0xff]  ;;  %v223_v37 = vld [vmem:[%s7417_s0 + $0x640] sm:$0xff]  ;;  %v260_v29 = vld [vmem:[%s7417_s0 + $0x768] sm:$0xff] }
  0xa6   :  { %3900 = vmatprep.subr.bf16.mxu0 %v3899_v39  ;;  %v232_v39 = vld [vmem:[%s7417_s0 + $0x688] sm:$0xff]  ;;  %v3925_v40 = vpack.c.bf16 %v533_v36, %v531_v35  ;;  %v255_v30 = vld [vmem:[%s7417_s0 + $0x740] sm:$0xff]  ;;  %v226_v35 = vld [vmem:[%s7417_s0 + $0x658] sm:$0xff] }
  0xa7   :  { %738 = vmatmul.mubr.f32.gmra.mrb[42].mxu1 %v191_v62  ;;  %v196_v62 = vld [vmem:[%s7417_s0 + $0x568] sm:$0xff]  ;;  %v251_v7 = vld [vmem:[%s7417_s0 + $0x720] sm:$0xff] }
  0xa8   :  { %1180 = vmatmul.mubr.f32.gmra.mrb[18].mxu0 %v99_v44  ;;  %743 = vmatprep.mubr.f32.mxu1 %v200_v48  ;;  %v164_v44 = vld [vmem:[%s7417_s0 + $0x468] sm:$0xff]  ;;  %v195_v48 = vld [vmem:[%s7417_s0 + $0x560] sm:$0xff] }
  0xa9   :  { %1185 = vmatprep.mubr.f32.mxu0 %v108_v45  ;;  %3902 = vmatpush1.bf16.msra.mxu0 %v3901_v14  ;;  %v239_v14 = vld [vmem:[%s7417_s0 + $0x6c0] sm:$0xff]  ;;  %v248_v45 = vld [vmem:[%s7417_s0 + $0x708] sm:$0xff] }
  0xaa   :  { %3904 = vmatprep.subr.bf16.mxu0 %v3903_v46  ;;  %v163_v46 = vld [vmem:[%s7417_s0 + $0x460] sm:$0xff] }
  0xab   :  { %744 = vmatmul.mubr.f32.gmra.mrb[44].mxu1 %v199_v9  ;;  %v170_v9 = vld [vmem:[%s7417_s0 + $0x498] sm:$0xff]  ;;  %v267_v36 = vld [vmem:[%s7417_s0 + $0x7a0] sm:$0xff] }
  0xac   :  { %1186 = vmatmul.mubr.f32.gmra.mrb[20].mxu0 %v107_v52  ;;  %749 = vmatprep.mubr.f32.mxu1 %v208_v1  ;;  %v264_v52 = vld [vmem:[%s7417_s0 + $0x788] sm:$0xff]  ;;  %v169_v1 = vld [vmem:[%s7417_s0 + $0x490] sm:$0xff] }
  0xad   :  { %1191 = vmatprep.mubr.f32.mxu0 %v116_v56  ;;  %3906 = vmatpush1.bf16.msra.mxu0 %v3905_v55  ;;  %v179_v55 = vld [vmem:[%s7417_s0 + $0x4e0] sm:$0xff]  ;;  %v188_v56 = vld [vmem:[%s7417_s0 + $0x528] sm:$0xff] }
  0xae   :  { %3908 = vmatprep.subr.bf16.mxu0 %v3907_v19  ;;  %v263_v19 = vld [vmem:[%s7417_s0 + $0x780] sm:$0xff] }
  0xaf   :  { %750 = vmatmul.mubr.f32.gmra.mrb[46].mxu1 %v207_v15  ;;  %v236_v15 = vld [vmem:[%s7417_s0 + $0x6a8] sm:$0xff] }
  0xb0   :  { %1192 = vmatmul.mubr.f32.gmra.mrb[22].mxu0 %v115_v2  ;;  %755 = vmatprep.mubr.f32.mxu1 %v216_v18  ;;  %v204_v2 = vld [vmem:[%s7417_s0 + $0x5a8] sm:$0xff]  ;;  %v235_v18 = vld [vmem:[%s7417_s0 + $0x6a0] sm:$0xff] }
  0xb1   :  { %1197 = vmatprep.mubr.f32.mxu0 %v124_v61  ;;  %3910 = vmatpush1.bf16.msra.mxu0 %v3909_v60  ;;  %v153_v60 = vld [vmem:[%s7417_s0 + $0x410] sm:$0xff]  ;;  %v162_v61 = vld [vmem:[%s7417_s0 + $0x458] sm:$0xff] }
  0xb2   :  { %3912 = vmatprep.subr.bf16.mxu0 %v3911_v63  ;;  %v203_v63 = vld [vmem:[%s7417_s0 + $0x5a0] sm:$0xff] }
  0xb3   :  { %756 = vmatmul.mubr.f32.gmra.mrb[48].mxu1 %v215_v32  ;;  %v210_v32 = vld [vmem:[%s7417_s0 + $0x5d8] sm:$0xff] }
  0xb4   :  { %1198 = vmatmul.mubr.f32.gmra.mrb[24].mxu0 %v123_v17  ;;  %761 = vmatprep.mubr.f32.mxu1 %v224_v8  ;;  %v178_v17 = vld [vmem:[%s7417_s0 + $0x4d8] sm:$0xff]  ;;  %v209_v8 = vld [vmem:[%s7417_s0 + $0x5d0] sm:$0xff] }
  0xb5   :  { %1203 = vmatprep.mubr.f32.mxu0 %v132_v23  ;;  %3914 = vmatpush1.bf16.msra.mxu0 %v3913_v3  ;;  %v219_v3 = vld [vmem:[%s7417_s0 + $0x620] sm:$0xff]  ;;  %v228_v23 = vld [vmem:[%s7417_s0 + $0x668] sm:$0xff] }
  0xb6   :  { %3916 = vmatprep.subr.bf16.mxu0 %v3915_v26  ;;  %v177_v26 = vld [vmem:[%s7417_s0 + $0x4d0] sm:$0xff] }
  0xb7   :  { %762 = vmatmul.mubr.f32.gmra.mrb[50].mxu1 %v223_v37  ;;  %v276_v37 = vld [vmem:[%s7417_s0 + $0x7e8] sm:$0xff] }
  0xb8   :  { %1204 = vmatmul.mubr.f32.gmra.mrb[26].mxu0 %v131_v21  ;;  %767 = vmatprep.mubr.f32.mxu1 %v232_v39  ;;  %v244_v21 = vld [vmem:[%s7417_s0 + $0x6e8] sm:$0xff]  ;;  %v225_v39 = vld [vmem:[%s7417_s0 + $0x650] sm:$0xff] }
  0xb9   :  { %1209 = vmatprep.mubr.f32.mxu0 %v140_v22  ;;  %3918 = vmatpush1.bf16.msra.mxu0 %v3917_v38  ;;  %v193_v38 = vld [vmem:[%s7417_s0 + $0x550] sm:$0xff]  ;;  %v202_v22 = vld [vmem:[%s7417_s0 + $0x598] sm:$0xff] }
  0xba   :  { %3920 = vmatprep.subr.bf16.mxu0 %v3919_v42  ;;  %v243_v42 = vld [vmem:[%s7417_s0 + $0x6e0] sm:$0xff] }
  0xbb   :  { %768 = vmatmul.mubr.f32.gmra.mrb[52].mxu1 %v231_v5  ;;  %v233_v5 = vld [vmem:[%s7417_s0 + $0x690] sm:$0xff] }
  0xbc   :  { %1210 = vmatmul.mubr.f32.gmra.mrb[28].mxu0 %v139_v33  ;;  %773 = vmatprep.mubr.f32.mxu1 %v240_v13  ;;  %v218_v33 = vld [vmem:[%s7417_s0 + $0x618] sm:$0xff] }
  0xbd   :  { %1215 = vmatprep.mubr.f32.mxu0 %v148_v34  ;;  %3922 = vmatpush1.bf16.msra.mxu0 %v3921_v53  ;;  %v259_v53 = vld [vmem:[%s7417_s0 + $0x760] sm:$0xff]  ;;  %v268_v34 = vld [vmem:[%s7417_s0 + $0x7a8] sm:$0xff]  ;;  %v242_v13 = vld [vmem:[%s7417_s0 + $0x6d8] sm:$0xff] }
  0xbe   :  { %3924 = vmatprep.subr.bf16.mxu0 %v3923_v57  ;;  %v217_v57 = vld [vmem:[%s7417_s0 + $0x610] sm:$0xff] }
  0xbf   :  { %774 = vmatmul.mubr.f32.gmra.mrb[54].mxu1 %v239_v14  ;;  %v38_v14 = vld [vmem:[%s7417_s0 + $0x78] sm:$0xff] }
  0xc0   :  { %1216 = vmatmul.mubr.f32.gmra.mrb[30].mxu0 %v147_v41  ;;  %779 = vmatprep.mubr.f32.mxu1 %v248_v45  ;;  %v234_v41 = vld [vmem:[%s7417_s0 + $0x698] sm:$0xff] }
  0xc1   :  { %1221 = vmatprep.mubr.f32.mxu0 %v156_v43  ;;  %3926 = vmatpush1.bf16.msra.mxu0 %v3925_v40  ;;  %v275_v40 = vld [vmem:[%s7417_s0 + $0x7e0] sm:$0xff]  ;;  %v30_v43 = vld [vmem:[%s7417_s0 + $0x38] sm:$0xff] }
  0xc3   :  { %780 = vmatmul.mubr.f32.gmra.mrb[56].mxu1 %v247_v49  ;;  %v250_v49 = vld [vmem:[%s7417_s0 + $0x718] sm:$0xff] }
  0xc4   :  { %1222 = vmatmul.mubr.f32.gmra.mrb[32].mxu0 %v155_v10  ;;  %785 = vmatprep.mubr.f32.mxu1 %v256_v54  ;;  %v537_v10 = vlaneseq }
  0xc5   :  { %1227 = vmatprep.mubr.f32.mxu0 %v164_v44  ;;  %v29_v44 = vld [vmem:[%s7417_s0 + $0x30] sm:$0xff] }
  0xc6   :  { %v5854_v45 = vshrl.u32 %v537_v10, 7 }
  0xc7   :  { %786 = vmatmul.mubr.f32.gmra.mrb[58].mxu1 %v255_v30 }
  0xc8   :  { %1228 = vmatmul.mubr.f32.gmra.mrb[34].mxu0 %v163_v46  ;;  %791 = vmatprep.mubr.f32.mxu1 %v264_v52  ;;  %v241_v46 = vld [vmem:[%s7417_s0 + $0x6d0] sm:$0xff]  ;;  %v543_v54 = vsub.s32 1, %v5854_v45 }
  0xc9   :  { %1233 = vmatprep.mubr.f32.mxu0 %v172_v50  ;;  %v5862_v50 = vld [vmem:[%s7418_s2] sm:$0x3]  ;;  %v249_v52 = vld [vmem:[%s7417_s0 + $0x710] sm:$0xff] }
  0xca   :  { %v5875_v30 = vrot.slane %v5862_v50, %v543_v54 }
  0xcb   :  { %792 = vmatmul.mubr.f32.gmra.mrb[60].mxu1 %v263_v19  ;;  %v54_v19 = vld [vmem:[%s7417_s0 + $0xf8] sm:$0xff] }
  0xcc   :  { %1234 = vmatmul.mubr.f32.gmra.mrb[36].mxu0 %v171_v27  ;;  %797 = vmatprep.mubr.f32.mxu1 %v272_v58  ;;  %v37_v27 = vld [vmem:[%s7417_s0 + $0x70] sm:$0xff] }
  0xcd   :  { %1239 = vmatprep.mubr.f32.mxu0 %v180_v51  ;;  %v46_v51 = vld [vmem:[%s7417_s0 + $0xb8] sm:$0xff]  ;;  %v257_v58 = vld [vmem:[%s7417_s0 + $0x750] sm:$0xff] }
  0xcf   :  { %798 = vmatmul.mubr.f32.gmra.mrb[62].mxu1 %v271_v47  ;;  %v62_v47 = vld [vmem:[%s7417_s0 + $0x138] sm:$0xff] }
  0xd0   :  { %1240 = vmatmul.mubr.f32.gmra.mrb[38].mxu0 %v179_v55  ;;  %964 = vmatprep.mubr.f32.mxu1 %v154_v59  ;;  %v258_v55 = vld [vmem:[%s7417_s0 + $0x758] sm:$0xff]  ;;  %v265_v59 = vld [vmem:[%s7417_s0 + $0x790] sm:$0xff] }
  0xd1   :  { %1245 = vmatprep.mubr.f32.mxu0 %v188_v56  ;;  %v45_v56 = vld [vmem:[%s7417_s0 + $0xb0] sm:$0xff] }
  0xd3   :  { %965 = vmatmul.mubr.f32.vlgmr.msra.gmra.mrb[32].mxu1 %v153_v60  ;;  %v70_v60 = vld [vmem:[%s7417_s0 + $0x178] sm:$0xff] }
  0xd4   :  { %1246 = vmatmul.mubr.f32.gmra.mrb[40].mxu0 %v187_v20  ;;  %970 = vmatprep.mubr.f32.mxu1 %v162_v61  ;;  %v266_v20 = vld [vmem:[%s7417_s0 + $0x798] sm:$0xff]  ;;  %v273_v61 = vld [vmem:[%s7417_s0 + $0x7d0] sm:$0xff] }
  0xd5   :  { %1251 = vmatprep.mubr.f32.mxu0 %v196_v62  ;;  %v53_v62 = vld [vmem:[%s7417_s0 + $0xf0] sm:$0xff] }
  0xd7   :  { %971 = vmatmul.mubr.f32.gmra.mrb[34].mxu1 %v161_v6  ;;  %v77_v6 = vld [vmem:[%s7417_s0 + $0x1b0] sm:$0xff] }
  0xd8   :  { %1252 = vmatmul.mubr.f32.gmra.mrb[42].mxu0 %v195_v48  ;;  %976 = vmatprep.mubr.f32.mxu1 %v170_v9  ;;  %v274_v48 = vld [vmem:[%s7417_s0 + $0x7d8] sm:$0xff] }
  0xd9   :  { %1257 = vmatprep.mubr.f32.mxu0 %v204_v2  ;;  %v61_v2 = vld [vmem:[%s7417_s0 + $0x130] sm:$0xff]  ;;  %v86_v9 = vld [vmem:[%s7417_s0 + $0x1f8] sm:$0xff] }
  0xdb   :  { %977 = vmatmul.mubr.f32.gmra.mrb[36].mxu1 %v169_v1  ;;  %v93_v1 = vld [vmem:[%s7417_s0 + $0x230] sm:$0xff] }
  0xdc   :  { %1258 = vmatmul.mubr.f32.gmra.mrb[44].mxu0 %v203_v63  ;;  %982 = vmatprep.mubr.f32.mxu1 %v178_v17  ;;  %v69_v63 = vld [vmem:[%s7417_s0 + $0x170] sm:$0xff]  ;;  %v102_v17 = vld [vmem:[%s7417_s0 + $0x278] sm:$0xff] }
  0xdd   :  { %1263 = vmatprep.mubr.f32.mxu0 %v212_v4  ;;  %v78_v4 = vld [vmem:[%s7417_s0 + $0x1b8] sm:$0xff] }
  0xdf   :  { %983 = vmatmul.mubr.f32.gmra.mrb[38].mxu1 %v177_v26  ;;  %v109_v26 = vld [vmem:[%s7417_s0 + $0x2b0] sm:$0xff] }
  0xe0   :  { %1264 = vmatmul.mubr.f32.gmra.mrb[46].mxu0 %v211_v0  ;;  %988 = vmatprep.mubr.f32.mxu1 %v186_v11  ;;  %v85_v0 = vld [vmem:[%s7417_s0 + $0x1f0] sm:$0xff]  ;;  %v118_v11 = vld [vmem:[%s7417_s0 + $0x2f8] sm:$0xff] }
  0xe1   :  { %1269 = vmatprep.mubr.f32.mxu0 %v220_v25  ;;  %v94_v25 = vld [vmem:[%s7417_s0 + $0x238] sm:$0xff] }
  0xe3   :  { %989 = vmatmul.mubr.f32.gmra.mrb[40].mxu1 %v185_v16  ;;  %v126_v16 = vld [vmem:[%s7417_s0 + $0x338] sm:$0xff] }
  0xe4   :  { %1270 = vmatmul.mubr.f32.gmra.mrb[48].mxu0 %v219_v3  ;;  %994 = vmatprep.mubr.f32.mxu1 %v194_v24  ;;  %v101_v3 = vld [vmem:[%s7417_s0 + $0x270] sm:$0xff] }
  0xe5   :  { %1275 = vmatprep.mubr.f32.mxu0 %v228_v23  ;;  %v110_v23 = vld [vmem:[%s7417_s0 + $0x2b8] sm:$0xff] }
  0xe7   :  { %995 = vmatmul.mubr.f32.gmra.mrb[42].mxu1 %v193_v38 }
  0xe8   :  { %1276 = vmatmul.mubr.f32.gmra.mrb[50].mxu0 %v227_v12  ;;  %1000 = vmatprep.mubr.f32.mxu1 %v202_v22  ;;  %v117_v12 = vld [vmem:[%s7417_s0 + $0x2f0] sm:$0xff]  ;;  %v134_v22 = vld [vmem:[%s7417_s0 + $0x378] sm:$0xff] }
  0xe9   :  { %1281 = vmatprep.mubr.f32.mxu0 %v236_v15 }
  0xeb   :  { %1001 = vmatmul.mubr.f32.gmra.mrb[44].mxu1 %v201_v28  ;;  %v133_v28 = vld [vmem:[%s7417_s0 + $0x370] sm:$0xff] }
  0xec   :  { %1282 = vmatmul.mubr.f32.gmra.mrb[52].mxu0 %v235_v18  ;;  %1006 = vmatprep.mubr.f32.mxu1 %v210_v32 }
  0xed   :  { %1287 = vmatprep.mubr.f32.mxu0 %v244_v21  ;;  %v125_v21 = vld [vmem:[%s7417_s0 + $0x330] sm:$0xff] }
  0xef   :  { %1007 = vmatmul.mubr.f32.gmra.mrb[46].mxu1 %v209_v8 }
  0xf0   :  { %1288 = vmatmul.mubr.f32.gmra.mrb[54].mxu0 %v243_v42  ;;  %1012 = vmatprep.mubr.f32.mxu1 %v218_v33  ;;  %v141_v33 = vld [vmem:[%s7417_s0 + $0x3b0] sm:$0xff] }
  0xf1   :  { %1293 = vmatprep.mubr.f32.mxu0 %v252_v31 }
  0xf3   :  { %1013 = vmatmul.mubr.f32.gmra.mrb[48].mxu1 %v217_v57 }
  0xf4   :  { %1294 = vmatmul.mubr.f32.gmra.mrb[56].mxu0 %v251_v7  ;;  %1018 = vmatprep.mubr.f32.mxu1 %v226_v35  ;;  %v142_v7 = vld [vmem:[%s7417_s0 + $0x3b8] sm:$0xff] }
  0xf5   :  { %1299 = vmatprep.mubr.f32.mxu0 %v260_v29 }
  0xf7   :  { %1019 = vmatmul.mubr.f32.gmra.mrb[50].mxu1 %v225_v39  ;;  %v158_v39 = vld [vmem:[%s7417_s0 + $0x438] sm:$0xff] }
  0xf8   :  { %1300 = vmatmul.mubr.f32.gmra.mrb[58].mxu0 %v259_v53  ;;  %1024 = vmatprep.mubr.f32.mxu1 %v234_v41 }
  0xf9   :  { %1305 = vmatprep.mubr.f32.mxu0 %v268_v34  ;;  %v150_v34 = vld [vmem:[%s7417_s0 + $0x3f8] sm:$0xff] }
  0xfb   :  { %1025 = vmatmul.mubr.f32.gmra.mrb[52].mxu1 %v233_v5 }
  0xfc   :  { %1306 = vmatmul.mubr.f32.gmra.mrb[60].mxu0 %v267_v36  ;;  %1030 = vmatprep.mubr.f32.mxu1 %v242_v13  ;;  %v149_v36 = vld [vmem:[%s7417_s0 + $0x3f0] sm:$0xff]  ;;  %v166_v13 = vld [vmem:[%s7417_s0 + $0x478] sm:$0xff] }
  0xfd   :  { %1311 = vmatprep.mubr.f32.mxu0 %v276_v37 }
  0xff   :  { %1031 = vmatmul.mubr.f32.gmra.mrb[54].mxu1 %v241_v46 }
 0x100   :  { %1312 = vmatmul.mubr.f32.gmra.mrb[62].mxu0 %v275_v40  ;;  %1036 = vmatprep.mubr.f32.mxu1 %v250_v49  ;;  %v174_v49 = vld [vmem:[%s7417_s0 + $0x4b8] sm:$0xff] }
 0x101   :  { %1382 = vmatprep.mubr.f32.mxu0 %v30_v43  ;;  %v157_v43 = vld [vmem:[%s7417_s0 + $0x430] sm:$0xff] }
 0x103   :  { %1037 = vmatmul.mubr.f32.gmra.mrb[56].mxu1 %v249_v52 }
 0x104   :  { %1383 = vmatmul.mubr.f32.vlgmr.msra.gmra.mrb[0].mxu0 %v29_v44  ;;  %1042 = vmatprep.mubr.f32.mxu1 %v258_v55  ;;  %v182_v55 = vld [vmem:[%s7417_s0 + $0x4f8] sm:$0xff] }
 0x105   :  { %1388 = vmatprep.mubr.f32.mxu0 %v38_v14  ;;  %v165_v14 = vld [vmem:[%s7417_s0 + $0x470] sm:$0xff] }
 0x107   :  { %1043 = vmatmul.mubr.f32.gmra.mrb[58].mxu1 %v257_v58  ;;  %v181_v58 = vld [vmem:[%s7417_s0 + $0x4f0] sm:$0xff] }
 0x108   :  { %1389 = vmatmul.mubr.f32.gmra.mrb[2].mxu0 %v37_v27  ;;  %1048 = vmatprep.mubr.f32.mxu1 %v266_v20 }
 0x109   :  { %1394 = vmatprep.mubr.f32.mxu0 %v46_v51  ;;  %v173_v51 = vld [vmem:[%s7417_s0 + $0x4b0] sm:$0xff] }
 0x10b   :  { %1049 = vmatmul.mubr.f32.gmra.mrb[60].mxu1 %v265_v59 }
 0x10c   :  { %1395 = vmatmul.mubr.f32.gmra.mrb[4].mxu0 %v45_v56  ;;  %1054 = vmatprep.mubr.f32.mxu1 %v274_v48  ;;  %v189_v48 = vld [vmem:[%s7417_s0 + $0x530] sm:$0xff] }
 0x10d   :  { %1400 = vmatprep.mubr.f32.mxu0 %v54_v19 }
 0x10f   :  { %1055 = vmatmul.mubr.f32.gmra.mrb[62].mxu1 %v273_v61 }
 0x110   :  { %1401 = vmatmul.mubr.f32.gmra.mrb[6].mxu0 %v53_v62  ;;  %v190_v62 = vld [vmem:[%s7417_s0 + $0x538] sm:$0xff] }
 0x111   :  { %1406 = vmatprep.mubr.f32.mxu0 %v62_v47 }
 0x114   :  { %1407 = vmatmul.mubr.f32.gmra.mrb[8].mxu0 %v61_v2 }
 0x115   :  { %1412 = vmatprep.mubr.f32.mxu0 %v70_v60  ;;  %v198_v60 = vld [vmem:[%s7417_s0 + $0x578] sm:$0xff] }
 0x118   :  { %1413 = vmatmul.mubr.f32.gmra.mrb[10].mxu0 %v69_v63 }
 0x119   :  { %1418 = vmatprep.mubr.f32.mxu0 %v78_v4  ;;  %v197_v4 = vld [vmem:[%s7417_s0 + $0x570] sm:$0xff] }
 0x11c   :  { %1419 = vmatmul.mubr.f32.gmra.mrb[12].mxu0 %v77_v6 }
 0x11d   :  { %1424 = vmatprep.mubr.f32.mxu0 %v86_v9  ;;  %v206_v9 = vld [vmem:[%s7417_s0 + $0x5b8] sm:$0xff] }
 0x120   :  { %1425 = vmatmul.mubr.f32.gmra.mrb[14].mxu0 %v85_v0 }
 0x121   :  { %1430 = vmatprep.mubr.f32.mxu0 %v94_v25 }
 0x124   :  { %1431 = vmatmul.mubr.f32.gmra.mrb[16].mxu0 %v93_v1  ;;  %v205_v1 = vld [vmem:[%s7417_s0 + $0x5b0] sm:$0xff] }
 0x125   :  { %1436 = vmatprep.mubr.f32.mxu0 %v102_v17 }
 0x126   :  { %v5955_v15 = vpop.f32.mrb[0].mxu1 }
 0x127   :  { %v615_v24 = vpop.f32.mrb[1].mxu1 }
 0x128   :  { %1437 = vmatmul.mubr.f32.gmra.mrb[18].mxu0 %v101_v3  ;;  %v5961_v18 = vadd.f32 %v615_v24, %v5875_v30  ;;  %v214_v3 = vld [vmem:[%s7417_s0 + $0x5f8] sm:$0xff] }
 0x129   :  { %1442 = vmatprep.mubr.f32.mxu0 %v110_v23 }
 0x12a   :  { %v5966_v38 = vpop.f32.mrb[2].mxu1 }
 0x12b   :  { %v621_v42 = vpop.f32.mrb[3].mxu1 }
 0x12c   :  { %1443 = vmatmul.mubr.f32.gmra.mrb[20].mxu0 %v109_v26  ;;  %v5972_v31 = vadd.f32 %v621_v42, %v5875_v30 }
 0x12d   :  { %1448 = vmatprep.mubr.f32.mxu0 %v118_v11  ;;  %v213_v11 = vld [vmem:[%s7417_s0 + $0x5f0] sm:$0xff] }
 0x12e   :  { %v5977_v32 = vpop.f32.mrb[4].mxu1 }
 0x12f   :  { %v627_v29 = vpop.f32.mrb[5].mxu1 }
 0x130   :  { %1449 = vmatmul.mubr.f32.gmra.mrb[22].mxu0 %v117_v12  ;;  %v5983_v8 = vadd.f32 %v627_v29, %v5875_v30 }
 0x131   :  { %1454 = vmatprep.mubr.f32.mxu0 %v126_v16  ;;  %v222_v16 = vld [vmem:[%s7417_s0 + $0x638] sm:$0xff] }
 0x132   :  { %v5988_v53 = vpop.f32.mrb[6].mxu1 }
 0x133   :  { %v633_v57 = vpop.f32.mrb[7].mxu1 }
 0x134   :  { %1455 = vmatmul.mubr.f32.gmra.mrb[24].mxu0 %v125_v21  ;;  %v5994_v35 = vadd.f32 %v633_v57, %v5875_v30  ;;  %v238_v57 = vld [vmem:[%s7417_s0 + $0x6b8] sm:$0xff] }
 0x135   :  { %1460 = vmatprep.mubr.f32.mxu0 %v134_v22  ;;  %v221_v22 = vld [vmem:[%s7417_s0 + $0x630] sm:$0xff] }
 0x136   :  { %v5999_v37 = vpop.f32.mrb[8].mxu1 }
 0x137   :  { %v639_v41 = vpop.f32.mrb[9].mxu1 }
 0x138   :  { %1461 = vmatmul.mubr.f32.gmra.mrb[26].mxu0 %v133_v28  ;;  %v6005_v40 = vadd.f32 %v639_v41, %v5875_v30  ;;  %v230_v28 = vld [vmem:[%s7417_s0 + $0x678] sm:$0xff]  ;;  %v237_v41 = vld [vmem:[%s7417_s0 + $0x6b0] sm:$0xff] }
 0x139   :  { %1466 = vmatprep.mubr.f32.mxu0 %v142_v7 }
 0x13a   :  { %v6010_v5 = vpop.f32.mrb[10].mxu1 }
 0x13b   :  { %v645_v10 = vpop.f32.mrb[11].mxu1 }
 0x13c   :  { %1467 = vmatmul.mubr.f32.gmra.mrb[28].mxu0 %v141_v33  ;;  %v6016_v44 = vadd.f32 %v645_v10, %v5875_v30  ;;  %v229_v33 = vld [vmem:[%s7417_s0 + $0x670] sm:$0xff] }
 0x13d   :  { %1472 = vmatprep.mubr.f32.mxu0 %v150_v34 }
 0x13e   :  { %v6021_v46 = vpop.f32.mrb[12].mxu1 }
 0x13f   :  { %v651_v54 = vpop.f32.mrb[13].mxu1 }
 0x140   :  { %1473 = vmatmul.mubr.f32.gmra.mrb[30].mxu0 %v149_v36  ;;  %v6027_v27 = vadd.f32 %v651_v54, %v5875_v30  ;;  %v254_v54 = vld [vmem:[%s7417_s0 + $0x738] sm:$0xff] }
 0x141   :  { %1478 = vmatprep.mubr.f32.mxu0 %v158_v39 }
 0x142   :  { %v6032_v52 = vpop.f32.mrb[14].mxu1 }
 0x143   :  { %v657_v56 = vpop.f32.mrb[15].mxu1 }
 0x144   :  { %1479 = vmatmul.mubr.f32.gmra.mrb[32].mxu0 %v157_v43  ;;  %v6038_v19 = vadd.f32 %v657_v56, %v5875_v30  ;;  %v261_v56 = vld [vmem:[%s7417_s0 + $0x770] sm:$0xff] }
 0x145   :  { %1484 = vmatprep.mubr.f32.mxu0 %v166_v13  ;;  %v246_v13 = vld [vmem:[%s7417_s0 + $0x6f8] sm:$0xff] }
 0x146   :  { %v6043_v20 = vpop.f32.mrb[16].mxu1 }
 0x147   :  { %v663_v47 = vpop.f32.mrb[17].mxu1 }
 0x148   :  { %1485 = vmatmul.mubr.f32.gmra.mrb[34].mxu0 %v165_v14  ;;  %v6049_v59 = vadd.f32 %v663_v47, %v5875_v30  ;;  %v278_v47 = vld [vmem:[%s7417_s0 + $0x7f8] sm:$0xff] }
 0x149   :  { %1490 = vmatprep.mubr.f32.mxu0 %v174_v49  ;;  %v245_v49 = vld [vmem:[%s7417_s0 + $0x6f0] sm:$0xff] }
 0x14a   :  { %v6054_v2 = vpop.f32.mrb[18].mxu1 }
 0x14b   :  { %v669_v61 = vpop.f32.mrb[19].mxu1 }
 0x14c   :  { %1491 = vmatmul.mubr.f32.gmra.mrb[36].mxu0 %v173_v51  ;;  %v6060_v63 = vadd.f32 %v669_v61, %v5875_v30  ;;  %v253_v51 = vld [vmem:[%s7417_s0 + $0x730] sm:$0xff] }
 0x14d   :  { %1496 = vmatprep.mubr.f32.mxu0 %v182_v55  ;;  %v262_v55 = vld [vmem:[%s7417_s0 + $0x778] sm:$0xff] }
 0x14e   :  { %v6065_v6 = vpop.f32.mrb[20].mxu1 }
 0x14f   :  { %v675_v0 = vpop.f32.mrb[21].mxu1 }
 0x150   :  { %1497 = vmatmul.mubr.f32.gmra.mrb[38].mxu0 %v181_v58  ;;  %v6071_v25 = vadd.f32 %v675_v0, %v5875_v30  ;;  %v270_v58 = vld [vmem:[%s7417_s0 + $0x7b8] sm:$0xff] }
 0x151   :  { %1502 = vmatprep.mubr.f32.mxu0 %v190_v62  ;;  %v269_v62 = vld [vmem:[%s7417_s0 + $0x7b0] sm:$0xff] }
 0x152   :  { %v6076_v17 = vpop.f32.mrb[22].mxu1 }
 0x153   :  { %v681_v23 = vpop.f32.mrb[23].mxu1 }
 0x154   :  { %1503 = vmatmul.mubr.f32.gmra.mrb[40].mxu0 %v189_v48  ;;  %v6082_v26 = vadd.f32 %v681_v23, %v5875_v30  ;;  %v277_v48 = vld [vmem:[%s7417_s0 + $0x7f0] sm:$0xff] }
 0x155   :  { %1508 = vmatprep.mubr.f32.mxu0 %v198_v60 }
 0x156   :  { %v6087_v12 = vpop.f32.mrb[24].mxu1 }
 0x157   :  { %v687_v24 = vpop.f32.mrb[25].mxu1 }
 0x158   :  { %1509 = vmatmul.mubr.f32.gmra.mrb[42].mxu0 %v197_v4  ;;  %v6093_v21 = vadd.f32 %v687_v24, %v5875_v30 }
 0x159   :  { %1514 = vmatprep.mubr.f32.mxu0 %v206_v9 }
 0x15a   :  { %v6098_v42 = vpop.f32.mrb[26].mxu1 }
 0x15b   :  { %v693_v7 = vpop.f32.mrb[27].mxu1 }
 0x15c   :  { %1515 = vmatmul.mubr.f32.gmra.mrb[44].mxu0 %v205_v1  ;;  %v6104_v29 = vadd.f32 %v693_v7, %v5875_v30 }
 0x15d   :  { %1520 = vmatprep.mubr.f32.mxu0 %v214_v3 }
 0x15e   :  { %v6109_v34 = vpop.f32.mrb[28].mxu1 }
 0x15f   :  { %v699_v36 = vpop.f32.mrb[29].mxu1 }
 0x160   :  { %1521 = vmatmul.mubr.f32.gmra.mrb[46].mxu0 %v213_v11  ;;  %v6115_v39 = vadd.f32 %v699_v36, %v5875_v30 }
 0x161   :  { %1526 = vmatprep.mubr.f32.mxu0 %v222_v16 }
 0x162   :  { %v6120_v43 = vpop.f32.mrb[30].mxu1 }
 0x163   :  { %v705_v10 = vpop.f32.mrb[31].mxu1 }
 0x164   :  { %1527 = vmatmul.mubr.f32.gmra.mrb[48].mxu0 %v221_v22  ;;  %v6126_v14 = vadd.f32 %v705_v10, %v5875_v30 }
 0x165   :  { %1532 = vmatprep.mubr.f32.mxu0 %v230_v28 }
 0x168   :  { %1533 = vmatmul.mubr.f32.gmra.mrb[50].mxu0 %v229_v33 }
 0x169   :  { %1538 = vmatprep.mubr.f32.mxu0 %v238_v57 }
 0x16c   :  { %1539 = vmatmul.mubr.f32.gmra.mrb[52].mxu0 %v237_v41 }
 0x16d   :  { %1544 = vmatprep.mubr.f32.mxu0 %v246_v13 }
 0x170   :  { %1545 = vmatmul.mubr.f32.gmra.mrb[54].mxu0 %v245_v49 }
 0x171   :  { %1550 = vmatprep.mubr.f32.mxu0 %v254_v54  ;;  %v1927_v54 = vld [vmem:[%s7419_s3] sm:$0xff] }
 0x174   :  { %1551 = vmatmul.mubr.f32.gmra.mrb[56].mxu0 %v253_v51  ;;  %v1928_v51 = vld [vmem:[%s7419_s3 + $0x8] sm:$0xff] }
 0x175   :  { %1556 = vmatprep.mubr.f32.mxu0 %v262_v55 }
 0x178   :  { %1557 = vmatmul.mubr.f32.gmra.mrb[58].mxu0 %v261_v56  ;;  %v3927_v56 = vpack.c.bf16 %v1928_v51, %v1927_v54 }
 0x179   :  { %1562 = vmatprep.mubr.f32.mxu0 %v270_v58 }
 0x17a   :  { %3928 = vmatprep.subr.bf16.mxu1 %v3927_v56 }
 0x17b   :  { %3930 = vmatpush3.bf16.msra.mxu1 %v3927_v56 }
 0x17c   :  { %1563 = vmatmul.mubr.f32.gmra.mrb[60].mxu0 %v269_v62 }
 0x17d   :  { %1568 = vmatprep.mubr.f32.mxu0 %v278_v47  ;;  %v1929_v47 = vld [vmem:[%s7419_s3 + $0x10] sm:$0xff] }
 0x180   :  { %1569 = vmatmul.mubr.f32.gmra.mrb[62].mxu0 %v277_v48  ;;  %v1930_v48 = vld [vmem:[%s7419_s3 + $0x18] sm:$0xff]  ;;  %s4362_s3 = smov 32  }
 0x1a6   :  { %v6155_v60 = vpop.f32.mrb[32].mxu1 }
 0x1a7   :  { %v968_v61 = vpop.f32.mrb[33].mxu1 }
 0x1a8   :  { %v6158_v4 = vadd.f32 %v968_v61, %v5875_v30 }
 0x1aa   :  { %v6160_v9 = vpop.f32.mrb[34].mxu1 }
 0x1ab   :  { %v974_v0 = vpop.f32.mrb[35].mxu1 }
 0x1ac   :  { %v6163_v1 = vadd.f32 %v974_v0, %v5875_v30  ;;  %v3931_v0 = vpack.c.bf16 %v1930_v48, %v1929_v47 }
 0x1ae   :  { %v6165_v3 = vpop.f32.mrb[36].mxu1  ;;  %3932 = vmatprep.subr.bf16.mxu1 %v3931_v0 }
 0x1af   :  { %v980_v23 = vpop.f32.mrb[37].mxu1  ;;  %3934 = vmatpush3.bf16.msra.mxu1 %v3931_v0 }
 0x1b0   :  { %v6168_v11 = vadd.f32 %v980_v23, %v5875_v30  ;;  %v539_v23 = vsub.s32 0, %v5854_v45 }
 0x1b2   :  { %v6170_v16 = vpop.f32.mrb[38].mxu1 }
 0x1b3   :  { %v986_v24 = vpop.f32.mrb[39].mxu1 }
 0x1b4   :  { %v6173_v22 = vadd.f32 %v986_v24, %v5875_v30 }
 0x1b6   :  { %v6175_v28 = vpop.f32.mrb[40].mxu1 }
 0x1b7   :  { %v992_v7 = vpop.f32.mrb[41].mxu1 }
 0x1b8   :  { %v6178_v33 = vadd.f32 %v992_v7, %v5875_v30 }
 0x1ba   :  { %v6180_v57 = vpop.f32.mrb[42].mxu1 }
 0x1bb   :  { %v998_v36 = vpop.f32.mrb[43].mxu1 }
 0x1bc   :  { %v6183_v41 = vadd.f32 %v998_v36, %v5875_v30 }
 0x1be   :  { %v6185_v13 = vpop.f32.mrb[44].mxu1 }
 0x1bf   :  { %v1004_v10 = vpop.f32.mrb[45].mxu1 }
 0x1c0   :  { %v6188_v49 = vadd.f32 %v1004_v10, %v5875_v30  ;;  %v6216_v10 = vrot.slane %v5862_v50, %v539_v23 }
 0x1c2   :  { %v6196_v55 = vpop.f32.mrb[46].mxu1  ;;  %v614_v45 = vadd.f32 %v5955_v15, %v6216_v10 }
 0x1c3   :  { %v1010_v58 = vpop.f32.mrb[47].mxu1 }
 0x1c4   :  { %v6199_v62 = vadd.f32 %v1010_v58, %v5875_v30 }
 0x1c6   :  { %v6207_v61 = vpop.f32.mrb[48].mxu1 }
 0x1c7   :  { %v1016_v24 = vpop.f32.mrb[49].mxu1 }
 0x1c8   :  { %v6211_v7 = vadd.f32 %v1016_v24, %v5875_v30 }
 0x1ca   :  { %v6213_v36 = vpop.f32.mrb[50].mxu1 }
 0x1cb   :  { %v1022_v54 = vpop.f32.mrb[51].mxu1 }
 0x1cc   :  { %v6219_v51 = vadd.f32 %v1022_v54, %v5875_v30  ;;  %v620_v54 = vadd.f32 %v5966_v38, %v6216_v10  ;;  %v626_v38 = vadd.f32 %v5977_v32, %v6216_v10 }
 0x1ce   :  { %v6221_v56 = vpop.f32.mrb[52].mxu1 }
 0x1cf   :  { %7431 = vst [vmem:[#allocation2_spill] sm:$0xff] %v6221_v56  ;;  %v1028_v58 = vpop.f32.mrb[53].mxu1 }
 0x1d0   :  { %v6226_v48 = vadd.f32 %v1028_v58, %v5875_v30 }
 0x1d2   :  { %v6233_v23 = vpop.f32.mrb[54].mxu1 }
 0x1d3   :  { %7434 = vst [vmem:[#allocation5_spill] sm:$0xff] %v6233_v23  ;;  %v1034_v15 = vpop.f32.mrb[55].mxu1 }
 0x1d4   :  { %v6240_v58 = vadd.f32 %v1034_v15, %v5875_v30 }
 0x1d7   :  { %v1384_v47 = vpop.f32.mrb[0].mxu0 }
 0x1d8   :  { %v6228_v0 = vadd.f32 %v1384_v47, %v614_v45  ;;  %v1386_v24 = vpop.f32.mrb[1].mxu0 }
 0x1d9   :  { %v6231_v50 = vadd.f32 %v1386_v24, %v5961_v18  ;;  %v6247_v24 = vpop.f32.mrb[56].mxu1 }
 0x1da   :  { %7432 = vst [vmem:[#allocation3_spill] sm:$0xff] %v6228_v0  ;;  %1639 = vrot.lane.b32.xlu0 %v6228_v0, %s4362_s3 }
 0x1db   :  { %7433 = vst [vmem:[#allocation4_spill] sm:$0xff] %v6231_v50  ;;  %v1390_v56 = vpop.f32.mrb[2].mxu0  ;;  %v1040_v50 = vpop.f32.mrb[57].mxu1 }
 0x1dc   :  { %v6242_v45 = vadd.f32 %v1390_v56, %v620_v54  ;;  %v1392_v47 = vpop.f32.mrb[3].mxu0  ;;  %v6254_v23 = vadd.f32 %v1040_v50, %v5875_v30 }
 0x1dd   :  { %v6245_v18 = vadd.f32 %v1392_v47, %v5972_v31  ;;  %v6261_v31 = vpop.f32.mrb[58].mxu1  ;;  %v632_v47 = vadd.f32 %v5988_v53, %v6216_v10 }
 0x1de   :  { %7435 = vst [vmem:[#allocation6_spill] sm:$0xff] %v6242_v45  ;;  %1641 = vrot.lane.b32.xlu0 %v6242_v45, %s4362_s3  ;;  %v1046_v32 = vpop.f32.mrb[59].mxu1 }
 0x1df   :  { %7436 = vst [vmem:[#allocation7_spill] sm:$0xff] %v6245_v18  ;;  %v1396_v0 = vpop.f32.mrb[4].mxu0  ;;  %v6268_v45 = vadd.f32 %v1046_v32, %v5875_v30 }
 0x1e0   :  { %v6256_v15 = vadd.f32 %v1396_v0, %v626_v38  ;;  %v1398_v56 = vpop.f32.mrb[5].mxu0 }
 0x1e1   :  { %v6259_v54 = vadd.f32 %v1398_v56, %v5983_v8  ;;  %v6275_v8 = vpop.f32.mrb[60].mxu1  ;;  %v638_v56 = vadd.f32 %v5999_v37, %v6216_v10 }
 0x1e2   :  { %7437 = vst [vmem:[#allocation8_spill] sm:$0xff] %v6256_v15  ;;  %1643 = vrot.lane.b32.xlu1 %v6256_v15, %s4362_s3  ;;  %v1052_v53 = vpop.f32.mrb[61].mxu1 }
 0x1e3   :  { %7438 = vst [vmem:[#allocation9_spill] sm:$0xff] %v6259_v54  ;;  %v1402_v18 = vpop.f32.mrb[6].mxu0  ;;  %v6282_v15 = vadd.f32 %v1052_v53, %v5875_v30 }
 0x1e4   :  { %v6270_v50 = vadd.f32 %v1402_v18, %v632_v47  ;;  %v1404_v0 = vpop.f32.mrb[7].mxu0 }
 0x1e5   :  { %v6273_v38 = vadd.f32 %v1404_v0, %v5994_v35  ;;  %v6289_v35 = vpop.f32.mrb[62].mxu1  ;;  %v644_v0 = vadd.f32 %v6010_v5, %v6216_v10 }
 0x1e6   :  { %7439 = vst [vmem:[#allocation10_spill] sm:$0xff] %v6270_v50  ;;  %1645 = vrot.lane.b32.xlu1 %v6270_v50, %s4362_s3  ;;  %v1058_v37 = vpop.f32.mrb[63].mxu1 }
 0x1e7   :  { %7440 = vst [vmem:[#allocation11_spill] sm:$0xff] %v6273_v38  ;;  %v1408_v54 = vpop.f32.mrb[8].mxu0  ;;  %v6296_v50 = vadd.f32 %v1058_v37, %v5875_v30  ;;  %v656_v30 = vadd.f32 %v6032_v52, %v6216_v10  ;;  %v662_v37 = vadd.f32 %v6043_v20, %v6216_v10 }
 0x1e8   :  { %v6284_v32 = vadd.f32 %v1408_v54, %v638_v56  ;;  %v1410_v18 = vpop.f32.mrb[9].mxu0 }
 0x1e9   :  { %v6287_v47 = vadd.f32 %v1410_v18, %v6005_v40  ;;  %v650_v40 = vadd.f32 %v6021_v46, %v6216_v10 }
 0x1ea   :  { %7441 = vst [vmem:[#allocation12_spill] sm:$0xff] %v6284_v32  ;;  %1647 = vrot.lane.b32.xlu0 %v6284_v32, %s4362_s3 }
 0x1eb   :  { %7442 = vst [vmem:[#allocation13_spill] sm:$0xff] %v6287_v47  ;;  %v1414_v38 = vpop.f32.mrb[10].mxu0 }
 0x1ec   :  { %v6298_v53 = vadd.f32 %v1414_v38, %v644_v0  ;;  %v1416_v54 = vpop.f32.mrb[11].mxu0 }
 0x1ed   :  { %v6301_v56 = vadd.f32 %v1416_v54, %v6016_v44 }
 0x1ee   :  { %1649 = vrot.lane.b32.xlu1 %v6298_v53, %s4362_s3 }
 0x1ef   :  { %v1420_v5 = vpop.f32.mrb[12].mxu0 }
 0x1f0   :  { %v6307_v18 = vadd.f32 %v1420_v5, %v650_v40  ;;  %v1422_v47 = vpop.f32.mrb[13].mxu0  ;;  %v668_v40 = vadd.f32 %v6054_v2, %v6216_v10 }
 0x1f1   :  { %v6310_v32 = vadd.f32 %v1422_v47, %v6027_v27 }
 0x1f2   :  { %1651 = vrot.lane.b32.xlu0 %v6307_v18, %s4362_s3 }
 0x1f3   :  { %v1426_v44 = vpop.f32.mrb[14].mxu0 }
 0x1f4   :  { %v6316_v38 = vadd.f32 %v1426_v44, %v656_v30  ;;  %v1428_v46 = vpop.f32.mrb[15].mxu0  ;;  %v674_v44 = vadd.f32 %v6065_v6, %v6216_v10 }
 0x1f5   :  { %v6319_v0 = vadd.f32 %v1428_v46, %v6038_v19 }
 0x1f6   :  { %1653 = vrot.lane.b32.xlu1 %v6316_v38, %s4362_s3 }
 0x1f7   :  { %v1432_v27 = vpop.f32.mrb[16].mxu0 }
 0x1f8   :  { %v6325_v47 = vadd.f32 %v1432_v27, %v662_v37  ;;  %v1434_v52 = vpop.f32.mrb[17].mxu0  ;;  %v680_v27 = vadd.f32 %v6076_v17, %v6216_v10 }
 0x1f9   :  { %v6328_v54 = vadd.f32 %v1434_v52, %v6049_v59 }
 0x1fa   :  { %1655 = vrot.lane.b32.xlu0 %v6325_v47, %s4362_s3 }
 0x1fb   :  { %v1438_v19 = vpop.f32.mrb[18].mxu0 }
 0x1fc   :  { %v6334_v5 = vadd.f32 %v1438_v19, %v668_v40  ;;  %v1440_v20 = vpop.f32.mrb[19].mxu0  ;;  %v686_v19 = vadd.f32 %v6087_v12, %v6216_v10 }
 0x1fd   :  { %v6337_v30 = vadd.f32 %v1440_v20, %v6060_v63 }
 0x1fe   :  { %1657 = vrot.lane.b32.xlu1 %v6334_v5, %s4362_s3 }
 0x1ff   :  { %v1444_v59 = vpop.f32.mrb[20].mxu0 }
 0x200   :  { %v6343_v46 = vadd.f32 %v1444_v59, %v674_v44  ;;  %v1446_v2 = vpop.f32.mrb[21].mxu0  ;;  %v692_v59 = vadd.f32 %v6098_v42, %v6216_v10 }
 0x201   :  { %v6346_v37 = vadd.f32 %v1446_v2, %v6071_v25 }
 0x202   :  { %1659 = vrot.lane.b32.xlu0 %v6343_v46, %s4362_s3 }
 0x203   :  { %v1450_v63 = vpop.f32.mrb[22].mxu0 }
 0x204   :  { %v6352_v52 = vadd.f32 %v1450_v63, %v680_v27  ;;  %v1452_v6 = vpop.f32.mrb[23].mxu0  ;;  %v698_v63 = vadd.f32 %v6109_v34, %v6216_v10 }
 0x205   :  { %v6355_v40 = vadd.f32 %v1452_v6, %v6082_v26 }
 0x206   :  { %1661 = vrot.lane.b32.xlu1 %v6352_v52, %s4362_s3 }
 0x207   :  { %v1456_v25 = vpop.f32.mrb[24].mxu0 }
 0x208   :  { %v6361_v20 = vadd.f32 %v1456_v25, %v686_v19  ;;  %v1458_v17 = vpop.f32.mrb[25].mxu0  ;;  %v704_v25 = vadd.f32 %v6120_v43, %v6216_v10 }
 0x209   :  { %v6364_v44 = vadd.f32 %v1458_v17, %v6093_v21 }
 0x20a   :  { %1663 = vrot.lane.b32.xlu0 %v6361_v20, %s4362_s3 }
 0x20b   :  { %v1462_v26 = vpop.f32.mrb[26].mxu0 }
 0x20c   :  { %v6370_v2 = vadd.f32 %v1462_v26, %v692_v59  ;;  %v1464_v12 = vpop.f32.mrb[27].mxu0  ;;  %v4039_v26 = vadd.f32 %v6155_v60, %v6216_v10 }
 0x20d   :  { %v6373_v27 = vadd.f32 %v1464_v12, %v6104_v29 }
 0x20e   :  { %1665 = vrot.lane.b32.xlu1 %v6370_v2, %s4362_s3 }
 0x20f   :  { %v1468_v21 = vpop.f32.mrb[28].mxu0 }
 0x210   :  { %v6379_v6 = vadd.f32 %v1468_v21, %v698_v63  ;;  %v1470_v42 = vpop.f32.mrb[29].mxu0  ;;  %v4043_v21 = vadd.f32 %v6160_v9, %v6216_v10 }
 0x211   :  { %v6382_v19 = vadd.f32 %v1470_v42, %v6115_v39 }
 0x212   :  { %1667 = vrot.lane.b32.xlu0 %v6379_v6, %s4362_s3 }
 0x213   :  { %v1474_v29 = vpop.f32.mrb[30].mxu0 }
 0x214   :  { %v6388_v17 = vadd.f32 %v1474_v29, %v704_v25  ;;  %v1476_v34 = vpop.f32.mrb[31].mxu0  ;;  %v4047_v29 = vadd.f32 %v6165_v3, %v6216_v10 }
 0x215   :  { %v6391_v59 = vadd.f32 %v1476_v34, %v6126_v14 }
 0x216   :  { %1669 = vrot.lane.b32.xlu1 %v6388_v17, %s4362_s3 }
 0x217   :  { %v1480_v39 = vpop.f32.mrb[32].mxu0 }
 0x218   :  { %v6397_v12 = vadd.f32 %v4039_v26, %v1480_v39  ;;  %v1482_v43 = vpop.f32.mrb[33].mxu0  ;;  %v4051_v39 = vadd.f32 %v6170_v16, %v6216_v10 }
 0x219   :  { %v6400_v63 = vadd.f32 %v6158_v4, %v1482_v43 }
 0x21a   :  { %1671 = vrot.lane.b32.xlu0 %v6397_v12, %s4362_s3 }
 0x21b   :  { %v1486_v14 = vpop.f32.mrb[34].mxu0 }
 0x21c   :  { %v6406_v42 = vadd.f32 %v4043_v21, %v1486_v14  ;;  %v1488_v60 = vpop.f32.mrb[35].mxu0  ;;  %v4055_v14 = vadd.f32 %v6175_v28, %v6216_v10 }
 0x21d   :  { %v6409_v25 = vadd.f32 %v6163_v1, %v1488_v60 }
 0x21e   :  { %1673 = vrot.lane.b32.xlu1 %v6406_v42, %s4362_s3 }
 0x21f   :  { %v1492_v4 = vpop.f32.mrb[36].mxu0 }
 0x220   :  { %v6415_v34 = vadd.f32 %v4047_v29, %v1492_v4  ;;  %v1494_v9 = vpop.f32.mrb[37].mxu0  ;;  %v4059_v4 = vadd.f32 %v6180_v57, %v6216_v10 }
 0x221   :  { %v6418_v26 = vadd.f32 %v6168_v11, %v1494_v9 }
 0x222   :  { %1675 = vrot.lane.b32.xlu0 %v6415_v34, %s4362_s3 }
 0x223   :  { %v1498_v1 = vpop.f32.mrb[38].mxu0 }
 0x224   :  { %v6424_v43 = vadd.f32 %v4051_v39, %v1498_v1  ;;  %v1500_v3 = vpop.f32.mrb[39].mxu0  ;;  %v4063_v1 = vadd.f32 %v6185_v13, %v6216_v10 }
 0x225   :  { %v6427_v21 = vadd.f32 %v6173_v22, %v1500_v3 }
 0x226   :  { %1677 = vrot.lane.b32.xlu1 %v6424_v43, %s4362_s3 }
 0x227   :  { %v1504_v11 = vpop.f32.mrb[40].mxu0 }
 0x228   :  { %v6433_v60 = vadd.f32 %v4055_v14, %v1504_v11  ;;  %v1506_v16 = vpop.f32.mrb[41].mxu0  ;;  %v4067_v11 = vadd.f32 %v6196_v55, %v6216_v10 }
 0x229   :  { %v6436_v29 = vadd.f32 %v6178_v33, %v1506_v16 }
 0x22a   :  { %1679 = vrot.lane.b32.xlu0 %v6433_v60, %s4362_s3 }
 0x22b   :  { %v1510_v22 = vpop.f32.mrb[42].mxu0 }
 0x22c   :  { %v6442_v9 = vadd.f32 %v4059_v4, %v1510_v22  ;;  %v1512_v28 = vpop.f32.mrb[43].mxu0  ;;  %v4071_v22 = vadd.f32 %v6207_v61, %v6216_v10 }
 0x22d   :  { %v6445_v39 = vadd.f32 %v6183_v41, %v1512_v28 }
 0x22e   :  { %1681 = vrot.lane.b32.xlu1 %v6442_v9, %s4362_s3 }
 0x22f   :  { %v1516_v33 = vpop.f32.mrb[44].mxu0 }
 0x230   :  { %v6451_v3 = vadd.f32 %v4063_v1, %v1516_v33  ;;  %v1518_v57 = vpop.f32.mrb[45].mxu0  ;;  %v4075_v33 = vadd.f32 %v6213_v36, %v6216_v10 }
 0x231   :  { %v6454_v14 = vadd.f32 %v6188_v49, %v1518_v57 }
 0x232   :  { %1683 = vrot.lane.b32.xlu0 %v6451_v3, %s4362_s3 }
 0x233   :  { %v1522_v41 = vpop.f32.mrb[46].mxu0 }
 0x234   :  { %v6460_v16 = vadd.f32 %v4067_v11, %v1522_v41  ;;  %v1524_v13 = vpop.f32.mrb[47].mxu0  ;;  %v7443_v41 = vld [vmem:[#allocation2_spill] sm:$0xff] }
 0x235   :  { %v6463_v4 = vadd.f32 %v6199_v62, %v1524_v13  ;;  %v4079_v13 = vadd.f32 %v7443_v41, %v6216_v10 }
 0x236   :  { %1685 = vrot.lane.b32.xlu1 %v6460_v16, %s4362_s3 }
 0x237   :  { %v1528_v49 = vpop.f32.mrb[48].mxu0 }
 0x238   :  { %v6469_v28 = vadd.f32 %v4071_v22, %v1528_v49  ;;  %v1530_v55 = vpop.f32.mrb[49].mxu0 }
 0x239   :  { %v6472_v1 = vadd.f32 %v6211_v7, %v1530_v55  ;;  %v7444_v55 = vld [vmem:[#allocation5_spill] sm:$0xff] }
 0x23a   :  { %1687 = vrot.lane.b32.xlu0 %v6469_v28, %s4362_s3 }
 0x23b   :  { %v1534_v62 = vpop.f32.mrb[50].mxu0 }
 0x23c   :  { %v6478_v57 = vadd.f32 %v4075_v33, %v1534_v62  ;;  %v1536_v61 = vpop.f32.mrb[51].mxu0  ;;  %v4083_v33 = vadd.f32 %v7444_v55, %v6216_v10 }
 0x23d   :  { %v6481_v11 = vadd.f32 %v6219_v51, %v1536_v61 }
 0x23e   :  { %1689 = vrot.lane.b32.xlu1 %v6478_v57, %s4362_s3 }
 0x23f   :  { %v1540_v7 = vpop.f32.mrb[52].mxu0 }
 0x240   :  { %v6487_v22 = vadd.f32 %v4079_v13, %v1540_v7  ;;  %v1542_v36 = vpop.f32.mrb[53].mxu0  ;;  %v4087_v13 = vadd.f32 %v6247_v24, %v6216_v10 }
 0x241   :  { %v6490_v49 = vadd.f32 %v6226_v48, %v1542_v36 }
 0x242   :  { %1691 = vrot.lane.b32.xlu0 %v6487_v22, %s4362_s3 }
 0x243   :  { %v1546_v51 = vpop.f32.mrb[54].mxu0 }
 0x244   :  { %v6496_v62 = vadd.f32 %v4083_v33, %v1546_v51  ;;  %v1548_v61 = vpop.f32.mrb[55].mxu0  ;;  %v4091_v33 = vadd.f32 %v6261_v31, %v6216_v10  ;;  %v4095_v31 = vadd.f32 %v6275_v8, %v6216_v10  ;;  %v4099_v8 = vadd.f32 %v6289_v35, %v6216_v10  ;;  %v7451_v10 = vld [vmem:[#allocation4_spill] sm:$0xff]  ;;  %v7452_v35 = vld [vmem:[#allocation10_spill] sm:$0xff] }
 0x245   :  { %v6499_v41 = vadd.f32 %v6240_v58, %v1548_v61  ;;  %v7447_v58 = vld [vmem:[#allocation3_spill] sm:$0xff] }
 0x246   :  { %7445 = vst [vmem:[#allocation2_spill] sm:$0xff] %v6496_v62  ;;  %1693 = vrot.lane.b32.xlu1 %v6496_v62, %s4362_s3  ;;  %v6516_v51 = vmul.f32 %v7447_v58, %v7447_v58 }
 0x247   :  { %v1552_v48 = vpop.f32.mrb[56].mxu0 }
 0x248   :  { %v6505_v7 = vadd.f32 %v4087_v13, %v1552_v48  ;;  %v1554_v36 = vpop.f32.mrb[57].mxu0  ;;  %7448 = vst [vmem:[#allocation3_spill] sm:$0xff] %v6516_v51 }
 0x249   :  { %v6508_v55 = vadd.f32 %v6254_v23, %v1554_v36  ;;  %v7449_v36 = vld [vmem:[#allocation6_spill] sm:$0xff] }
 0x24a   :  { %7446 = vst [vmem:[#allocation5_spill] sm:$0xff] %v6505_v7  ;;  %1695 = vrot.lane.b32.xlu0 %v6505_v7, %s4362_s3  ;;  %v6530_v58 = vmul.f32 %v7449_v36, %v7449_v36  ;;  %v7450_v36 = vld [vmem:[#allocation8_spill] sm:$0xff] }
 0x24b   :  { %v1558_v24 = vpop.f32.mrb[58].mxu0 }
 0x24c   :  { %v6518_v61 = vadd.f32 %v4091_v33, %v1558_v24  ;;  %v1560_v62 = vpop.f32.mrb[59].mxu0  ;;  %v1640_v13 = vpop.permute.xlu0 %1639 }
 0x24d   :  { %v6521_v48 = vadd.f32 %v6268_v45, %v1560_v62  ;;  %v1735_v23 = vadd.f32 %v1640_v13, %v6516_v51  ;;  %v6545_v51 = vmul.f32 %v7450_v36, %v7450_v36  ;;  %v6560_v36 = vmul.f32 %v7452_v35, %v7452_v35 }
 0x24e   :  { %1697 = vrot.lane.b32.xlu1 %v6518_v61, %s4362_s3 }
 0x24f   :  { %v1564_v33 = vpop.f32.mrb[60].mxu0  ;;  %3567 = vmatprep.mubr.msk.f32.mxu1 %vm2059_vm0, %v1735_v23 }
 0x250   :  { %v6533_v24 = vadd.f32 %v4095_v31, %v1564_v33  ;;  %v1566_v7 = vpop.f32.mrb[61].mxu0  ;;  %v1642_v45 = vpop.permute.xlu0 %1641 }
 0x251   :  { %v6536_v62 = vadd.f32 %v6282_v15, %v1566_v7  ;;  %v1736_v13 = vadd.f32 %v1642_v45, %v6530_v58 }
 0x252   :  { %1699 = vrot.lane.b32.xlu0 %v6533_v24, %s4362_s3 }
 0x253   :  { %v1570_v23 = vpop.f32.mrb[62].mxu0  ;;  %3568 = vmatmul.mubr.msk.f32.vlgmr.msra.gmra.mrb[64].mxu1 %vm2059_vm0, %v1736_v13 }
 0x254   :  { %v6548_v31 = vadd.f32 %v4099_v8, %v1570_v23  ;;  %v1572_v33 = vpop.f32.mrb[63].mxu0  ;;  %v1644_v15 = vpop.permute.xlu1 %1643  ;;  %v7454_v23 = vld [vmem:[#allocation9_spill] sm:$0xff] }
 0x255   :  { %v6551_v7 = vadd.f32 %v6296_v50, %v1572_v33  ;;  %v1737_v45 = vadd.f32 %v1644_v15, %v6545_v51  ;;  %v7453_v50 = vld [vmem:[#allocation7_spill] sm:$0xff]  ;;  %v7455_v33 = vld [vmem:[#allocation12_spill] sm:$0xff] }
 0x256   :  { %1701 = vrot.lane.b32.xlu1 %v6548_v31, %s4362_s3  ;;  %1799 = vrot.lane.b32.xlu0 %v7451_v10, %s4362_s3  ;;  %v6570_v15 = vmul.f32 %v7455_v33, %v7455_v33 }
 0x257   :  { %3570 = vmatprep.mubr.msk.f32.mxu1 %vm2059_vm0, %v1737_v45  ;;  %v7456_v45 = vld [vmem:[#allocation11_spill] sm:$0xff] }
 0x258   :  { %v1646_v13 = vpop.permute.xlu1 %1645 }
 0x259   :  { %v1738_v8 = vadd.f32 %v1646_v13, %v6560_v36  ;;  %v7457_v13 = vld [vmem:[#allocation13_spill] sm:$0xff] }
 0x25a   :  { %1801 = vrot.lane.b32.xlu1 %v7453_v50, %s4362_s3  ;;  %1803 = vrot.lane.b32.xlu0 %v7454_v23, %s4362_s3  ;;  %v6580_v50 = vmul.f32 %v6298_v53, %v6298_v53 }
 0x25b   :  { %3571 = vmatmul.mubr.msk.f32.gmra.mrb[66].mxu1 %vm2059_vm0, %v1738_v8  ;;  %v6590_v8 = vmul.f32 %v6307_v18, %v6307_v18 }
 0x25c   :  { %v1648_v10 = vpop.permute.xlu0 %1647 }
 0x25d   :  { %v1739_v35 = vadd.f32 %v1648_v10, %v6570_v15 }
 0x25e   :  { %1805 = vrot.lane.b32.xlu1 %v7456_v45, %s4362_s3  ;;  %1807 = vrot.lane.b32.xlu0 %v7457_v13, %s4362_s3 }
 0x25f   :  { %3573 = vmatprep.mubr.msk.f32.mxu1 %vm2059_vm0, %v1739_v35  ;;  %v6718_v35 = vmul.f32 %v6424_v43, %v6424_v43 }
 0x260   :  { %v1650_v23 = vpop.permute.xlu1 %1649 }
 0x261   :  { %v1740_v33 = vadd.f32 %v1650_v23, %v6580_v50 }
 0x262   :  { %1809 = vrot.lane.b32.xlu1 %v6301_v56, %s4362_s3  ;;  %1811 = vrot.lane.b32.xlu0 %v6310_v32, %s4362_s3  ;;  %v6600_v56 = vmul.f32 %v6316_v38, %v6316_v38 }
 0x263   :  { %3574 = vmatmul.mubr.msk.f32.gmra.mrb[68].mxu1 %vm2059_vm0, %v1740_v33  ;;  %v6736_v33 = vmul.f32 %v6451_v3, %v6451_v3 }
 0x264   :  { %v1652_v10 = vpop.permute.xlu0 %1651 }
 0x265   :  { %v1741_v53 = vadd.f32 %v1652_v10, %v6590_v8 }
 0x266   :  { %1813 = vrot.lane.b32.xlu1 %v6319_v0, %s4362_s3  ;;  %1815 = vrot.lane.b32.xlu0 %v6328_v54, %s4362_s3  ;;  %v6610_v0 = vmul.f32 %v6325_v47, %v6325_v47 }
 0x267   :  { %3576 = vmatprep.mubr.msk.f32.mxu1 %vm2059_vm0, %v1741_v53  ;;  %v6742_v53 = vmul.f32 %v6460_v16, %v6460_v16 }
 0x268   :  { %v1654_v32 = vpop.permute.xlu1 %1653 }
 0x269   :  { %v1742_v18 = vadd.f32 %v1654_v32, %v6600_v56 }
 0x26a   :  { %1817 = vrot.lane.b32.xlu1 %v6337_v30, %s4362_s3  ;;  %1819 = vrot.lane.b32.xlu0 %v6346_v37, %s4362_s3  ;;  %v6620_v30 = vmul.f32 %v6334_v5, %v6334_v5 }
 0x26b   :  { %3577 = vmatmul.mubr.msk.f32.gmra.mrb[70].mxu1 %vm2059_vm0, %v1742_v18  ;;  %v6748_v18 = vmul.f32 %v6469_v28, %v6469_v28 }
 0x26c   :  { %v1656_v54 = vpop.permute.xlu0 %1655 }
 0x26d   :  { %v1743_v38 = vadd.f32 %v1656_v54, %v6610_v0 }
 0x26e   :  { %1821 = vrot.lane.b32.xlu1 %v6355_v40, %s4362_s3  ;;  %1823 = vrot.lane.b32.xlu0 %v6364_v44, %s4362_s3  ;;  %v6630_v40 = vmul.f32 %v6343_v46, %v6343_v46 }
 0x26f   :  { %3579 = vmatprep.mubr.msk.f32.mxu1 %vm2059_vm0, %v1743_v38  ;;  %v6754_v38 = vmul.f32 %v6478_v57, %v6478_v57  ;;  %v2574_v57 = vld [vmem:[%s7420_s4 + $0x8] sm:$0xff] }
 0x270   :  { %v1658_v37 = vpop.permute.xlu1 %1657 }
 0x271   :  { %v1744_v47 = vadd.f32 %v1658_v37, %v6620_v30 }
 0x272   :  { %1825 = vrot.lane.b32.xlu1 %v6373_v27, %s4362_s3  ;;  %1827 = vrot.lane.b32.xlu0 %v6382_v19, %s4362_s3  ;;  %v6640_v27 = vmul.f32 %v6352_v52, %v6352_v52 }
 0x273   :  { %3580 = vmatmul.mubr.msk.f32.gmra.mrb[72].mxu1 %vm2059_vm0, %v1744_v47  ;;  %v6760_v47 = vmul.f32 %v6487_v22, %v6487_v22 }
 0x274   :  { %v1660_v44 = vpop.permute.xlu0 %1659 }
 0x275   :  { %v1745_v5 = vadd.f32 %v1660_v44, %v6630_v40  ;;  %v2573_v44 = vld [vmem:[%s7420_s4] sm:$0xff] }
 0x276   :  { %1829 = vrot.lane.b32.xlu1 %v6391_v59, %s4362_s3  ;;  %1831 = vrot.lane.b32.xlu0 %v6400_v63, %s4362_s3  ;;  %v6650_v59 = vmul.f32 %v6361_v20, %v6361_v20 }
 0x277   :  { %3582 = vmatprep.mubr.msk.f32.mxu1 %vm2059_vm0, %v1745_v5 }
 0x278   :  { %v1662_v19 = vpop.permute.xlu1 %1661 }
 0x279   :  { %v1746_v46 = vadd.f32 %v1662_v19, %v6640_v27  ;;  %v3935_v19 = vpack.c.bf16 %v2574_v57, %v2573_v44 }
 0x27a   :  { %1833 = vrot.lane.b32.xlu1 %v6409_v25, %s4362_s3  ;;  %1835 = vrot.lane.b32.xlu0 %v6418_v26, %s4362_s3  ;;  %v6660_v25 = vmul.f32 %v6370_v2, %v6370_v2 }
 0x27b   :  { %3583 = vmatmul.mubr.msk.f32.gmra.mrb[74].mxu1 %vm2059_vm0, %v1746_v46  ;;  %v7458_v46 = vld [vmem:[#allocation2_spill] sm:$0xff]  ;;  %3936 = vmatprep.subr.bf16.mxu1 %v3935_v19 }
 0x27c   :  { %v1664_v63 = vpop.permute.xlu0 %1663  ;;  %3938 = vmatpush3.bf16.msra.mxu1 %v3935_v19 }
 0x27d   :  { %v1747_v52 = vadd.f32 %v1664_v63, %v6650_v59  ;;  %v6772_v63 = vmul.f32 %v7458_v46, %v7458_v46 }
 0x27e   :  { %1837 = vrot.lane.b32.xlu1 %v6427_v21, %s4362_s3  ;;  %1839 = vrot.lane.b32.xlu0 %v6436_v29, %s4362_s3  ;;  %v6670_v21 = vmul.f32 %v6379_v6, %v6379_v6 }
 0x27f   :  { %3585 = vmatprep.mubr.msk.f32.mxu1 %vm2059_vm0, %v1747_v52 }
 0x280   :  { %v1666_v26 = vpop.permute.xlu1 %1665 }
 0x281   :  { %v1748_v20 = vadd.f32 %v1666_v26, %v6660_v25  ;;  %v7459_v26 = vld [vmem:[#allocation5_spill] sm:$0xff] }
 0x282   :  { %1841 = vrot.lane.b32.xlu1 %v6445_v39, %s4362_s3  ;;  %1843 = vrot.lane.b32.xlu0 %v6454_v14, %s4362_s3  ;;  %v6680_v39 = vmul.f32 %v6388_v17, %v6388_v17 }
 0x283   :  { %3586 = vmatmul.mubr.msk.f32.gmra.mrb[76].mxu1 %vm2059_vm0, %v1748_v20  ;;  %v6778_v20 = vmul.f32 %v7459_v26, %v7459_v26 }
 0x284   :  { %v1668_v29 = vpop.permute.xlu0 %1667 }
 0x285   :  { %v1749_v2 = vadd.f32 %v1668_v29, %v6670_v21 }
 0x286   :  { %1845 = vrot.lane.b32.xlu1 %v6463_v4, %s4362_s3  ;;  %1847 = vrot.lane.b32.xlu0 %v6472_v1, %s4362_s3  ;;  %v6690_v4 = vmul.f32 %v6397_v12, %v6397_v12 }
 0x287   :  { %3588 = vmatprep.mubr.msk.f32.mxu1 %vm2059_vm0, %v1749_v2 }
 0x288   :  { %v1670_v14 = vpop.permute.xlu1 %1669 }
 0x289   :  { %v1750_v6 = vadd.f32 %v1670_v14, %v6680_v39  ;;  %v6784_v14 = vmul.f32 %v6518_v61, %v6518_v61 }
 0x28a   :  { %1849 = vrot.lane.b32.xlu1 %v6481_v11, %s4362_s3  ;;  %1851 = vrot.lane.b32.xlu0 %v6490_v49, %s4362_s3  ;;  %v6700_v11 = vmul.f32 %v6406_v42, %v6406_v42 }
 0x28b   :  { %3589 = vmatmul.mubr.msk.f32.gmra.mrb[78].mxu1 %vm2059_vm0, %v1750_v6 }
 0x28c   :  { %v1672_v1 = vpop.permute.xlu0 %1671 }
 0x28d   :  { %v1751_v17 = vadd.f32 %v1672_v1, %v6690_v4 }
 0x28e   :  { %1853 = vrot.lane.b32.xlu1 %v6499_v41, %s4362_s3  ;;  %1855 = vrot.lane.b32.xlu0 %v6508_v55, %s4362_s3  ;;  %v6710_v41 = vmul.f32 %v6415_v34, %v6415_v34  ;;  %v6724_v34 = vmul.f32 %v6433_v60, %v6433_v60 }
 0x28f   :  { %3591 = vmatprep.mubr.msk.f32.mxu1 %vm2059_vm0, %v1751_v17  ;;  %v6790_v17 = vmul.f32 %v6533_v24, %v6533_v24 }
 0x290   :  { %v1674_v49 = vpop.permute.xlu1 %1673 }
 0x291   :  { %v1752_v12 = vadd.f32 %v1674_v49, %v6700_v11 }
 0x292   :  { %1857 = vrot.lane.b32.xlu1 %v6521_v48, %s4362_s3  ;;  %1859 = vrot.lane.b32.xlu0 %v6536_v62, %s4362_s3 }
 0x293   :  { %3592 = vmatmul.mubr.msk.f32.gmra.mrb[80].mxu1 %vm2059_vm0, %v1752_v12 }
 0x294   :  { %v1676_v55 = vpop.permute.xlu0 %1675 }
 0x295   :  { %v1753_v42 = vadd.f32 %v1676_v55, %v6710_v41  ;;  %v6796_v55 = vmul.f32 %v6548_v31, %v6548_v31 }
 0x296   :  { %1861 = vrot.lane.b32.xlu0 %v6551_v7, %s4362_s3  ;;  %v6730_v7 = vmul.f32 %v6442_v9, %v6442_v9 }
 0x297   :  { %3594 = vmatprep.mubr.msk.f32.mxu1 %vm2059_vm0, %v1753_v42 }
 0x298   :  { %v1678_v48 = vpop.permute.xlu1 %1677 }
 0x299   :  { %v1754_v62 = vadd.f32 %v1678_v48, %v6718_v35 }
 0x29b   :  { %3595 = vmatmul.mubr.msk.f32.gmra.mrb[82].mxu1 %vm2059_vm0, %v1754_v62  ;;  %v7460_v62 = vld [vmem:[#allocation3_spill] sm:$0xff] }
 0x29c   :  { %v1680_v45 = vpop.permute.xlu0 %1679 }
 0x29d   :  { %v1755_v13 = vadd.f32 %v1680_v45, %v6724_v34 }
 0x29f   :  { %3597 = vmatprep.mubr.msk.f32.mxu1 %vm2059_vm0, %v1755_v13 }
 0x2a0   :  { %v1682_v43 = vpop.permute.xlu1 %1681 }
 0x2a1   :  { %v1756_v23 = vadd.f32 %v1682_v43, %v6730_v7 }
 0x2a3   :  { %3598 = vmatmul.mubr.msk.f32.gmra.mrb[84].mxu1 %vm2059_vm0, %v1756_v23 }
 0x2a4   :  { %v1684_v60 = vpop.permute.xlu0 %1683 }
 0x2a5   :  { %v1757_v10 = vadd.f32 %v1684_v60, %v6736_v33 }
 0x2a7   :  { %3600 = vmatprep.mubr.msk.f32.mxu1 %vm2059_vm0, %v1757_v10  ;;  %v2575_v10 = vld [vmem:[%s7420_s4 + $0x10] sm:$0xff] }
 0x2a8   :  { %v1686_v9 = vpop.permute.xlu1 %1685 }
 0x2a9   :  { %v1758_v32 = vadd.f32 %v1686_v9, %v6742_v53 }
 0x2ab   :  { %3601 = vmatmul.mubr.msk.f32.gmra.mrb[86].mxu1 %vm2059_vm0, %v1758_v32 }
 0x2ac   :  { %v1688_v3 = vpop.permute.xlu0 %1687 }
 0x2ad   :  { %v1759_v54 = vadd.f32 %v1688_v3, %v6748_v18 }
 0x2af   :  { %3603 = vmatprep.mubr.msk.f32.mxu1 %vm2059_vm0, %v1759_v54 }
 0x2b0   :  { %v1690_v16 = vpop.permute.xlu1 %1689 }
 0x2b1   :  { %v1760_v37 = vadd.f32 %v1690_v16, %v6754_v38 }
 0x2b3   :  { %3604 = vmatmul.mubr.msk.f32.gmra.mrb[88].mxu1 %vm2059_vm0, %v1760_v37 }
 0x2b4   :  { %v1692_v28 = vpop.permute.xlu0 %1691 }
 0x2b5   :  { %v1761_v5 = vadd.f32 %v1692_v28, %v6760_v47 }
 0x2b7   :  { %3606 = vmatprep.mubr.msk.f32.mxu1 %vm2059_vm0, %v1761_v5 }
 0x2b8   :  { %v1694_v22 = vpop.permute.xlu1 %1693 }
 0x2b9   :  { %v1762_v52 = vadd.f32 %v1694_v22, %v6772_v63 }
 0x2bb   :  { %3607 = vmatmul.mubr.msk.f32.gmra.mrb[90].mxu1 %vm2059_vm0, %v1762_v52 }
 0x2bc   :  { %v1696_v29 = vpop.permute.xlu0 %1695 }
 0x2bd   :  { %v1763_v2 = vadd.f32 %v1696_v29, %v6778_v20 }
 0x2bf   :  { %3609 = vmatprep.mubr.msk.f32.mxu1 %vm2059_vm0, %v1763_v2 }
 0x2c0   :  { %v1698_v6 = vpop.permute.xlu1 %1697 }
 0x2c1   :  { %v1764_v1 = vadd.f32 %v1698_v6, %v6784_v14 }
 0x2c3   :  { %3610 = vmatmul.mubr.msk.f32.gmra.mrb[92].mxu1 %vm2059_vm0, %v1764_v1 }
 0x2c4   :  { %v1700_v49 = vpop.permute.xlu0 %1699 }
 0x2c5   :  { %v1765_v12 = vadd.f32 %v1700_v49, %v6790_v17 }
 0x2c7   :  { %3612 = vmatprep.mubr.msk.f32.mxu1 %vm2059_vm0, %v1765_v12 }
 0x2c8   :  { %v1702_v61 = vpop.permute.xlu1 %1701  ;;  %v1800_v42 = vpop.permute.xlu0 %1799 }
 0x2c9   :  { %v1766_v48 = vadd.f32 %v1702_v61, %v6796_v55  ;;  %v6801_v45 = vadd.f32 %v1800_v42, %v7460_v62 }
 0x2cb   :  { %1963 = vrot.lane.b32.xlu1 %v6801_v45, %s4363_s8  ;;  %3613 = vmatmul.mubr.msk.f32.gmra.mrb[94].mxu1 %vm2059_vm0, %v1766_v48 }
 0x2cc   :  { %v1802_v24 = vpop.permute.xlu1 %1801  ;;  %v1804_v13 = vpop.permute.xlu0 %1803 }
 0x2cd   :  { %v6807_v31 = vadd.f32 %v1802_v24, %v6530_v58  ;;  %v6810_v43 = vadd.f32 %v1804_v13, %v6545_v51  ;;  %v2576_v58 = vld [vmem:[%s7420_s4 + $0x18] sm:$0xff]  ;;  %s4364_s4 = smov 64  }
 0x2ce   :  { %v3939_v32 = vpack.c.bf16 %v2576_v58, %v2575_v10 }
 0x2cf   :  { %1967 = vrot.lane.b32.xlu0 %v6810_v43, %s4363_s8  ;;  %1965 = vrot.lane.b32.xlu1 %v6807_v31, %s4363_s8 }
 0x2d0   :  { %v1806_v23 = vpop.permute.xlu1 %1805  ;;  %v1808_v60 = vpop.permute.xlu0 %1807  ;;  %3940 = vmatprep.subr.bf16.mxu1 %v3939_v32 }
 0x2d1   :  { %v6823_v9 = vadd.f32 %v1806_v23, %v6560_v36  ;;  %v6826_v51 = vadd.f32 %v1808_v60, %v6570_v15  ;;  %3942 = vmatpush3.bf16.msra.mxu1 %v3939_v32 }
 0x2d3   :  { %1971 = vrot.lane.b32.xlu0 %v6826_v51, %s4363_s8  ;;  %1969 = vrot.lane.b32.xlu1 %v6823_v9, %s4363_s8 }
 0x2d4   :  { %v1810_v3 = vpop.permute.xlu1 %1809  ;;  %v1812_v54 = vpop.permute.xlu0 %1811 }
 0x2d5   :  { %v6833_v16 = vadd.f32 %v1810_v3, %v6580_v50  ;;  %v6836_v37 = vadd.f32 %v1812_v54, %v6590_v8 }
 0x2d7   :  { %1975 = vrot.lane.b32.xlu0 %v6836_v37, %s4363_s8  ;;  %1973 = vrot.lane.b32.xlu1 %v6833_v16, %s4363_s8 }
 0x2d8   :  { %v1814_v36 = vpop.permute.xlu1 %1813  ;;  %v1816_v15 = vpop.permute.xlu0 %1815 }
 0x2d9   :  { %v6843_v28 = vadd.f32 %v1814_v36, %v6600_v56  ;;  %v6846_v44 = vadd.f32 %v1816_v15, %v6610_v0 }
 0x2db   :  { %1979 = vrot.lane.b32.xlu0 %v6846_v44, %s4363_s8  ;;  %1977 = vrot.lane.b32.xlu1 %v6843_v28, %s4363_s8 }
 0x2dc   :  { %v1818_v50 = vpop.permute.xlu1 %1817  ;;  %v1820_v8 = vpop.permute.xlu0 %1819 }
 0x2dd   :  { %v6853_v57 = vadd.f32 %v1818_v50, %v6620_v30  ;;  %v6856_v5 = vadd.f32 %v1820_v8, %v6630_v40 }
 0x2df   :  { %1983 = vrot.lane.b32.xlu0 %v6856_v5, %s4363_s8  ;;  %1981 = vrot.lane.b32.xlu1 %v6853_v57, %s4363_s8 }
 0x2e0   :  { %v1822_v56 = vpop.permute.xlu1 %1821  ;;  %v1824_v0 = vpop.permute.xlu0 %1823 }
 0x2e1   :  { %v6863_v19 = vadd.f32 %v1822_v56, %v6640_v27  ;;  %v6866_v46 = vadd.f32 %v1824_v0, %v6650_v59 }
 0x2e3   :  { %1987 = vrot.lane.b32.xlu0 %v6866_v46, %s4363_s8  ;;  %1985 = vrot.lane.b32.xlu1 %v6863_v19, %s4363_s8 }
 0x2e4   :  { %v1826_v30 = vpop.permute.xlu1 %1825  ;;  %v1828_v40 = vpop.permute.xlu0 %1827 }
 0x2e5   :  { %v6873_v22 = vadd.f32 %v1826_v30, %v6660_v25  ;;  %v6876_v52 = vadd.f32 %v1828_v40, %v6670_v21 }
 0x2e7   :  { %1991 = vrot.lane.b32.xlu0 %v6876_v52, %s4363_s8  ;;  %1989 = vrot.lane.b32.xlu1 %v6873_v22, %s4363_s8 }
 0x2e8   :  { %v1830_v27 = vpop.permute.xlu1 %1829  ;;  %v1832_v59 = vpop.permute.xlu0 %1831 }
 0x2e9   :  { %v6883_v26 = vadd.f32 %v1830_v27, %v6680_v39  ;;  %v6886_v29 = vadd.f32 %v1832_v59, %v6690_v4 }
 0x2eb   :  { %1995 = vrot.lane.b32.xlu0 %v6886_v29, %s4363_s8  ;;  %1993 = vrot.lane.b32.xlu1 %v6883_v26, %s4363_s8 }
 0x2ec   :  { %v1834_v25 = vpop.permute.xlu1 %1833  ;;  %v1836_v21 = vpop.permute.xlu0 %1835 }
 0x2ed   :  { %v6893_v2 = vadd.f32 %v1834_v25, %v6700_v11  ;;  %v1913_v6 = vadd.f32 %v1836_v21, %v6710_v41 }
 0x2ef   :  { %1999 = vrot.lane.b32.xlu0 %v1913_v6, %s4363_s8  ;;  %1997 = vrot.lane.b32.xlu1 %v6893_v2, %s4363_s8 }
 0x2f0   :  { %v1838_v39 = vpop.permute.xlu1 %1837  ;;  %v1840_v4 = vpop.permute.xlu0 %1839 }
 0x2f1   :  { %v1914_v1 = vadd.f32 %v1838_v39, %v6718_v35  ;;  %v1915_v49 = vadd.f32 %v1840_v4, %v6724_v34 }
 0x2f3   :  { %2003 = vrot.lane.b32.xlu0 %v1915_v49, %s4363_s8  ;;  %2001 = vrot.lane.b32.xlu1 %v1914_v1, %s4363_s8 }
 0x2f4   :  { %v1842_v12 = vpop.permute.xlu1 %1841  ;;  %v1844_v11 = vpop.permute.xlu0 %1843 }
 0x2f5   :  { %v1916_v61 = vadd.f32 %v1842_v12, %v6730_v7  ;;  %v1917_v41 = vadd.f32 %v1844_v11, %v6736_v33 }
 0x2f7   :  { %2007 = vrot.lane.b32.xlu0 %v1917_v41, %s4363_s8  ;;  %2005 = vrot.lane.b32.xlu1 %v1916_v61, %s4363_s8 }
 0x2f8   :  { %v1846_v42 = vpop.permute.xlu1 %1845  ;;  %v1848_v48 = vpop.permute.xlu0 %1847 }
 0x2f9   :  { %v1918_v35 = vadd.f32 %v1846_v42, %v6742_v53  ;;  %v1919_v34 = vadd.f32 %v1848_v48, %v6748_v18 }
 0x2fb   :  { %2011 = vrot.lane.b32.xlu0 %v1919_v34, %s4363_s8  ;;  %2009 = vrot.lane.b32.xlu1 %v1918_v35, %s4363_s8 }
 0x2fc   :  { %v1850_v62 = vpop.permute.xlu1 %1849  ;;  %v1852_v24 = vpop.permute.xlu0 %1851 }
 0x2fd   :  { %v1920_v7 = vadd.f32 %v1850_v62, %v6754_v38  ;;  %v1921_v33 = vadd.f32 %v1852_v24, %v6760_v47 }
 0x2ff   :  { %2015 = vrot.lane.b32.xlu0 %v1921_v33, %s4363_s8  ;;  %2013 = vrot.lane.b32.xlu1 %v1920_v7, %s4363_s8 }
 0x300   :  { %v1854_v13 = vpop.permute.xlu1 %1853  ;;  %v1856_v23 = vpop.permute.xlu0 %1855 }
 0x301   :  { %v1922_v53 = vadd.f32 %v1854_v13, %v6772_v63  ;;  %v1923_v18 = vadd.f32 %v1856_v23, %v6778_v20 }
 0x303   :  { %2019 = vrot.lane.b32.xlu0 %v1923_v18, %s4363_s8  ;;  %2017 = vrot.lane.b32.xlu1 %v1922_v53, %s4363_s8 }
 0x304   :  { %v1858_v60 = vpop.permute.xlu1 %1857  ;;  %v1860_v10 = vpop.permute.xlu0 %1859 }
 0x305   :  { %v6920_v38 = vadd.f32 %v1858_v60, %v6784_v14  ;;  %v1925_v47 = vadd.f32 %v1860_v10, %v6790_v17 }
 0x307   :  { %2023 = vrot.lane.b32.xlu0 %v1925_v47, %s4363_s8  ;;  %2021 = vrot.lane.b32.xlu1 %v6920_v38, %s4363_s8 }
 0x308   :  { %v1862_v58 = vpop.permute.xlu0 %1861 }
 0x309   :  { %v6927_v63 = vadd.f32 %v1862_v58, %v6796_v55 }
 0x30b   :  { %2577 = vrot.lane.b32.xlu0 %v6801_v45, %s4364_s4  ;;  %2025 = vrot.lane.b32.xlu1 %v6927_v63, %s4363_s8 }
 0x30f   :  { %2581 = vrot.lane.b32.xlu0 %v6810_v43, %s4364_s4  ;;  %2579 = vrot.lane.b32.xlu1 %v6807_v31, %s4364_s4 }
 0x313   :  { %2585 = vrot.lane.b32.xlu0 %v6826_v51, %s4364_s4  ;;  %2583 = vrot.lane.b32.xlu1 %v6823_v9, %s4364_s4 }
 0x317   :  { %2589 = vrot.lane.b32.xlu0 %v6836_v37, %s4364_s4  ;;  %2587 = vrot.lane.b32.xlu1 %v6833_v16, %s4364_s4 }
 0x31b   :  { %2593 = vrot.lane.b32.xlu0 %v6846_v44, %s4364_s4  ;;  %2591 = vrot.lane.b32.xlu1 %v6843_v28, %s4364_s4 }
 0x31f   :  { %2597 = vrot.lane.b32.xlu0 %v6856_v5, %s4364_s4  ;;  %2595 = vrot.lane.b32.xlu1 %v6853_v57, %s4364_s4 }
 0x323   :  { %2601 = vrot.lane.b32.xlu0 %v6866_v46, %s4364_s4  ;;  %2599 = vrot.lane.b32.xlu1 %v6863_v19, %s4364_s4 }
 0x326   :  { %v3569_v20 = vpop.f32.mrb[64].mxu1 }
 0x327   :  { %2605 = vrot.lane.b32.xlu0 %v6876_v52, %s4364_s4  ;;  %2603 = vrot.lane.b32.xlu1 %v6873_v22, %s4364_s4  ;;  %v2222_v14 = vpop.f32.mrb[65].mxu1 }
 0x32b   :  { %2609 = vrot.lane.b32.xlu0 %v6886_v29, %s4364_s4  ;;  %2607 = vrot.lane.b32.xlu1 %v6883_v26, %s4364_s4 }
 0x32e   :  { %v3572_v17 = vpop.f32.mrb[66].mxu1 }
 0x32f   :  { %2613 = vrot.lane.b32.xlu0 %v1913_v6, %s4364_s4  ;;  %2611 = vrot.lane.b32.xlu1 %v6893_v2, %s4364_s4  ;;  %v2232_v55 = vpop.f32.mrb[67].mxu1 }
 0x333   :  { %2617 = vrot.lane.b32.xlu0 %v1915_v49, %s4364_s4  ;;  %2615 = vrot.lane.b32.xlu1 %v1914_v1, %s4364_s4 }
 0x336   :  { %v3575_v45 = vpop.f32.mrb[68].mxu1 }
 0x337   :  { %2621 = vrot.lane.b32.xlu0 %v1917_v41, %s4364_s4  ;;  %2619 = vrot.lane.b32.xlu1 %v1916_v61, %s4364_s4  ;;  %v2242_v31 = vpop.f32.mrb[69].mxu1 }
 0x33b   :  { %2625 = vrot.lane.b32.xlu0 %v1919_v34, %s4364_s4  ;;  %2623 = vrot.lane.b32.xlu1 %v1918_v35, %s4364_s4 }
 0x33d   :  { %v1964_v43 = vpop.permute.xlu1 %1963 }
 0x33e   :  { %v2223_v9 = vadd.f32 %v2222_v14, %v1964_v43  ;;  %v3578_v51 = vpop.f32.mrb[70].mxu1 }
 0x33f   :  { %2629 = vrot.lane.b32.xlu0 %v1921_v33, %s4364_s4  ;;  %2627 = vrot.lane.b32.xlu1 %v1920_v7, %s4364_s4  ;;  %v2252_v32 = vpop.f32.mrb[71].mxu1 }
 0x340   :  { %v2413_v3 = vmin.f32 %v2223_v9, 0.0  ;;  %vm2381_vm1 = vcmp.gt.f32.partialorder %v2223_v9, 0.0 }
 0x341   :  { %v1968_v54 = vpop.permute.xlu0 %1967  ;;  %v1966_v16 = vpop.permute.xlu1 %1965 }
 0x342   :  { %v2445_v37 = vmul.f32 1.442695, %v2413_v3  ;;  %v6976_v36 = vadd.f32 %v2232_v55, %v1968_v54  ;;  %v6978_v15 = vadd.f32 %v3569_v20, %v1966_v16 }
 0x343   :  { %2633 = vrot.lane.b32.xlu0 %v1923_v18, %s4364_s4  ;;  %2631 = vrot.lane.b32.xlu1 %v1922_v53, %s4364_s4 }
 0x344   :  { %4234 = vpow2.f32 %v2445_v37  ;;  %v2415_v28 = vmin.f32 %v6976_v36, 0.0  ;;  %v2414_v44 = vmin.f32 %v6978_v15, 0.0  ;;  %vm2383_vm2 = vcmp.gt.f32.partialorder %v6976_v36, 0.0 }
 0x345   :  { %v1972_v50 = vpop.permute.xlu0 %1971  ;;  %v1970_v8 = vpop.permute.xlu1 %1969  ;;  %vm2382_vm3 = vcmp.gt.f32.partialorder %v6978_v15, 0.0 }
 0x346   :  { %v2449_v57 = vmul.f32 1.442695, %v2415_v28  ;;  %v6984_v5 = vadd.f32 %v2242_v31, %v1972_v50  ;;  %v6986_v56 = vadd.f32 %v3572_v17, %v1970_v8  ;;  %v3581_v0 = vpop.f32.mrb[72].mxu1  ;;  %v2447_v19 = vmul.f32 1.442695, %v2414_v44 }
 0x347   :  { %2637 = vrot.lane.b32.xlu0 %v1925_v47, %s4364_s4  ;;  %2635 = vrot.lane.b32.xlu1 %v6920_v38, %s4364_s4  ;;  %v2262_v46 = vpop.f32.mrb[73].mxu1 }
 0x348   :  { %4236 = vpow2.f32 %v2449_v57  ;;  %v2417_v30 = vmin.f32 %v6984_v5, 0.0  ;;  %v2416_v40 = vmin.f32 %v6986_v56, 0.0  ;;  %vm2385_vm4 = vcmp.gt.f32.partialorder %v6984_v5, 0.0 }
 0x349   :  { %4238 = vpow2.f32 %v2447_v19  ;;  %v1976_v22 = vpop.permute.xlu0 %1975  ;;  %v1974_v52 = vpop.permute.xlu1 %1973  ;;  %vm2384_vm5 = vcmp.gt.f32.partialorder %v6986_v56, 0.0 }
 0x34a   :  { %v2453_v27 = vmul.f32 1.442695, %v2417_v30  ;;  %v6993_v59 = vadd.f32 %v2252_v32, %v1976_v22  ;;  %v6995_v26 = vadd.f32 %v3575_v45, %v1974_v52  ;;  %v2451_v29 = vmul.f32 1.442695, %v2416_v40 }
 0x34b   :  { %2639 = vrot.lane.b32.xlu1 %v6927_v63, %s4364_s4 }
 0x34c   :  { %4240 = vpow2.f32 %v2453_v27  ;;  %v2419_v25 = vmin.f32 %v6993_v59, 0.0  ;;  %v2418_v21 = vmin.f32 %v6995_v26, 0.0  ;;  %vm2387_vm6 = vcmp.gt.f32.partialorder %v6993_v59, 0.0 }
 0x34d   :  { %4242 = vpow2.f32 %v2451_v29  ;;  %v1980_v2 = vpop.permute.xlu0 %1979  ;;  %v1978_v6 = vpop.permute.xlu1 %1977  ;;  %vm2386_vm7 = vcmp.gt.f32.partialorder %v6995_v26, 0.0 }
 0x34e   :  { %v4235_v39 = vpop.eup %4234  ;;  %v2457_v4 = vmul.f32 1.442695, %v2419_v25  ;;  %v7001_v1 = vadd.f32 %v2262_v46, %v1980_v2  ;;  %v7003_v49 = vadd.f32 %v3578_v51, %v1978_v6  ;;  %v3584_v12 = vpop.f32.mrb[74].mxu1  ;;  %v2455_v11 = vmul.f32 1.442695, %v2418_v21 }
 0x34f   :  { %v2272_v61 = vpop.f32.mrb[75].mxu1  ;;  %v3390_v41 = vadd.f32 -1.0, %v4235_v39 }
 0x350   :  { %4244 = vpow2.f32 %v2457_v4  ;;  %v2421_v42 = vmin.f32 %v7001_v1, 0.0  ;;  %v2420_v48 = vmin.f32 %v7003_v49, 0.0  ;;  %vm2389_vm8 = vcmp.gt.f32.partialorder %v7001_v1, 0.0 }
 0x351   :  { %4246 = vpow2.f32 %v2455_v11  ;;  %v1984_v35 = vpop.permute.xlu0 %1983  ;;  %v1982_v34 = vpop.permute.xlu1 %1981  ;;  %v2541_v62 = vsel %vm2381_vm1, %v2223_v9, %v3390_v41  ;;  %vm2388_vm9 = vcmp.gt.f32.partialorder %v7003_v49, 0.0 }
 0x352   :  { %v4237_v24 = vpop.eup %4236  ;;  %v2461_v7 = vmul.f32 1.442695, %v2421_v42  ;;  %v7007_v33 = vadd.f32 %v2272_v61, %v1984_v35  ;;  %v7009_v13 = vadd.f32 %v3581_v0, %v1982_v34  ;;  %3623 = vmatprep.mubr.msk.f32.mxu1 %vm2059_vm0, %v2541_v62  ;;  %v2459_v53 = vmul.f32 1.442695, %v2420_v48 }
 0x353   :  { %v4239_v23 = vpop.eup %4238  ;;  %v3392_v18 = vadd.f32 -1.0, %v4237_v24 }
 0x354   :  { %v3391_v60 = vadd.f32 -1.0, %v4239_v23  ;;  %4248 = vpow2.f32 %v2461_v7  ;;  %v2423_v10 = vmin.f32 %v7007_v33, 0.0  ;;  %v2422_v38 = vmin.f32 %v7009_v13, 0.0 }
 0x355   :  { %4250 = vpow2.f32 %v2459_v53  ;;  %v1986_v47 = vpop.permute.xlu1 %1985  ;;  %v2543_v58 = vsel %vm2383_vm2, %v6976_v36, %v3392_v18  ;;  %v1988_v43 = vpop.permute.xlu0 %1987  ;;  %vm2391_vm10 = vcmp.gt.f32.partialorder %v7007_v33, 0.0  ;;  %vm2390_vm11 = vcmp.gt.f32.partialorder %v7009_v13, 0.0 }
 0x356   :  { %v4241_v63 = vpop.eup %4240  ;;  %v2542_v20 = vsel %vm2382_vm3, %v6978_v15, %v3391_v60  ;;  %v2465_v14 = vmul.f32 1.442695, %v2423_v10  ;;  %v7018_v17 = vadd.f32 %v3584_v12, %v1986_v47  ;;  %v3587_v55 = vpop.f32.mrb[76].mxu1  ;;  %v2463_v31 = vmul.f32 1.442695, %v2422_v38 }
 0x357   :  { %v4243_v45 = vpop.eup %4242  ;;  %3624 = vmatmul.mubr.msk.f32.vlgmr.msra.gmra.mrb[96].mxu1 %vm2059_vm0, %v2542_v20  ;;  %v2282_v9 = vpop.f32.mrb[77].mxu1  ;;  %v3394_v51 = vadd.f32 -1.0, %v4241_v63 }
 0x358   :  { %4252 = vpow2.f32 %v2465_v14  ;;  %v2424_v32 = vmin.f32 %v7018_v17, 0.0  ;;  %v7022_v3 = vadd.f32 %v2282_v9, %v1988_v43  ;;  %3626 = vmatprep.mubr.msk.f32.mxu1 %vm2059_vm0, %v2543_v58  ;;  %v3393_v16 = vadd.f32 -1.0, %v4243_v45 }
 0x359   :  { %4254 = vpow2.f32 %v2463_v31  ;;  %v1990_v54 = vpop.permute.xlu1 %1989  ;;  %v2545_v44 = vsel %vm2385_vm4, %v6984_v5, %v3394_v51  ;;  %v1992_v27 = vpop.permute.xlu0 %1991  ;;  %vm2392_vm12 = vcmp.gt.f32.partialorder %v7018_v17, 0.0 }
 0x35a   :  { %v4245_v37 = vpop.eup %4244  ;;  %v2467_v36 = vmul.f32 1.442695, %v2424_v32  ;;  %v2425_v15 = vmin.f32 %v7022_v3, 0.0  ;;  %v7028_v28 = vadd.f32 %v3587_v55, %v1990_v54  ;;  %v2544_v8 = vsel %vm2384_vm5, %v6986_v56, %v3393_v16 }
 0x35b   :  { %v4247_v50 = vpop.eup %4246  ;;  %v3396_v57 = vadd.f32 -1.0, %v4245_v37  ;;  %3627 = vmatmul.mubr.msk.f32.gmra.mrb[98].mxu1 %vm2059_vm0, %v2544_v8  ;;  %vm2393_vm13 = vcmp.gt.f32.partialorder %v7022_v3, 0.0 }
 0x35c   :  { %4256 = vpow2.f32 %v2467_v36  ;;  %v2469_v0 = vmul.f32 1.442695, %v2425_v15  ;;  %v2426_v19 = vmin.f32 %v7028_v28, 0.0  ;;  %3629 = vmatprep.mubr.msk.f32.mxu1 %vm2059_vm0, %v2545_v44  ;;  %v3395_v30 = vadd.f32 -1.0, %v4247_v50 }
 0x35d   :  { %v1994_v46 = vpop.permute.xlu1 %1993  ;;  %v2547_v56 = vsel %vm2387_vm6, %v6993_v59, %v3396_v57  ;;  %v1996_v7 = vpop.permute.xlu0 %1995  ;;  %vm2394_vm14 = vcmp.gt.f32.partialorder %v7028_v28, 0.0 }
 0x35e   :  { %v4249_v40 = vpop.eup %4248  ;;  %4258 = vpow2.f32 %v2469_v0  ;;  %v2471_v5 = vmul.f32 1.442695, %v2426_v19  ;;  %v3590_v22 = vpop.f32.mrb[78].mxu1  ;;  %v2546_v25 = vsel %vm2386_vm7, %v6995_v26, %v3395_v30 }
 0x35f   :  { %v4251_v52 = vpop.eup %4250  ;;  %v7038_v29 = vadd.f32 %v3590_v22, %v1994_v46  ;;  %v2292_v21 = vpop.f32.mrb[79].mxu1  ;;  %v3398_v2 = vadd.f32 -1.0, %v4249_v40  ;;  %3630 = vmatmul.mubr.msk.f32.gmra.mrb[100].mxu1 %vm2059_vm0, %v2546_v25 }
 0x360   :  { %4260 = vpow2.f32 %v2471_v5  ;;  %v7042_v6 = vadd.f32 %v2292_v21, %v1992_v27  ;;  %v3397_v39 = vadd.f32 -1.0, %v4251_v52  ;;  %3632 = vmatprep.mubr.msk.f32.mxu1 %vm2059_vm0, %v2547_v56 }
 0x361   :  { %v2428_v59 = vmin.f32 %v7038_v29, 0.0  ;;  %v2549_v11 = vsel %vm2389_vm8, %v7001_v1, %v3398_v2  ;;  %v1998_v62 = vpop.permute.xlu1 %1997  ;;  %v2000_v9 = vpop.permute.xlu0 %1999  ;;  %vm2396_vm1 = vcmp.gt.f32.partialorder %v7038_v29, 0.0 }
 0x362   :  { %v4253_v4 = vpop.eup %4252  ;;  %v2427_v12 = vmin.f32 %v7042_v6, 0.0  ;;  %v2548_v26 = vsel %vm2388_vm9, %v7003_v49, %v3397_v39  ;;  %vm2395_vm15 = vcmp.gt.f32.partialorder %v7042_v6, 0.0 }
 0x363   :  { %v4255_v61 = vpop.eup %4254  ;;  %v2475_v41 = vmul.f32 1.442695, %v2428_v59  ;;  %v3400_v42 = vadd.f32 -1.0, %v4253_v4  ;;  %3633 = vmatmul.mubr.msk.f32.gmra.mrb[102].mxu1 %vm2059_vm0, %v2548_v26 }
 0x364   :  { %v2473_v48 = vmul.f32 1.442695, %v2427_v12  ;;  %v3399_v35 = vadd.f32 -1.0, %v4255_v61  ;;  %3635 = vmatprep.mubr.msk.f32.mxu1 %vm2059_vm0, %v2549_v11 }
 0x365   :  { %4262 = vpow2.f32 %v2475_v41  ;;  %v2551_v24 = vsel %vm2391_vm10, %v7007_v33, %v3400_v42  ;;  %v2004_v46 = vpop.permute.xlu0 %2003 }
 0x366   :  { %v4257_v34 = vpop.eup %4256  ;;  %4264 = vpow2.f32 %v2473_v48  ;;  %v3593_v49 = vpop.f32.mrb[80].mxu1  ;;  %v2550_v1 = vsel %vm2390_vm11, %v7009_v13, %v3399_v35 }
 0x367   :  { %v7057_v23 = vadd.f32 %v3593_v49, %v1998_v62  ;;  %v2302_v53 = vpop.f32.mrb[81].mxu1  ;;  %v3401_v18 = vadd.f32 -1.0, %v4257_v34  ;;  %3636 = vmatmul.mubr.msk.f32.gmra.mrb[104].mxu1 %vm2059_vm0, %v2550_v1 }
 0x368   :  { %v4259_v60 = vpop.eup %4258  ;;  %v2303_v10 = vadd.f32 %v2302_v53, %v1996_v7  ;;  %3638 = vmatprep.mubr.msk.f32.mxu1 %vm2059_vm0, %v2551_v24 }
 0x369   :  { %v2430_v38 = vmin.f32 %v7057_v23, 0.0  ;;  %v2552_v47 = vsel %vm2392_vm12, %v7018_v17, %v3401_v18  ;;  %v3402_v13 = vadd.f32 -1.0, %v4259_v60  ;;  %v2002_v17 = vpop.permute.xlu1 %2001  ;;  %vm2398_vm3 = vcmp.gt.f32.partialorder %v7057_v23, 0.0  ;;  %v2008_v12 = vpop.permute.xlu0 %2007 }
 0x36a   :  { %v4261_v58 = vpop.eup %4260  ;;  %v2429_v33 = vmin.f32 %v2303_v10, 0.0  ;;  %vm2397_vm2 = vcmp.gt.f32.partialorder %v2303_v10, 0.0 }
 0x36b   :  { %v2479_v63 = vmul.f32 1.442695, %v2430_v38  ;;  %v2553_v20 = vsel %vm2393_vm13, %v7022_v3, %v3402_v13  ;;  %v3403_v14 = vadd.f32 -1.0, %v4261_v58  ;;  %3639 = vmatmul.mubr.msk.f32.gmra.mrb[106].mxu1 %vm2059_vm0, %v2552_v47 }
 0x36c   :  { %v2477_v55 = vmul.f32 1.442695, %v2429_v33  ;;  %3641 = vmatprep.mubr.msk.f32.mxu1 %vm2059_vm0, %v2553_v20 }
 0x36d   :  { %4266 = vpow2.f32 %v2479_v63  ;;  %v2554_v45 = vsel %vm2394_vm14, %v7028_v28, %v3403_v14  ;;  %v2006_v57 = vpop.permute.xlu1 %2005  ;;  %v2012_v18 = vpop.permute.xlu0 %2011 }
 0x36e   :  { %4268 = vpow2.f32 %v2477_v55  ;;  %v3596_v31 = vpop.f32.mrb[82].mxu1 }
 0x36f   :  { %v4263_v43 = vpop.eup %4262  ;;  %v2318_v51 = vadd.f32 %v3596_v31, %v2002_v17  ;;  %v2312_v32 = vpop.f32.mrb[83].mxu1  ;;  %3642 = vmatmul.mubr.msk.f32.gmra.mrb[108].mxu1 %vm2059_vm0, %v2554_v45 }
 0x370   :  { %v4265_v54 = vpop.eup %4264  ;;  %v2313_v3 = vadd.f32 %v2312_v32, %v2000_v9  ;;  %v3405_v16 = vadd.f32 -1.0, %v4263_v43 }
 0x371   :  { %v2432_v37 = vmin.f32 %v2318_v51, 0.0  ;;  %v3404_v36 = vadd.f32 -1.0, %v4265_v54  ;;  %v2010_v39 = vpop.permute.xlu1 %2009  ;;  %vm2400_vm5 = vcmp.gt.f32.partialorder %v2318_v51, 0.0  ;;  %v2016_v9 = vpop.permute.xlu0 %2015 }
 0x372   :  { %v2431_v15 = vmin.f32 %v2313_v3, 0.0  ;;  %v2556_v8 = vsel %vm2396_vm1, %v7038_v29, %v3405_v16  ;;  %vm2399_vm4 = vcmp.gt.f32.partialorder %v2313_v3, 0.0 }
 0x373   :  { %v2483_v28 = vmul.f32 1.442695, %v2432_v37  ;;  %v2555_v44 = vsel %vm2395_vm15, %v7042_v6, %v3404_v36 }
 0x374   :  { %v2481_v50 = vmul.f32 1.442695, %v2431_v15  ;;  %3644 = vmatprep.mubr.msk.f32.mxu1 %vm2059_vm0, %v2555_v44 }
 0x375   :  { %4270 = vpow2.f32 %v2483_v28  ;;  %3645 = vmatmul.mubr.msk.f32.gmra.mrb[110].mxu1 %vm2059_vm0, %v2556_v8  ;;  %v2014_v7 = vpop.permute.xlu1 %2013 }
 0x376   :  { %4272 = vpow2.f32 %v2481_v50  ;;  %v3599_v0 = vpop.f32.mrb[84].mxu1 }
 0x377   :  { %v4267_v19 = vpop.eup %4266  ;;  %v2328_v30 = vadd.f32 %v3599_v0, %v2006_v57  ;;  %v2322_v40 = vpop.f32.mrb[85].mxu1 }
 0x378   :  { %v4269_v5 = vpop.eup %4268  ;;  %v2323_v22 = vadd.f32 %v2322_v40, %v2004_v46  ;;  %v3407_v56 = vadd.f32 -1.0, %v4267_v19  ;;  %v2020_v46 = vpop.permute.xlu0 %2019 }
 0x379   :  { %v2434_v52 = vmin.f32 %v2328_v30, 0.0  ;;  %v3406_v27 = vadd.f32 -1.0, %v4269_v5  ;;  %vm2402_vm7 = vcmp.gt.f32.partialorder %v2328_v30, 0.0  ;;  %v2018_v17 = vpop.permute.xlu1 %2017 }
 0x37a   :  { %v2433_v25 = vmin.f32 %v2323_v22, 0.0  ;;  %v2558_v6 = vsel %vm2398_vm3, %v7057_v23, %v3407_v56  ;;  %vm2401_vm6 = vcmp.gt.f32.partialorder %v2323_v22, 0.0 }
 0x37b   :  { %v2487_v29 = vmul.f32 1.442695, %v2434_v52  ;;  %v2557_v21 = vsel %vm2397_vm2, %v2303_v10, %v3406_v27 }
 0x37c   :  { %v2485_v2 = vmul.f32 1.442695, %v2433_v25  ;;  %3647 = vmatprep.mubr.msk.f32.mxu1 %vm2059_vm0, %v2557_v21 }
 0x37d   :  { %4274 = vpow2.f32 %v2487_v29  ;;  %3648 = vmatmul.mubr.msk.f32.gmra.mrb[112].mxu1 %vm2059_vm0, %v2558_v6  ;;  %v2022_v57 = vpop.permute.xlu1 %2021 }
 0x37e   :  { %4276 = vpow2.f32 %v2485_v2  ;;  %v3602_v59 = vpop.f32.mrb[86].mxu1 }
 0x37f   :  { %v4271_v4 = vpop.eup %4270  ;;  %v2338_v26 = vadd.f32 %v3602_v59, %v2010_v39  ;;  %v2332_v11 = vpop.f32.mrb[87].mxu1 }
 0x380   :  { %v4273_v61 = vpop.eup %4272  ;;  %v2333_v41 = vadd.f32 %v2332_v11, %v2008_v12  ;;  %v3409_v42 = vadd.f32 -1.0, %v4271_v4  ;;  %v2024_v12 = vpop.permute.xlu0 %2023 }
 0x381   :  { %v2436_v48 = vmin.f32 %v2338_v26, 0.0  ;;  %v3408_v35 = vadd.f32 -1.0, %v4273_v61  ;;  %vm2404_vm9 = vcmp.gt.f32.partialorder %v2338_v26, 0.0  ;;  %v2026_v39 = vpop.permute.xlu1 %2025 }
 0x382   :  { %v2435_v34 = vmin.f32 %v2333_v41, 0.0  ;;  %v2560_v24 = vsel %vm2400_vm5, %v2318_v51, %v3409_v42  ;;  %vm2403_vm8 = vcmp.gt.f32.partialorder %v2333_v41, 0.0 }
 0x383   :  { %v2491_v62 = vmul.f32 1.442695, %v2436_v48  ;;  %v2559_v49 = vsel %vm2399_vm4, %v2313_v3, %v3408_v35 }
 0x384   :  { %v2489_v1 = vmul.f32 1.442695, %v2435_v34  ;;  %3650 = vmatprep.mubr.msk.f32.mxu1 %vm2059_vm0, %v2559_v49 }
 0x385   :  { %4278 = vpow2.f32 %v2491_v62  ;;  %3651 = vmatmul.mubr.msk.f32.gmra.mrb[114].mxu1 %vm2059_vm0, %v2560_v24 }
 0x386   :  { %4280 = vpow2.f32 %v2489_v1  ;;  %v3605_v23 = vpop.f32.mrb[88].mxu1 }
 0x387   :  { %v4275_v53 = vpop.eup %4274  ;;  %v2348_v60 = vadd.f32 %v3605_v23, %v2014_v7  ;;  %v2342_v10 = vpop.f32.mrb[89].mxu1 }
 0x388   :  { %v4277_v38 = vpop.eup %4276  ;;  %v2343_v47 = vadd.f32 %v2342_v10, %v2012_v18  ;;  %v3411_v13 = vadd.f32 -1.0, %v4275_v53 }
 0x389   :  { %v2438_v58 = vmin.f32 %v2348_v60, 0.0  ;;  %v3410_v33 = vadd.f32 -1.0, %v4277_v38  ;;  %vm2406_vm11 = vcmp.gt.f32.partialorder %v2348_v60, 0.0 }
 0x38a   :  { %v2437_v63 = vmin.f32 %v2343_v47, 0.0  ;;  %v2562_v45 = vsel %vm2402_vm7, %v2328_v30, %v3411_v13  ;;  %vm2405_vm10 = vcmp.gt.f32.partialorder %v2343_v47, 0.0 }
 0x38b   :  { %v2495_v20 = vmul.f32 1.442695, %v2438_v58  ;;  %v2561_v14 = vsel %vm2401_vm6, %v2323_v22, %v3410_v33 }
 0x38c   :  { %v2493_v55 = vmul.f32 1.442695, %v2437_v63  ;;  %3653 = vmatprep.mubr.msk.f32.mxu1 %vm2059_vm0, %v2561_v14  ;;  %v2578_v14 = vpop.permute.xlu0 %2577 }
 0x38d   :  { %4282 = vpow2.f32 %v2495_v20  ;;  %3654 = vmatmul.mubr.msk.f32.gmra.mrb[116].mxu1 %vm2059_vm0, %v2562_v45  ;;  %v2580_v20 = vpop.permute.xlu1 %2579 }
 0x38e   :  { %4284 = vpow2.f32 %v2493_v55  ;;  %v3608_v31 = vpop.f32.mrb[90].mxu1 }
 0x38f   :  { %v4279_v43 = vpop.eup %4278  ;;  %v2358_v51 = vadd.f32 %v3608_v31, %v2018_v17  ;;  %v2352_v32 = vpop.f32.mrb[91].mxu1 }
 0x390   :  { %v4281_v54 = vpop.eup %4280  ;;  %v2353_v3 = vadd.f32 %v2352_v32, %v2016_v9  ;;  %v3413_v16 = vadd.f32 -1.0, %v4279_v43  ;;  %v2582_v45 = vpop.permute.xlu0 %2581 }
 0x391   :  { %v2440_v37 = vmin.f32 %v2358_v51, 0.0  ;;  %v3412_v36 = vadd.f32 -1.0, %v4281_v54  ;;  %vm2408_vm13 = vcmp.gt.f32.partialorder %v2358_v51, 0.0  ;;  %v2584_v55 = vpop.permute.xlu1 %2583 }
 0x392   :  { %v2439_v15 = vmin.f32 %v2353_v3, 0.0  ;;  %v2564_v8 = vsel %vm2404_vm9, %v2338_v26, %v3413_v16  ;;  %vm2407_vm12 = vcmp.gt.f32.partialorder %v2353_v3, 0.0 }
 0x393   :  { %v2499_v28 = vmul.f32 1.442695, %v2440_v37  ;;  %v2563_v44 = vsel %vm2403_vm8, %v2333_v41, %v3412_v36 }
 0x394   :  { %v2497_v50 = vmul.f32 1.442695, %v2439_v15  ;;  %3656 = vmatprep.mubr.msk.f32.mxu1 %vm2059_vm0, %v2563_v44  ;;  %v2586_v43 = vpop.permute.xlu0 %2585 }
 0x395   :  { %4286 = vpow2.f32 %v2499_v28  ;;  %3657 = vmatmul.mubr.msk.f32.gmra.mrb[118].mxu1 %vm2059_vm0, %v2564_v8  ;;  %v2588_v17 = vpop.permute.xlu1 %2587 }
 0x396   :  { %4288 = vpow2.f32 %v2497_v50  ;;  %v3611_v0 = vpop.f32.mrb[92].mxu1 }
 0x397   :  { %v4283_v19 = vpop.eup %4282  ;;  %v2368_v30 = vadd.f32 %v3611_v0, %v2022_v57  ;;  %v2362_v40 = vpop.f32.mrb[93].mxu1 }
 0x398   :  { %v4285_v5 = vpop.eup %4284  ;;  %v2363_v22 = vadd.f32 %v2362_v40, %v2020_v46  ;;  %v3415_v56 = vadd.f32 -1.0, %v4283_v19  ;;  %v2590_v50 = vpop.permute.xlu0 %2589 }
 0x399   :  { %v2442_v52 = vmin.f32 %v2368_v30, 0.0  ;;  %v3414_v27 = vadd.f32 -1.0, %v4285_v5  ;;  %vm2410_vm15 = vcmp.gt.f32.partialorder %v2368_v30, 0.0  ;;  %v2592_v36 = vpop.permute.xlu1 %2591 }
 0x39a   :  { %v2441_v25 = vmin.f32 %v2363_v22, 0.0  ;;  %v2566_v6 = vsel %vm2406_vm11, %v2348_v60, %v3415_v56  ;;  %vm2409_vm14 = vcmp.gt.f32.partialorder %v2363_v22, 0.0 }
 0x39b   :  { %v2503_v29 = vmul.f32 1.442695, %v2442_v52  ;;  %v2565_v21 = vsel %vm2405_vm10, %v2343_v47, %v3414_v27 }
 0x39c   :  { %v2501_v2 = vmul.f32 1.442695, %v2441_v25  ;;  %3659 = vmatprep.mubr.msk.f32.mxu1 %vm2059_vm0, %v2565_v21  ;;  %v2594_v27 = vpop.permute.xlu0 %2593 }
 0x39d   :  { %4290 = vpow2.f32 %v2503_v29  ;;  %3660 = vmatmul.mubr.msk.f32.gmra.mrb[120].mxu1 %vm2059_vm0, %v2566_v6  ;;  %v2596_v56 = vpop.permute.xlu1 %2595 }
 0x39e   :  { %4292 = vpow2.f32 %v2501_v2  ;;  %v3614_v59 = vpop.f32.mrb[94].mxu1 }
 0x39f   :  { %v4287_v4 = vpop.eup %4286  ;;  %v2378_v26 = vadd.f32 %v3614_v59, %v2026_v39  ;;  %v2372_v11 = vpop.f32.mrb[95].mxu1 }
 0x3a0   :  { %v4289_v61 = vpop.eup %4288  ;;  %v2373_v41 = vadd.f32 %v2372_v11, %v2024_v12  ;;  %v3417_v42 = vadd.f32 -1.0, %v4287_v4 }
 0x3a1   :  { %v2444_v48 = vmin.f32 %v2378_v26, 0.0  ;;  %v3416_v35 = vadd.f32 -1.0, %v4289_v61  ;;  %vm2412_vm2 = vcmp.gt.f32.partialorder %v2378_v26, 0.0 }
 0x3a2   :  { %v2443_v34 = vmin.f32 %v2373_v41, 0.0  ;;  %v2568_v24 = vsel %vm2408_vm13, %v2358_v51, %v3417_v42  ;;  %vm2411_vm1 = vcmp.gt.f32.partialorder %v2373_v41, 0.0 }
 0x3a3   :  { %v2507_v62 = vmul.f32 1.442695, %v2444_v48  ;;  %v2567_v49 = vsel %vm2407_vm12, %v2353_v3, %v3416_v35 }
 0x3a4   :  { %v2505_v1 = vmul.f32 1.442695, %v2443_v34  ;;  %3662 = vmatprep.mubr.msk.f32.mxu1 %vm2059_vm0, %v2567_v49  ;;  %v2598_v49 = vpop.permute.xlu0 %2597 }
 0x3a5   :  { %4294 = vpow2.f32 %v2507_v62  ;;  %3663 = vmatmul.mubr.msk.f32.gmra.mrb[122].mxu1 %vm2059_vm0, %v2568_v24  ;;  %v7121_v62 = vld [vmem:[%s7421_s5] ss:$0 sm:$0xff] }
 0x3a6   :  { %4296 = vpow2.f32 %v2505_v1 }
 0x3a7   :  { %v4291_v7 = vpop.eup %4290 }
 0x3a8   :  { %v4293_v23 = vpop.eup %4292  ;;  %v3419_v53 = vadd.f32 -1.0, %v4291_v7 }
 0x3a9   :  { %v3418_v18 = vadd.f32 -1.0, %v4293_v23 }
 0x3aa   :  { %v2570_v10 = vsel %vm2410_vm15, %v2368_v30, %v3419_v53 }
 0x3ab   :  { %v2569_v60 = vsel %vm2409_vm14, %v2363_v22, %v3418_v18 }
 0x3ac   :  { %3665 = vmatprep.mubr.msk.f32.mxu1 %vm2059_vm0, %v2569_v60 }
 0x3ad   :  { %3666 = vmatmul.mubr.msk.f32.gmra.mrb[124].mxu1 %vm2059_vm0, %v2570_v10 }
 0x3af   :  { %v4295_v38 = vpop.eup %4294 }
 0x3b0   :  { %v4297_v47 = vpop.eup %4296  ;;  %v3421_v13 = vadd.f32 -1.0, %v4295_v38 }
 0x3b1   :  { %v3420_v58 = vadd.f32 -1.0, %v4297_v47 }
 0x3b2   :  { %v2572_v63 = vsel %vm2412_vm2, %v2378_v26, %v3421_v13 }
 0x3b3   :  { %v2571_v33 = vsel %vm2411_vm1, %v2373_v41, %v3420_v58  ;;  %v2600_v41 = vpop.permute.xlu1 %2599 }
 0x3b4   :  { %3668 = vmatprep.mubr.msk.f32.mxu1 %vm2059_vm0, %v2571_v33 }
 0x3b5   :  { %3669 = vmatmul.mubr.msk.f32.gmra.mrb[126].mxu1 %vm2059_vm0, %v2572_v63 }
 0x42a   :  { %v3625_v31 = vpop.f32.mrb[96].mxu1 }
 0x42b   :  { %v2841_v9 = vadd.f32 %v3625_v31, %v2580_v20  ;;  %v2835_v51 = vpop.f32.mrb[97].mxu1 }
 0x42c   :  { %v7095_v32 = vadd.f32 %v2835_v51, %v2578_v14 }
 0x42d   :  { %v3027_v54 = vmin.f32 %v2841_v9, 0.0  ;;  %vm2995_vm3 = vcmp.gt.f32.partialorder %v2841_v9, 0.0 }
 0x42e   :  { %v3026_v3 = vmin.f32 %v7095_v32, 0.0  ;;  %v3628_v37 = vpop.f32.mrb[98].mxu1  ;;  %vm2994_vm4 = vcmp.gt.f32.partialorder %v7095_v32, 0.0 }
 0x42f   :  { %v3060_v16 = vmul.f32 1.442695, %v3027_v54  ;;  %v7098_v28 = vadd.f32 %v3628_v37, %v2584_v55  ;;  %v2845_v44 = vpop.f32.mrb[99].mxu1 }
 0x430   :  { %v3058_v15 = vmul.f32 1.442695, %v3026_v3  ;;  %v7100_v8 = vadd.f32 %v2845_v44, %v2582_v45 }
 0x431   :  { %4298 = vpow2.f32 %v3060_v16  ;;  %v3029_v57 = vmin.f32 %v7098_v28, 0.0  ;;  %vm2997_vm5 = vcmp.gt.f32.partialorder %v7098_v28, 0.0 }
 0x432   :  { %4300 = vpow2.f32 %v3058_v15  ;;  %v3028_v0 = vmin.f32 %v7100_v8, 0.0  ;;  %v3631_v19 = vpop.f32.mrb[100].mxu1  ;;  %vm2996_vm6 = vcmp.gt.f32.partialorder %v7100_v8, 0.0 }
 0x433   :  { %v3064_v46 = vmul.f32 1.442695, %v3029_v57  ;;  %v7104_v30 = vadd.f32 %v3631_v19, %v2588_v17  ;;  %v2855_v40 = vpop.f32.mrb[101].mxu1  ;;  %v2604_v17 = vpop.permute.xlu1 %2603 }
 0x434   :  { %v3062_v5 = vmul.f32 1.442695, %v3028_v0  ;;  %v7106_v22 = vadd.f32 %v2855_v40, %v2586_v43 }
 0x435   :  { %4302 = vpow2.f32 %v3064_v46  ;;  %v3031_v52 = vmin.f32 %v7104_v30, 0.0  ;;  %vm2999_vm7 = vcmp.gt.f32.partialorder %v7104_v30, 0.0 }
 0x436   :  { %4304 = vpow2.f32 %v3062_v5  ;;  %v3030_v25 = vmin.f32 %v7106_v22, 0.0  ;;  %v3634_v29 = vpop.f32.mrb[102].mxu1  ;;  %vm2998_vm8 = vcmp.gt.f32.partialorder %v7106_v22, 0.0 }
 0x437   :  { %v3068_v21 = vmul.f32 1.442695, %v3031_v52  ;;  %v7110_v2 = vadd.f32 %v3634_v29, %v2592_v36  ;;  %v2865_v6 = vpop.f32.mrb[103].mxu1  ;;  %v2608_v52 = vpop.permute.xlu1 %2607 }
 0x438   :  { %v3066_v39 = vmul.f32 1.442695, %v3030_v25  ;;  %v7112_v59 = vadd.f32 %v2865_v6, %v2590_v50 }
 0x439   :  { %4306 = vpow2.f32 %v3068_v21  ;;  %v3033_v4 = vmin.f32 %v7110_v2, 0.0  ;;  %vm3001_vm10 = vcmp.gt.f32.partialorder %v7110_v2, 0.0 }
 0x43a   :  { %4308 = vpow2.f32 %v3066_v39  ;;  %v3032_v26 = vmin.f32 %v7112_v59, 0.0  ;;  %v3637_v11 = vpop.f32.mrb[104].mxu1  ;;  %vm3000_vm9 = vcmp.gt.f32.partialorder %v7112_v59, 0.0 }
 0x43b   :  { %v4299_v12 = vpop.eup %4298  ;;  %v3072_v48 = vmul.f32 1.442695, %v3033_v4  ;;  %v7116_v35 = vadd.f32 %v3637_v11, %v2596_v56  ;;  %v2875_v34 = vpop.f32.mrb[105].mxu1 }
 0x43c   :  { %v4301_v61 = vpop.eup %4300  ;;  %v3455_v42 = vadd.f32 -1.0, %v4299_v12  ;;  %v3070_v24 = vmul.f32 1.442695, %v3032_v26  ;;  %v7123_v7 = vadd.f32 %v2875_v34, %v2594_v27 }
 0x43d   :  { %v3454_v1 = vadd.f32 -1.0, %v4301_v61  ;;  %4310 = vpow2.f32 %v3072_v48  ;;  %v3035_v23 = vmin.f32 %v7116_v35, 0.0  ;;  %vm3003_vm12 = vcmp.gt.f32.partialorder %v7116_v35, 0.0 }
 0x43e   :  { %v3155_v53 = vsel %vm2995_vm3, %v2841_v9, %v3455_v42  ;;  %4312 = vpow2.f32 %v3070_v24  ;;  %v3034_v18 = vmin.f32 %v7123_v7, 0.0  ;;  %v3640_v60 = vpop.f32.mrb[106].mxu1  ;;  %v2602_v9 = vpop.permute.xlu0 %2601  ;;  %vm3002_vm11 = vcmp.gt.f32.partialorder %v7123_v7, 0.0 }
 0x43f   :  { %v3194_v10 = vmul.f32 %v7121_v62, %v3155_v53  ;;  %v4303_v38 = vpop.eup %4302  ;;  %v3076_v47 = vmul.f32 1.442695, %v3035_v23  ;;  %v7129_v13 = vadd.f32 %v3640_v60, %v2600_v41  ;;  %v2885_v58 = vpop.f32.mrb[107].mxu1  ;;  %v3154_v33 = vsel %vm2994_vm4, %v7095_v32, %v3454_v1 }
 0x440   :  { %v4305_v63 = vpop.eup %4304  ;;  %v3457_v20 = vadd.f32 -1.0, %v4303_v38  ;;  %v3074_v14 = vmul.f32 1.442695, %v3034_v18  ;;  %v7132_v55 = vadd.f32 %v2885_v58, %v2598_v49  ;;  %v3193_v54 = vmul.f32 %v7121_v62, %v3154_v33 }
 0x441   :  { %v3228_v45 = vsel %vm2059_vm0, %v3194_v10, 0.0  ;;  %v3456_v31 = vadd.f32 -1.0, %v4305_v63  ;;  %4314 = vpow2.f32 %v3076_v47  ;;  %v3037_v43 = vmin.f32 %v7129_v13, 0.0 }
 0x442   :  { %3229 = vadd.xlane.f32.xlu1 %v3228_v45  ;;  %4316 = vpow2.f32 %v3074_v14  ;;  %v3036_v51 = vmin.f32 %v7132_v55, 0.0  ;;  %v3643_v32 = vpop.f32.mrb[108].mxu1  ;;  %v3157_v15 = vsel %vm2997_vm5, %v7098_v28, %v3457_v20  ;;  %v3225_v46 = vsel %vm2059_vm0, %v3193_v54, 0.0  ;;  %v2606_v4 = vpop.permute.xlu0 %2605 }
 0x443   :  { %v4307_v3 = vpop.eup %4306  ;;  %v3080_v16 = vmul.f32 1.442695, %v3037_v43  ;;  %v7140_v37 = vadd.f32 %v3643_v32, %v2604_v17  ;;  %v2895_v36 = vpop.f32.mrb[109].mxu1  ;;  %v3156_v44 = vsel %vm2996_vm6, %v7100_v8, %v3456_v31  ;;  %3226 = vadd.xlane.f32.xlu0 %v3225_v46  ;;  %v3196_v8 = vmul.f32 %v7121_v62, %v3157_v15 }
 0x444   :  { %v4309_v50 = vpop.eup %4308  ;;  %v3459_v57 = vadd.f32 -1.0, %v4307_v3  ;;  %v3078_v0 = vmul.f32 1.442695, %v3036_v51  ;;  %v7144_v19 = vadd.f32 %v2895_v36, %v2602_v9  ;;  %v3195_v21 = vmul.f32 %v7121_v62, %v3156_v44  ;;  %v2612_v20 = vpop.permute.xlu1 %2611 }
 0x445   :  { %v3458_v40 = vadd.f32 -1.0, %v4309_v50  ;;  %4318 = vpow2.f32 %v3080_v16  ;;  %v3039_v5 = vmin.f32 %v7140_v37, 0.0  ;;  %v3234_v11 = vsel %vm2059_vm0, %v3196_v8, 0.0 }
 0x446   :  { %4320 = vpow2.f32 %v3078_v0  ;;  %v3038_v28 = vmin.f32 %v7144_v19, 0.0  ;;  %v3159_v6 = vsel %vm2999_vm7, %v7104_v30, %v3459_v57  ;;  %v3231_v18 = vsel %vm2059_vm0, %v3195_v21, 0.0  ;;  %v2610_v31 = vpop.permute.xlu0 %2609 }
 0x447   :  { %v4311_v56 = vpop.eup %4310  ;;  %v3084_v27 = vmul.f32 1.442695, %v3039_v5  ;;  %v3158_v29 = vsel %vm2998_vm8, %v7106_v22, %v3458_v40  ;;  %3235 = vadd.xlane.f32.xlu0 %v3234_v11  ;;  %v3198_v10 = vmul.f32 %v7121_v62, %v3159_v6  ;;  %vm3004_vm13 = vcmp.gt.f32.partialorder %v7132_v55, 0.0 }
 0x448   :  { %v3646_v25 = vpop.f32.mrb[110].mxu1  ;;  %v4313_v39 = vpop.eup %4312  ;;  %v3461_v12 = vadd.f32 -1.0, %v4311_v56  ;;  %v3082_v26 = vmul.f32 1.442695, %v3038_v28  ;;  %v3197_v22 = vmul.f32 %v7121_v62, %v3158_v29  ;;  %vm3005_vm14 = vcmp.gt.f32.partialorder %v7129_v13, 0.0 }
 0x449   :  { %v7156_v61 = vadd.f32 %v3646_v25, %v2608_v52  ;;  %v2905_v41 = vpop.f32.mrb[111].mxu1  ;;  %v3460_v42 = vadd.f32 -1.0, %v4313_v39  ;;  %4322 = vpow2.f32 %v3084_v27  ;;  %v3240_v43 = vsel %vm2059_vm0, %v3198_v10, 0.0  ;;  %v2616_v27 = vpop.permute.xlu1 %2615 }
 0x44a   :  { %v7158_v48 = vadd.f32 %v2905_v41, %v2606_v4  ;;  %4324 = vpow2.f32 %v3082_v26  ;;  %v3237_v1 = vsel %vm2059_vm0, %v3197_v22, 0.0  ;;  %v3161_v33 = vsel %vm3001_vm10, %v7110_v2, %v3461_v12  ;;  %v2614_v6 = vpop.permute.xlu0 %2613 }
 0x44b   :  { %v3041_v30 = vmin.f32 %v7156_v61, 0.0  ;;  %v4315_v34 = vpop.eup %4314  ;;  %v3160_v24 = vsel %vm3000_vm9, %v7112_v59, %v3460_v42  ;;  %3238 = vadd.xlane.f32.xlu1 %v3237_v1  ;;  %3232 = vadd.xlane.f32.xlu0 %v3231_v18  ;;  %v3200_v32 = vmul.f32 %v7121_v62, %v3161_v33  ;;  %vm3006_vm15 = vcmp.gt.f32.partialorder %v7144_v19, 0.0 }
 0x44c   :  { %v3040_v49 = vmin.f32 %v7158_v48, 0.0  ;;  %v4317_v23 = vpop.eup %4316  ;;  %v3199_v60 = vmul.f32 %v7121_v62, %v3160_v24  ;;  %v3463_v38 = vadd.f32 -1.0, %v4315_v34  ;;  %vm3007_vm1 = vcmp.gt.f32.partialorder %v7140_v37, 0.0 }
 0x44d   :  { %v3088_v53 = vmul.f32 1.442695, %v3041_v30  ;;  %v3462_v47 = vadd.f32 -1.0, %v4317_v23  ;;  %v3246_v40 = vsel %vm2059_vm0, %v3200_v32, 0.0  ;;  %vm3009_vm2 = vcmp.gt.f32.partialorder %v7156_v61, 0.0  ;;  %v2620_v10 = vpop.permute.xlu1 %2619 }
 0x44e   :  { %v3086_v58 = vmul.f32 1.442695, %v3040_v49  ;;  %v3243_v59 = vsel %vm2059_vm0, %v3199_v60, 0.0  ;;  %vm3008_vm3 = vcmp.gt.f32.partialorder %v7158_v48, 0.0  ;;  %v2618_v33 = vpop.permute.xlu0 %2617 }
 0x44f   :  { %4326 = vpow2.f32 %v3088_v53  ;;  %v4319_v63 = vpop.eup %4318  ;;  %v3162_v45 = vsel %vm3002_vm11, %v7123_v7, %v3462_v47  ;;  %3244 = vadd.xlane.f32.xlu1 %v3243_v59  ;;  %3241 = vadd.xlane.f32.xlu0 %v3240_v43  ;;  %v3163_v7 = vsel %vm3003_vm12, %v7116_v35, %v3463_v38 }
 0x450   :  { %4328 = vpow2.f32 %v3086_v58  ;;  %v3649_v14 = vpop.f32.mrb[112].mxu1  ;;  %v4321_v17 = vpop.eup %4320  ;;  %v3201_v51 = vmul.f32 %v7121_v62, %v3162_v45  ;;  %v3465_v54 = vadd.f32 -1.0, %v4319_v63  ;;  %v3202_v5 = vmul.f32 %v7121_v62, %v3163_v7 }
 0x451   :  { %v7176_v9 = vadd.f32 %v3649_v14, %v2612_v20  ;;  %v2915_v2 = vpop.f32.mrb[113].mxu1  ;;  %v3464_v3 = vadd.f32 -1.0, %v4321_v17 }
 0x452   :  { %v7180_v16 = vadd.f32 %v2915_v2, %v2610_v31  ;;  %v3249_v15 = vsel %vm2059_vm0, %v3201_v51, 0.0  ;;  %v3165_v52 = vsel %vm3005_vm14, %v7129_v13, %v3465_v54  ;;  %v3252_v39 = vsel %vm2059_vm0, %v3202_v5, 0.0 }
 0x453   :  { %v3043_v36 = vmin.f32 %v7176_v9, 0.0  ;;  %v4323_v44 = vpop.eup %4322  ;;  %v3164_v57 = vsel %vm3004_vm13, %v7132_v55, %v3464_v3  ;;  %3250 = vadd.xlane.f32.xlu1 %v3249_v15  ;;  %3247 = vadd.xlane.f32.xlu0 %v3246_v40  ;;  %v3204_v26 = vmul.f32 %v7121_v62, %v3165_v52  ;;  %vm3011_vm4 = vcmp.gt.f32.partialorder %v7176_v9, 0.0 }
 0x454   :  { %v3042_v50 = vmin.f32 %v7180_v16, 0.0  ;;  %v4325_v0 = vpop.eup %4324  ;;  %v3203_v35 = vmul.f32 %v7121_v62, %v3164_v57  ;;  %v3467_v28 = vadd.f32 -1.0, %v4323_v44  ;;  %vm3010_vm5 = vcmp.gt.f32.partialorder %v7180_v16, 0.0  ;;  %v2624_v44 = vpop.permute.xlu1 %2623 }
 0x455   :  { %v3092_v46 = vmul.f32 1.442695, %v3043_v36  ;;  %v3466_v8 = vadd.f32 -1.0, %v4325_v0  ;;  %v3258_v24 = vsel %vm2059_vm0, %v3204_v26, 0.0  ;;  %v2622_v0 = vpop.permute.xlu0 %2621 }
 0x456   :  { %v3090_v56 = vmul.f32 1.442695, %v3042_v50  ;;  %v3255_v55 = vsel %vm2059_vm0, %v3203_v35, 0.0 }
 0x457   :  { %4330 = vpow2.f32 %v3092_v46  ;;  %v3166_v29 = vsel %vm3006_vm15, %v7144_v19, %v3466_v8  ;;  %3256 = vadd.xlane.f32.xlu1 %v3255_v55  ;;  %3253 = vadd.xlane.f32.xlu0 %v3252_v39  ;;  %v3167_v19 = vsel %vm3007_vm1, %v7140_v37, %v3467_v28 }
 0x458   :  { %4332 = vpow2.f32 %v3090_v56  ;;  %v3652_v25 = vpop.f32.mrb[114].mxu1  ;;  %v3205_v12 = vmul.f32 %v7121_v62, %v3166_v29  ;;  %v3206_v23 = vmul.f32 %v7121_v62, %v3167_v19  ;;  %v2628_v39 = vpop.permute.xlu1 %2627 }
 0x459   :  { %v4327_v21 = vpop.eup %4326  ;;  %v7200_v4 = vadd.f32 %v3652_v25, %v2616_v27  ;;  %v2925_v13 = vpop.f32.mrb[115].mxu1 }
 0x45a   :  { %v4329_v11 = vpop.eup %4328  ;;  %v3469_v41 = vadd.f32 -1.0, %v4327_v21  ;;  %v7204_v42 = vadd.f32 %v2925_v13, %v2614_v6  ;;  %v3261_v34 = vsel %vm2059_vm0, %v3205_v12, 0.0  ;;  %v3264_v59 = vsel %vm2059_vm0, %v3206_v23, 0.0 }
 0x45b   :  { %v3468_v22 = vadd.f32 -1.0, %v4329_v11  ;;  %v3045_v30 = vmin.f32 %v7200_v4, 0.0  ;;  %3262 = vadd.xlane.f32.xlu1 %v3261_v34  ;;  %3259 = vadd.xlane.f32.xlu0 %v3258_v24  ;;  %vm3013_vm6 = vcmp.gt.f32.partialorder %v7200_v4, 0.0  ;;  %v2626_v11 = vpop.permute.xlu0 %2625 }
 0x45c   :  { %v3044_v49 = vmin.f32 %v7204_v42, 0.0  ;;  %v3169_v60 = vsel %vm3009_vm2, %v7156_v61, %v3469_v41  ;;  %vm3012_vm7 = vcmp.gt.f32.partialorder %v7204_v42, 0.0 }
 0x45d   :  { %v3096_v1 = vmul.f32 1.442695, %v3045_v30  ;;  %v3168_v53 = vsel %vm3008_vm3, %v7158_v48, %v3468_v22  ;;  %v3208_v48 = vmul.f32 %v7121_v62, %v3169_v60 }
 0x45e   :  { %v3094_v37 = vmul.f32 1.442695, %v3044_v49  ;;  %v3207_v18 = vmul.f32 %v7121_v62, %v3168_v53 }
 0x45f   :  { %4334 = vpow2.f32 %v3096_v1  ;;  %3265 = vadd.xlane.f32.xlu0 %v3264_v59  ;;  %v3270_v32 = vsel %vm2059_vm0, %v3208_v48, 0.0 }
 0x460   :  { %4336 = vpow2.f32 %v3094_v37  ;;  %v3655_v38 = vpop.f32.mrb[116].mxu1  ;;  %v3267_v47 = vsel %vm2059_vm0, %v3207_v18, 0.0 }
 0x461   :  { %v4331_v58 = vpop.eup %4330  ;;  %v7221_v63 = vadd.f32 %v3655_v38, %v2620_v10  ;;  %v2935_v20 = vpop.f32.mrb[117].mxu1  ;;  %3268 = vadd.xlane.f32.xlu1 %v3267_v47 }
 0x462   :  { %v4333_v14 = vpop.eup %4332  ;;  %v3471_v45 = vadd.f32 -1.0, %v4331_v58  ;;  %v7224_v61 = vadd.f32 %v2935_v20, %v2618_v33  ;;  %v2632_v10 = vpop.permute.xlu1 %2631 }
 0x463   :  { %v3470_v17 = vadd.f32 -1.0, %v4333_v14  ;;  %v3047_v31 = vmin.f32 %v7221_v63, 0.0  ;;  %3271 = vadd.xlane.f32.xlu0 %v3270_v32  ;;  %vm3015_vm8 = vcmp.gt.f32.partialorder %v7221_v63, 0.0  ;;  %v2630_v33 = vpop.permute.xlu0 %2629 }
 0x464   :  { %v3046_v43 = vmin.f32 %v7224_v61, 0.0  ;;  %v3171_v2 = vsel %vm3011_vm4, %v7176_v9, %v3471_v45  ;;  %vm3014_vm9 = vcmp.gt.f32.partialorder %v7224_v61, 0.0 }
 0x465   :  { %v3100_v51 = vmul.f32 1.442695, %v3047_v31  ;;  %v3210_v54 = vmul.f32 %v7121_v62, %v3171_v2  ;;  %v3170_v3 = vsel %vm3010_vm5, %v7180_v16, %v3470_v17  ;;  %vm3321_vm5 = vcmask 7168  }
 0x466   :  { %v3098_v7 = vmul.f32 1.442695, %v3046_v43  ;;  %v3209_v36 = vmul.f32 %v7121_v62, %v3170_v3 }
 0x467   :  { %4338 = vpow2.f32 %v3100_v51  ;;  %v3276_v15 = vsel %vm2059_vm0, %v3210_v54, 0.0 }
 0x468   :  { %4340 = vpow2.f32 %v3098_v7  ;;  %v3658_v50 = vpop.f32.mrb[118].mxu1  ;;  %v3273_v57 = vsel %vm2059_vm0, %v3209_v36, 0.0  ;;  %3277 = vadd.xlane.f32.xlu0 %v3276_v15  ;;  %v2636_v7 = vpop.permute.xlu1 %2635 }
 0x469   :  { %v4335_v9 = vpop.eup %4334  ;;  %v7237_v46 = vadd.f32 %v3658_v50, %v2624_v44  ;;  %v2945_v40 = vpop.f32.mrb[119].mxu1  ;;  %3274 = vadd.xlane.f32.xlu1 %v3273_v57 }
 0x46a   :  { %v4337_v35 = vpop.eup %4336  ;;  %v3473_v16 = vadd.f32 -1.0, %v4335_v9  ;;  %v2946_v5 = vadd.f32 %v2945_v40, %v2622_v0  ;;  %v2634_v50 = vpop.permute.xlu0 %2633 }
 0x46b   :  { %v3472_v28 = vadd.f32 -1.0, %v4337_v35  ;;  %v3049_v8 = vmin.f32 %v7237_v46, 0.0  ;;  %vm3017_vm10 = vcmp.gt.f32.partialorder %v7237_v46, 0.0 }
 0x46c   :  { %v3048_v56 = vmin.f32 %v2946_v5, 0.0  ;;  %v3173_v52 = vsel %vm3013_vm6, %v7200_v4, %v3473_v16  ;;  %vm3016_vm11 = vcmp.gt.f32.partialorder %v2946_v5, 0.0 }
 0x46d   :  { %v3104_v55 = vmul.f32 1.442695, %v3049_v8  ;;  %v3212_v27 = vmul.f32 %v7121_v62, %v3173_v52  ;;  %v3172_v25 = vsel %vm3012_vm7, %v7204_v42, %v3472_v28 }
 0x46e   :  { %v3102_v29 = vmul.f32 1.442695, %v3048_v56  ;;  %v3211_v21 = vmul.f32 %v7121_v62, %v3172_v25 }
 0x46f   :  { %4342 = vpow2.f32 %v3104_v55  ;;  %v3282_v6 = vsel %vm2059_vm0, %v3212_v27, 0.0 }
 0x470   :  { %4344 = vpow2.f32 %v3102_v29  ;;  %v3661_v13 = vpop.f32.mrb[120].mxu1  ;;  %3283 = vadd.xlane.f32.xlu0 %v3282_v6  ;;  %v3279_v12 = vsel %vm2059_vm0, %v3211_v21, 0.0  ;;  %v2640_v29 = vpop.permute.xlu1 %2639 }
 0x471   :  { %v4339_v26 = vpop.eup %4338  ;;  %v7248_v4 = vadd.f32 %v3661_v13, %v2628_v39  ;;  %v2955_v41 = vpop.f32.mrb[121].mxu1  ;;  %3280 = vadd.xlane.f32.xlu1 %v3279_v12 }
 0x472   :  { %v4341_v19 = vpop.eup %4340  ;;  %v3475_v42 = vadd.f32 -1.0, %v4339_v26  ;;  %v2956_v22 = vadd.f32 %v2955_v41, %v2626_v11  ;;  %v2638_v13 = vpop.permute.xlu0 %2637 }
 0x473   :  { %v3474_v30 = vadd.f32 -1.0, %v4341_v19  ;;  %v3051_v34 = vmin.f32 %v7248_v4, 0.0  ;;  %vm3019_vm12 = vcmp.gt.f32.partialorder %v7248_v4, 0.0 }
 0x474   :  { %v3050_v49 = vmin.f32 %v2956_v22, 0.0  ;;  %v3175_v1 = vsel %vm3015_vm8, %v7221_v63, %v3475_v42  ;;  %vm3018_vm13 = vcmp.gt.f32.partialorder %v2956_v22, 0.0 }
 0x475   :  { %v3108_v24 = vmul.f32 1.442695, %v3051_v34  ;;  %v3214_v23 = vmul.f32 %v7121_v62, %v3175_v1  ;;  %v3174_v53 = vsel %vm3014_vm9, %v7224_v61, %v3474_v30 }
 0x476   :  { %v3106_v37 = vmul.f32 1.442695, %v3050_v49  ;;  %v3213_v18 = vmul.f32 %v7121_v62, %v3174_v53 }
 0x477   :  { %4346 = vpow2.f32 %v3108_v24  ;;  %v3288_v60 = vsel %vm2059_vm0, %v3214_v23, 0.0 }
 0x478   :  { %4348 = vpow2.f32 %v3106_v37  ;;  %v3664_v38 = vpop.f32.mrb[122].mxu1  ;;  %3289 = vadd.xlane.f32.xlu0 %v3288_v60  ;;  %v3285_v47 = vsel %vm2059_vm0, %v3213_v18, 0.0 }
 0x479   :  { %v4343_v58 = vpop.eup %4342  ;;  %v7259_v59 = vadd.f32 %v3664_v38, %v2632_v10  ;;  %v2965_v63 = vpop.f32.mrb[123].mxu1  ;;  %3286 = vadd.xlane.f32.xlu1 %v3285_v47 }
 0x47a   :  { %v4345_v20 = vpop.eup %4344  ;;  %v3477_v48 = vadd.f32 -1.0, %v4343_v58  ;;  %v2966_v14 = vadd.f32 %v2965_v63, %v2630_v33 }
 0x47b   :  { %v3476_v45 = vadd.f32 -1.0, %v4345_v20  ;;  %v3053_v61 = vmin.f32 %v7259_v59, 0.0  ;;  %vm3021_vm14 = vcmp.gt.f32.partialorder %v7259_v59, 0.0 }
 0x47c   :  { %v3052_v17 = vmin.f32 %v2966_v14, 0.0  ;;  %v3177_v31 = vsel %vm3017_vm10, %v7237_v46, %v3477_v48  ;;  %vm3020_vm15 = vcmp.gt.f32.partialorder %v2966_v14, 0.0 }
 0x47d   :  { %v3112_v43 = vmul.f32 1.442695, %v3053_v61  ;;  %v3216_v2 = vmul.f32 %v7121_v62, %v3177_v31  ;;  %v3176_v51 = vsel %vm3016_vm11, %v2946_v5, %v3476_v45 }
 0x47e   :  { %v3110_v32 = vmul.f32 1.442695, %v3052_v17  ;;  %v3215_v54 = vmul.f32 %v7121_v62, %v3176_v51 }
 0x47f   :  { %4350 = vpow2.f32 %v3112_v43  ;;  %v3294_v3 = vsel %vm2059_vm0, %v3216_v2, 0.0 }
 0x480   :  { %4352 = vpow2.f32 %v3110_v32  ;;  %v3667_v36 = vpop.f32.mrb[124].mxu1  ;;  %3295 = vadd.xlane.f32.xlu0 %v3294_v3  ;;  %v3291_v15 = vsel %vm2059_vm0, %v3215_v54, 0.0 }
 0x481   :  { %v4347_v44 = vpop.eup %4346  ;;  %v2981_v57 = vadd.f32 %v3667_v36, %v2636_v7  ;;  %v2975_v9 = vpop.f32.mrb[125].mxu1  ;;  %3292 = vadd.xlane.f32.xlu1 %v3291_v15 }
 0x482   :  { %v4349_v0 = vpop.eup %4348  ;;  %v3479_v46 = vadd.f32 -1.0, %v4347_v44  ;;  %v2976_v40 = vadd.f32 %v2975_v9, %v2634_v50 }
 0x483   :  { %v3478_v35 = vadd.f32 -1.0, %v4349_v0  ;;  %v3055_v16 = vmin.f32 %v2981_v57, 0.0  ;;  %vm3023_vm1 = vcmp.gt.f32.partialorder %v2981_v57, 0.0 }
 0x484   :  { %v3054_v5 = vmin.f32 %v2976_v40, 0.0  ;;  %v3179_v28 = vsel %vm3019_vm12, %v7248_v4, %v3479_v46  ;;  %vm3022_vm2 = vcmp.gt.f32.partialorder %v2976_v40, 0.0 }
 0x485   :  { %v3116_v8 = vmul.f32 1.442695, %v3055_v16  ;;  %v3218_v56 = vmul.f32 %v7121_v62, %v3179_v28  ;;  %v3178_v52 = vsel %vm3018_vm13, %v2956_v22, %v3478_v35 }
 0x486   :  { %v3114_v55 = vmul.f32 1.442695, %v3054_v5  ;;  %v3217_v27 = vmul.f32 %v7121_v62, %v3178_v52 }
 0x487   :  { %4354 = vpow2.f32 %v3116_v8  ;;  %v3300_v25 = vsel %vm2059_vm0, %v3218_v56, 0.0 }
 0x488   :  { %4356 = vpow2.f32 %v3114_v55  ;;  %v3670_v21 = vpop.f32.mrb[126].mxu1  ;;  %3301 = vadd.xlane.f32.xlu0 %v3300_v25  ;;  %v3297_v6 = vsel %vm2059_vm0, %v3217_v27, 0.0 }
 0x489   :  { %v4351_v39 = vpop.eup %4350  ;;  %v2991_v12 = vadd.f32 %v3670_v21, %v2640_v29  ;;  %v2985_v26 = vpop.f32.mrb[127].mxu1  ;;  %3298 = vadd.xlane.f32.xlu1 %v3297_v6 }
 0x48a   :  { %v4353_v11 = vpop.eup %4352  ;;  %v3481_v4 = vadd.f32 -1.0, %v4351_v39  ;;  %v2986_v41 = vadd.f32 %v2985_v26, %v2638_v13 }
 0x48b   :  { %v3480_v19 = vadd.f32 -1.0, %v4353_v11  ;;  %v3057_v42 = vmin.f32 %v2991_v12, 0.0  ;;  %vm3025_vm3 = vcmp.gt.f32.partialorder %v2991_v12, 0.0 }
 0x48c   :  { %v3056_v22 = vmin.f32 %v2986_v41, 0.0  ;;  %v3181_v30 = vsel %vm3021_vm14, %v7259_v59, %v3481_v4  ;;  %vm3024_vm4 = vcmp.gt.f32.partialorder %v2986_v41, 0.0 }
 0x48d   :  { %v3120_v34 = vmul.f32 1.442695, %v3057_v42  ;;  %v3220_v49 = vmul.f32 %v7121_v62, %v3181_v30  ;;  %v3180_v1 = vsel %vm3020_vm15, %v2966_v14, %v3480_v19 }
 0x48e   :  { %v3118_v24 = vmul.f32 1.442695, %v3056_v22  ;;  %v3219_v23 = vmul.f32 %v7121_v62, %v3180_v1 }
 0x48f   :  { %4358 = vpow2.f32 %v3120_v34  ;;  %v3306_v53 = vsel %vm2059_vm0, %v3220_v49, 0.0 }
 0x490   :  { %4360 = vpow2.f32 %v3118_v24  ;;  %3307 = vadd.xlane.f32.xlu0 %v3306_v53  ;;  %v3303_v37 = vsel %vm2059_vm0, %v3219_v23, 0.0 }
 0x491   :  { %v4355_v18 = vpop.eup %4354  ;;  %3304 = vadd.xlane.f32.xlu1 %v3303_v37 }
 0x492   :  { %v4357_v60 = vpop.eup %4356  ;;  %v3483_v10 = vadd.f32 -1.0, %v4355_v18 }
 0x493   :  { %v3482_v38 = vadd.f32 -1.0, %v4357_v60 }
 0x494   :  { %v3183_v47 = vsel %vm3023_vm1, %v2981_v57, %v3483_v10 }
 0x495   :  { %v3222_v58 = vmul.f32 %v7121_v62, %v3183_v47  ;;  %v3182_v33 = vsel %vm3022_vm2, %v2976_v40, %v3482_v38 }
 0x496   :  { %v3221_v59 = vmul.f32 %v7121_v62, %v3182_v33 }
 0x497   :  { %v3312_v63 = vsel %vm2059_vm0, %v3222_v58, 0.0 }
 0x498   :  { %3313 = vadd.xlane.f32.xlu0 %v3312_v63  ;;  %v3309_v20 = vsel %vm2059_vm0, %v3221_v59, 0.0 }
 0x499   :  { %v4359_v48 = vpop.eup %4358  ;;  %3310 = vadd.xlane.f32.xlu1 %v3309_v20 }
 0x49a   :  { %v4361_v14 = vpop.eup %4360  ;;  %v3485_v45 = vadd.f32 -1.0, %v4359_v48 }
 0x49b   :  { %v3484_v61 = vadd.f32 -1.0, %v4361_v14 }
 0x49c   :  { %v3185_v17 = vsel %vm3025_vm3, %v2991_v12, %v3485_v45 }
 0x49d   :  { %v3224_v31 = vmul.f32 %v7121_v62, %v3185_v17  ;;  %v3184_v43 = vsel %vm3024_vm4, %v2986_v41, %v3484_v61 }
 0x49e   :  { %v3223_v2 = vmul.f32 %v7121_v62, %v3184_v43 }
 0x49f   :  { %v3318_v51 = vsel %vm2059_vm0, %v3224_v31, 0.0 }
 0x4a0   :  { %3319 = vadd.xlane.f32.xlu0 %v3318_v51  ;;  %v3315_v32 = vsel %vm2059_vm0, %v3223_v2, 0.0 }
 0x4a1   :  { %3316 = vadd.xlane.f32.xlu1 %v3315_v32 }
 0x4cf   :  { %v3230_v54 = vpop.xlane.xlu1 %3229 }
 0x4d0   :  { %3323 = vst.msk [vmem:[%s7422_s6 + $0x8] sm:$0xff] %vm3321_vm5, %v3230_v54  ;;  %v3227_v3 = vpop.xlane.xlu0 %3226 }
 0x4d1   :  { %3322 = vst.msk [vmem:[%s7422_s6] sm:$0xff] %vm3321_vm5, %v3227_v3 }
 0x4d4   :  { %v3236_v62 = vpop.xlane.xlu0 %3235 }
 0x4d5   :  { %3325 = vst.msk [vmem:[%s7422_s6 + $0x18] sm:$0xff] %vm3321_vm5, %v3236_v62 }
 0x4d8   :  { %v3239_v7 = vpop.xlane.xlu1 %3238  ;;  %v3233_v36 = vpop.xlane.xlu0 %3232 }
 0x4d9   :  { %3326 = vst.msk [vmem:[%s7422_s6 + $0x20] sm:$0xff] %vm3321_vm5, %v3239_v7  ;;  %3324 = vst.msk [vmem:[%s7422_s6 + $0x10] sm:$0xff] %vm3321_vm5, %v3233_v36 }
 0x4dc   :  { %v3245_v15 = vpop.xlane.xlu1 %3244  ;;  %v3242_v44 = vpop.xlane.xlu0 %3241 }
 0x4dd   :  { %3328 = vst.msk [vmem:[%s7422_s6 + $0x30] sm:$0xff] %vm3321_vm5, %v3245_v15  ;;  %3327 = vst.msk [vmem:[%s7422_s6 + $0x28] sm:$0xff] %vm3321_vm5, %v3242_v44 }
 0x4e0   :  { %v3251_v50 = vpop.xlane.xlu1 %3250  ;;  %v3248_v57 = vpop.xlane.xlu0 %3247 }
 0x4e1   :  { %3330 = vst.msk [vmem:[%s7422_s6 + $0x40] sm:$0xff] %vm3321_vm5, %v3251_v50  ;;  %3329 = vst.msk [vmem:[%s7422_s6 + $0x38] sm:$0xff] %vm3321_vm5, %v3248_v57 }
 0x4e4   :  { %v3257_v9 = vpop.xlane.xlu1 %3256  ;;  %v3254_v0 = vpop.xlane.xlu0 %3253 }
 0x4e5   :  { %3332 = vst.msk [vmem:[%s7422_s6 + $0x50] sm:$0xff] %vm3321_vm5, %v3257_v9  ;;  %3331 = vst.msk [vmem:[%s7422_s6 + $0x48] sm:$0xff] %vm3321_vm5, %v3254_v0 }
 0x4e8   :  { %v3263_v46 = vpop.xlane.xlu1 %3262  ;;  %v3260_v40 = vpop.xlane.xlu0 %3259 }
 0x4e9   :  { %3334 = vst.msk [vmem:[%s7422_s6 + $0x60] sm:$0xff] %vm3321_vm5, %v3263_v46  ;;  %3333 = vst.msk [vmem:[%s7422_s6 + $0x58] sm:$0xff] %vm3321_vm5, %v3260_v40 }
 0x4ec   :  { %v3266_v16 = vpop.xlane.xlu0 %3265 }
 0x4ed   :  { %3335 = vst.msk [vmem:[%s7422_s6 + $0x68] sm:$0xff] %vm3321_vm5, %v3266_v16 }
 0x4ee   :  { %v3269_v35 = vpop.xlane.xlu1 %3268 }
 0x4ef   :  { %3336 = vst.msk [vmem:[%s7422_s6 + $0x70] sm:$0xff] %vm3321_vm5, %v3269_v35 }
 0x4f0   :  { %v3272_v5 = vpop.xlane.xlu0 %3271 }
 0x4f1   :  { %3337 = vst.msk [vmem:[%s7422_s6 + $0x78] sm:$0xff] %vm3321_vm5, %v3272_v5 }
 0x4f5   :  { %v3278_v8 = vpop.xlane.xlu0 %3277 }
 0x4f6   :  { %v3275_v28 = vpop.xlane.xlu1 %3274  ;;  %3339 = vst.msk [vmem:[%s7422_s6 + $0x88] sm:$0xff] %vm3321_vm5, %v3278_v8 }
 0x4f7   :  { %3338 = vst.msk [vmem:[%s7422_s6 + $0x80] sm:$0xff] %vm3321_vm5, %v3275_v28 }
 0x4fd   :  { %v3284_v56 = vpop.xlane.xlu0 %3283 }
 0x4fe   :  { %3341 = vst.msk [vmem:[%s7422_s6 + $0x98] sm:$0xff] %vm3321_vm5, %v3284_v56  ;;  %v3281_v52 = vpop.xlane.xlu1 %3280 }
 0x4ff   :  { %3340 = vst.msk [vmem:[%s7422_s6 + $0x90] sm:$0xff] %vm3321_vm5, %v3281_v52 }
 0x505   :  { %v3290_v55 = vpop.xlane.xlu0 %3289 }
 0x506   :  { %3343 = vst.msk [vmem:[%s7422_s6 + $0xa8] sm:$0xff] %vm3321_vm5, %v3290_v55  ;;  %v3287_v27 = vpop.xlane.xlu1 %3286 }
 0x507   :  { %3342 = vst.msk [vmem:[%s7422_s6 + $0xa0] sm:$0xff] %vm3321_vm5, %v3287_v27 }
 0x50d   :  { %v3296_v25 = vpop.xlane.xlu0 %3295 }
 0x50e   :  { %3345 = vst.msk [vmem:[%s7422_s6 + $0xb8] sm:$0xff] %vm3321_vm5, %v3296_v25  ;;  %v3293_v29 = vpop.xlane.xlu1 %3292 }
 0x50f   :  { %3344 = vst.msk [vmem:[%s7422_s6 + $0xb0] sm:$0xff] %vm3321_vm5, %v3293_v29 }
 0x515   :  { %v3302_v21 = vpop.xlane.xlu0 %3301 }
 0x516   :  { %3347 = vst.msk [vmem:[%s7422_s6 + $0xc8] sm:$0xff] %vm3321_vm5, %v3302_v21  ;;  %v3299_v6 = vpop.xlane.xlu1 %3298 }
 0x517   :  { %3346 = vst.msk [vmem:[%s7422_s6 + $0xc0] sm:$0xff] %vm3321_vm5, %v3299_v6 }
 0x51d   :  { %v3308_v39 = vpop.xlane.xlu0 %3307 }
 0x51e   :  { %3349 = vst.msk [vmem:[%s7422_s6 + $0xd8] sm:$0xff] %vm3321_vm5, %v3308_v39  ;;  %v3305_v13 = vpop.xlane.xlu1 %3304 }
 0x51f   :  { %3348 = vst.msk [vmem:[%s7422_s6 + $0xd0] sm:$0xff] %vm3321_vm5, %v3305_v13 }
 0x525   :  { %v3314_v12 = vpop.xlane.xlu0 %3313 }
 0x526   :  { %3351 = vst.msk [vmem:[%s7422_s6 + $0xe8] sm:$0xff] %vm3321_vm5, %v3314_v12  ;;  %v3311_v26 = vpop.xlane.xlu1 %3310 }
 0x527   :  { %3350 = vst.msk [vmem:[%s7422_s6 + $0xe0] sm:$0xff] %vm3321_vm5, %v3311_v26 }
 0x52d   :  { %v3320_v11 = vpop.xlane.xlu0 %3319 }
 0x52e   :  { %3353 = vst.msk [vmem:[%s7422_s6 + $0xf8] sm:$0xff] %vm3321_vm5, %v3320_v11  ;;  %v3317_v4 = vpop.xlane.xlu1 %3316 }
 0x52f   :  { %3352 = vst.msk [vmem:[%s7422_s6 + $0xf0] sm:$0xff] %vm3321_vm5, %v3317_v4 }

</bundles_post_ra>
